<compile_context>
chip_gen: v7x
topology: tpu7x:2x2x1
jax: 0.10.0
libtpu: 0.0.40
codegen_flags: <defaults>
</compile_context>

<pallas_src>
import functools

import jax
import jax.numpy as jnp
import numpy as np
from jax.experimental import pallas as pl
from jax.experimental.pallas import tpu as pltpu


# ----------------------------- fused Pallas kernel ---------------------------

def _simple_cnn_kernel(l1e0_ref, l1o0_ref, l1e1_ref, l1o1_ref,
                       r1e_ref, r1o_ref, b1_ref,
                       w2_ref, b2_ref, wf_ref, fb_ref,
                       out_ref, y1e_scr, y1o_scr, *, tb, npad):
    """conv1+relu+pool -> conv2+relu+pool -> fc for one tile of `tb` images.

    Rows are "h-major": row index = h*tb + img (h = per-image row slot), so
    the shifted conv2 row taps and the per-row-slot fc slices are aligned
    contiguous windows.  Each y1 scratch has 9*tb rows: slots 0..7 hold conv2's
    zero-padded input rows, slot 8 is zero slack for the +tb-shifted reads.
    """
    f32, bf16 = jnp.float32, jnp.bfloat16
    m1 = 8 * tb

    r1e = r1e_ref[...]
    r1o = r1o_ref[...]
    b1 = b1_ref[...]
    zero_blk = jnp.zeros((tb, 256), bf16)

    def conv1_pass(le_ref, lo_ref, scr, pad_slot):
        le = le_ref[...].reshape(m1, 96)
        lo = lo_ref[...].reshape(m1, 96)
        # 2x2 max-pool folded into the max over the four (row,col)-parity
        # matmuls; dot/max interleaved so only two f32 accumulators stay live.
        acc = jnp.dot(le, r1e, preferred_element_type=f32)
        acc = jnp.maximum(acc, jnp.dot(le, r1o, preferred_element_type=f32))
        acc = jnp.maximum(acc, jnp.dot(lo, r1e, preferred_element_type=f32))
        acc = jnp.maximum(acc, jnp.dot(lo, r1o, preferred_element_type=f32))
        act = jnp.maximum(acc + b1, 0.0).astype(bf16)
        scr[pl.ds(0, m1), :] = act
        scr[pl.ds(pad_slot * tb, tb), :] = zero_blk   # conv2 spatial zero pad
        scr[pl.ds(m1, tb), :] = zero_blk              # shifted-read slack rows

    conv1_pass(l1e0_ref, l1o0_ref, y1e_scr, 0)   # even padded rows m = 0,2,..,14
    conv1_pass(l1e1_ref, l1o1_ref, y1o_scr, 7)   # odd  padded rows m = 1,3,..,15

    # conv2: three K=256 row-tap matmuls per output-column parity; tap LHS are
    # views of the VMEM-resident y1 scratch (no im2col materialization).
    t_a = y1e_scr[pl.ds(0, m1), :]     # y1 padded row 2h   (for row slot h)
    t_b = y1o_scr[pl.ds(0, m1), :]     # 2h + 1
    t_c = y1e_scr[pl.ds(tb, m1), :]    # 2h + 2
    t_d = y1o_scr[pl.ds(tb, m1), :]    # 2h + 3

    def band(t0, t1, t2, par):
        acc = jnp.dot(t0, w2_ref[3 * par + 0], preferred_element_type=f32)
        acc = acc + jnp.dot(t1, w2_ref[3 * par + 1], preferred_element_type=f32)
        acc = acc + jnp.dot(t2, w2_ref[3 * par + 2], preferred_element_type=f32)
        return acc

    m4 = band(t_a, t_b, t_c, 0)
    m4 = jnp.maximum(m4, band(t_a, t_b, t_c, 1))
    m4 = jnp.maximum(m4, band(t_b, t_c, t_d, 0))
    m4 = jnp.maximum(m4, band(t_b, t_c, t_d, 1))
    y2 = jnp.maximum(m4 + b2_ref[...], 0.0).astype(bf16)   # (8*tb, 256)

    # fc fused in the epilogue: logits = sum_h y2[row slot h] @ W_h + b.
    # Row slot 7 (kept only for 8-row alignment) is simply skipped.
    acc = jnp.zeros((tb, npad), f32)
    for h in range(7):
        acc = acc + jnp.dot(y2[h * tb:(h + 1) * tb, :], wf_ref[h],
                            preferred_element_type=f32)
    out_ref[...] = acc + fb_ref[...]


# -------------------- trace-time weight / tiling helpers ---------------------

def _batch_tiling(b, max_tile=128):
    """Tile size (multiple of 16, <= max_tile) aiming for >= 2 grid steps."""
    half = (b + 1) // 2
    tb = max(16, min(max_tile, (half // 16) * 16))
    bp = ((b + tb - 1) // tb) * tb
    return bp, tb


def _conv_band_rhs(w_oihw, kh, w_parity, n_wp, in_wblocks, out_wblocks,
                   out_block_offset):
    """Banded rhs: (in_wblocks*Cin, out_wblocks*Cout).  For pooled column wp it
    applies the kh-th row-tap of the 3x3 conv at output column w = 2*wp +
    w_parity, writing to lanes (wp + out_block_offset)*Cout + co."""
    cout, cin, _, kw_sz = w_oihw.shape
    k = in_wblocks * cin
    n = out_wblocks * cout
    wp = np.arange(n_wp)
    kw = np.arange(kw_sz)
    ci = np.arange(cin)
    co = np.arange(cout)
    rows = ((2 * wp[:, None, None] + w_parity + kw[None, :, None]) * cin
            + ci[None, None, :])                                   # (n_wp,3,cin)
    cols = (wp[:, None] + out_block_offset) * cout + co[None, :]   # (n_wp,cout)
    vals = jnp.broadcast_to(
        jnp.transpose(w_oihw[:, :, kh, :], (2, 1, 0))[None],       # (1,3,cin,cout)
        (n_wp, kw_sz, cin, cout))
    mat = jnp.zeros((k, n), jnp.float32)
    return mat.at[rows[:, :, :, None], cols[:, None, None, :]].add(vals)


# ------------------------------ model ----------------------------------------

def init_params(key, num_classes=10):
    ks = jax.random.split(key, 6)
    return {
        "conv1_w": 0.1 * jax.random.normal(ks[0], (16, 1, 3, 3), jnp.float32),
        "conv1_b": 0.1 * jax.random.normal(ks[1], (16,), jnp.float32),
        "conv2_w": 0.1 * jax.random.normal(ks[2], (32, 16, 3, 3), jnp.float32),
        "conv2_b": 0.1 * jax.random.normal(ks[3], (32,), jnp.float32),
        "fc_w": 0.05 * jax.random.normal(ks[4], (num_classes, 32 * 7 * 7), jnp.float32),
        "fc_b": 0.05 * jax.random.normal(ks[5], (num_classes,), jnp.float32),
    }


@jax.jit
def simple_cnn_forward(x_nchw, params):
    f32, bf16 = jnp.float32, jnp.bfloat16
    b = x_nchw.shape[0]
    assert x_nchw.shape[1:] == (1, 28, 28), "SimpleCNN expects (B, 1, 28, 28)"
    fw, fb = params["fc_w"], params["fc_b"]
    nclass = fw.shape[0]
    npad = 128 * ((nclass + 127) // 128)
    bp, tb = _batch_tiling(b)
    grid = (bp // tb,)

    w1, b1 = params["conv1_w"], params["conv1_b"]
    w2, b2 = params["conv2_w"], params["conv2_b"]

    # ---- conv1 LHS operands (tiny; assembled in XLA in bf16) ----------------
    # TODO(synk): assemble these taps in-kernel from the padded image to drop
    # the remaining ~4x prologue replication (only ~6 KB/image, so kept in XLA).
    x0 = x_nchw[:, 0].astype(bf16)
    if bp != b:
        x0 = jnp.pad(x0, ((0, bp - b), (0, 0), (0, 0)))
    p = jnp.pad(x0, ((0, 0), (1, 3), (1, 3)))                      # (bp, 32, 32)
    xe, xo = p[:, 0::2, :], p[:, 1::2, :]                          # rows 2j / 2j+1
    xem1, xom1 = jnp.roll(xe, 1, axis=1), jnp.roll(xo, 1, axis=1)  # rows 2j-2 / 2j-1
    l1e = jnp.concatenate([xem1, xom1, xe], -1)  # row m: padded rows 2m-2,2m-1,2m
    l1o = jnp.concatenate([xom1, xe, xo], -1)    # row m: padded rows 2m-1,2m,2m+1
    # split by padded-output-row parity and go h-major: (8, bp, 96)
    l1e0 = jnp.transpose(l1e[:, 0::2], (1, 0, 2))
    l1o0 = jnp.transpose(l1o[:, 0::2], (1, 0, 2))
    l1e1 = jnp.transpose(l1e[:, 1::2], (1, 0, 2))
    l1o1 = jnp.transpose(l1o[:, 1::2], (1, 0, 2))

    # ---- banded weights (built once at trace-time shapes, VMEM-resident) ----
    r1e = jnp.concatenate(
        [_conv_band_rhs(w1, kh, 0, 14, 32, 16, 1) for kh in range(3)], 0).astype(bf16)
    r1o = jnp.concatenate(
        [_conv_band_rhs(w1, kh, 1, 14, 32, 16, 1) for kh in range(3)], 0).astype(bf16)
    b1v = jnp.concatenate([jnp.zeros(16, f32), jnp.tile(b1.astype(f32), 14),
                           jnp.zeros(16, f32)]).reshape(1, 256)

    w2b = jnp.stack([_conv_band_rhs(w2, kh, par, 7, 16, 8, 0)
                     for par in range(2) for kh in range(3)], 0).astype(bf16)  # (6,256,256)
    b2v = jnp.concatenate([jnp.tile(b2.astype(f32), 7),
                           jnp.zeros(32, f32)]).reshape(1, 256)

    # fc weight permuted to y2's (row-slot h, lane = w*32 + c) layout
    wfr = fw.astype(f32).reshape(nclass, 32, 7, 7).transpose(2, 3, 1, 0)  # (h,w,c,o)
    wfr = wfr.reshape(7, 224, nclass)
    wfp = jnp.zeros((7, 256, npad), f32).at[:, :224, :nclass].set(wfr).astype(bf16)
    fbv = jnp.zeros((1, npad), f32).at[0, :nclass].set(fb.astype(f32))

    m_total = 8 * bp
    cost = pl.CostEstimate(
        flops=(8 * 2 * m_total * 96 * 256 + 12 * 2 * m_total * 256 * 256
               + 7 * 2 * bp * 256 * npad),
        transcendentals=0,
        bytes_accessed=(4 * m_total * 96 * 2
                        + (2 * 96 * 256 + 6 * 256 * 256 + 7 * 256 * npad) * 2
                        + (2 * 256 + npad) * 4 + bp * npad * 4))

    kernel = functools.partial(_simple_cnn_kernel, tb=tb, npad=npad)
    logits = pl.pallas_call(
        kernel,
        out_shape=jax.ShapeDtypeStruct((bp, npad), f32),
        grid=grid,
        in_specs=[
            pl.BlockSpec((8, tb, 96), lambda i: (0, i, 0)),
            pl.BlockSpec((8, tb, 96), lambda i: (0, i, 0)),
            pl.BlockSpec((8, tb, 96), lambda i: (0, i, 0)),
            pl.BlockSpec((8, tb, 96), lambda i: (0, i, 0)),
            pl.BlockSpec((96, 256), lambda i: (0, 0)),
            pl.BlockSpec((96, 256), lambda i: (0, 0)),
            pl.BlockSpec((1, 256), lambda i: (0, 0)),
            pl.BlockSpec((6, 256, 256), lambda i: (0, 0, 0)),
            pl.BlockSpec((1, 256), lambda i: (0, 0)),
            pl.BlockSpec((7, 256, npad), lambda i: (0, 0, 0)),
            pl.BlockSpec((1, npad), lambda i: (0, 0)),
        ],
        out_specs=pl.BlockSpec((tb, npad), lambda i: (i, 0)),
        scratch_shapes=[
            pltpu.VMEM((9 * tb, 256), bf16),
            pltpu.VMEM((9 * tb, 256), bf16),
        ],
        compiler_params=pltpu.CompilerParams(
            dimension_semantics=("parallel",),
            vmem_limit_bytes=32 * 1024 * 1024),
        cost_estimate=cost,
    )(l1e0, l1o0, l1e1, l1o1, r1e, r1o, b1v, w2b, b2v, wfp, fbv)
    return logits[:b, :nclass]


# --------------------------- pure-JAX reference ------------------------------

def _reference_forward(x_nchw, params):
    x = jnp.transpose(x_nchw, (0, 2, 3, 1)).astype(jnp.float32)  # NHWC
    bsz = x.shape[0]

    def im2col(z):
        bz, hz, wz, cz = z.shape
        zp = jnp.pad(z, ((0, 0), (1, 1), (1, 1), (0, 0)))
        taps = [zp[:, kh:kh + hz, kw:kw + wz, :]
                for kh in range(3) for kw in range(3)]
        return jnp.stack(taps, axis=-1).reshape(bz * hz * wz, cz * 9)

    def pool2(z):
        bz, hz, wz, cz = z.shape
        return z.reshape(bz, hz // 2, 2, wz // 2, 2, cz).max(axis=(2, 4))

    y = im2col(x) @ params["conv1_w"].reshape(16, -1).T + params["conv1_b"]
    y = pool2(jnp.maximum(y, 0.0).reshape(bsz, 28, 28, 16))
    y = im2col(y) @ params["conv2_w"].reshape(32, -1).T + params["conv2_b"]
    y = pool2(jnp.maximum(y, 0.0).reshape(bsz, 14, 14, 32))
    feat = jnp.transpose(y, (0, 3, 1, 2)).reshape(bsz, -1)
    return feat @ params["fc_w"].T + params["fc_b"]


if __name__ == "__main__":
    key = jax.random.PRNGKey(0)
    k_x, k_p = jax.random.split(key)
    # fc expects 32*7*7 features => 28x28 spatial input (MNIST-like), 1 channel.
    x = jax.random.normal(k_x, (2, 1, 28, 28), jnp.float32)
    params = init_params(k_p, num_classes=10)

    out = simple_cnn_forward(x, params)
    jax.block_until_ready(out)
    assert out.shape == (2, 10) and out.dtype == jnp.float32

    # Numerical sanity check against a pure-JAX/f32 reference (bf16 MXU
    # operands in the Pallas path => loose tolerance).
    ref = _reference_forward(x, params)
    np.testing.assert_allclose(np.asarray(out, np.float32),
                               np.asarray(ref, np.float32),
                               rtol=0.1, atol=0.2)
    print("KERNEL_OK")
</pallas_src>

<mosaic_0001>
module attributes {stable_mosaic.version = 11 : i64} {
  func.func private @main(%arg0: i32) attributes {dimension_semantics = [#tpu.dimension_semantics<core_parallel>], iteration_bounds = array<i64: 2>, tpu.core_type = #tpu.core_type<sc_scalar_subcore>, window_params = []} {
    return
  }
}

module attributes {stable_mosaic.version = 11 : i64} {
  func.func private @main(%arg0: i32) attributes {dimension_semantics = [#tpu.dimension_semantics<core_parallel>], iteration_bounds = array<i64: 2>, tpu.core_type = #tpu.core_type<sc_scalar_subcore>, window_params = []} {
    return
  }
}

module attributes {stable_mosaic.version = 11 : i64} {
  func.func @_simple_cnn_kernel(%arg0: i32, %arg1: memref<8x16x96xbf16, #tpu.memory_space<vmem>>, %arg2: memref<8x16x96xbf16, #tpu.memory_space<vmem>>, %arg3: memref<8x16x96xbf16, #tpu.memory_space<vmem>>, %arg4: memref<8x16x96xbf16, #tpu.memory_space<vmem>>, %arg5: memref<96x256xbf16, #tpu.memory_space<vmem>>, %arg6: memref<96x256xbf16, #tpu.memory_space<vmem>>, %arg7: memref<1x256xf32, #tpu.memory_space<vmem>>, %arg8: memref<6x256x256xbf16, #tpu.memory_space<vmem>>, %arg9: memref<1x256xf32, #tpu.memory_space<vmem>>, %arg10: memref<7x256x128xbf16, #tpu.memory_space<vmem>>, %arg11: memref<1x128xf32, #tpu.memory_space<vmem>>, %arg12: memref<16x128xf32, #tpu.memory_space<vmem>>, %arg13: memref<144x256xbf16, #tpu.memory_space<vmem>>, %arg14: memref<144x256xbf16, #tpu.memory_space<vmem>>) attributes {dimension_semantics = [#tpu.dimension_semantics<parallel>], iteration_bounds = array<i64: 1>, scalar_prefetch = 0 : i64, scratch_operands = 2 : i64, tpu.core_type = #tpu.core_type<tc>, window_params = [{transform_indices = @transform_0, window_bounds = array<i64: 8, 16, 96>}, {transform_indices = @transform_1, window_bounds = array<i64: 8, 16, 96>}, {transform_indices = @transform_2, window_bounds = array<i64: 8, 16, 96>}, {transform_indices = @transform_3, window_bounds = array<i64: 8, 16, 96>}, {pipeline_mode = #tpu.pipeline_mode<synchronous>, transform_indices = @transform_4, window_bounds = array<i64: 96, 256>}, {pipeline_mode = #tpu.pipeline_mode<synchronous>, transform_indices = @transform_5, window_bounds = array<i64: 96, 256>}, {pipeline_mode = #tpu.pipeline_mode<synchronous>, transform_indices = @transform_6, window_bounds = array<i64: 1, 256>}, {pipeline_mode = #tpu.pipeline_mode<synchronous>, transform_indices = @transform_7, window_bounds = array<i64: 6, 256, 256>}, {pipeline_mode = #tpu.pipeline_mode<synchronous>, transform_indices = @transform_8, window_bounds = array<i64: 1, 256>}, {pipeline_mode = #tpu.pipeline_mode<synchronous>, transform_indices = @transform_9, window_bounds = array<i64: 7, 256, 128>}, {pipeline_mode = #tpu.pipeline_mode<synchronous>, transform_indices = @transform_10, window_bounds = array<i64: 1, 128>}, {transform_indices = @transform_11, window_bounds = array<i64: 16, 128>}]} {
    %c0 = arith.constant 0 : index
    %c0_0 = arith.constant 0 : index
    %0 = vector.load %arg5[%c0, %c0_0] : memref<96x256xbf16, #tpu.memory_space<vmem>>, vector<96x256xbf16>
    %c0_1 = arith.constant 0 : index
    %c0_2 = arith.constant 0 : index
    %1 = vector.load %arg6[%c0_1, %c0_2] : memref<96x256xbf16, #tpu.memory_space<vmem>>, vector<96x256xbf16>
    %c0_3 = arith.constant 0 : index
    %c0_4 = arith.constant 0 : index
    %2 = vector.load %arg7[%c0_3, %c0_4] : memref<1x256xf32, #tpu.memory_space<vmem>>, vector<1x256xf32>
    %cst = arith.constant 0.000000e+00 : bf16
    %3 = vector.broadcast %cst : bf16 to vector<16x256xbf16>
    %c0_5 = arith.constant 0 : index
    %c0_6 = arith.constant 0 : index
    %c0_7 = arith.constant 0 : index
    %4 = vector.load %arg1[%c0_5, %c0_6, %c0_7] : memref<8x16x96xbf16, #tpu.memory_space<vmem>>, vector<8x16x96xbf16>
    %5 = vector.shape_cast %4 : vector<8x16x96xbf16> to vector<128x96xbf16>
    %c0_8 = arith.constant 0 : index
    %c0_9 = arith.constant 0 : index
    %c0_10 = arith.constant 0 : index
    %6 = vector.load %arg2[%c0_8, %c0_9, %c0_10] : memref<8x16x96xbf16, #tpu.memory_space<vmem>>, vector<8x16x96xbf16>
    %7 = vector.shape_cast %6 : vector<8x16x96xbf16> to vector<128x96xbf16>
    %cst_11 = arith.constant dense<0.000000e+00> : vector<128x256xf32>
    %8 = tpu.matmul %5, %0, %cst_11 {dimension_numbers = #tpu.dot_dimension_numbers<[1], [0], [0], [1], [0, 0, 1, 1], [], []>} : vector<128x96xbf16>, vector<96x256xbf16>, vector<128x256xf32> -> vector<128x256xf32>
    %cst_12 = arith.constant dense<0.000000e+00> : vector<128x256xf32>
    %9 = tpu.matmul %5, %1, %cst_12 {dimension_numbers = #tpu.dot_dimension_numbers<[1], [0], [0], [1], [0, 0, 1, 1], [], []>} : vector<128x96xbf16>, vector<96x256xbf16>, vector<128x256xf32> -> vector<128x256xf32>
    %10 = arith.maximumf %8, %9 : vector<128x256xf32>
    %cst_13 = arith.constant dense<0.000000e+00> : vector<128x256xf32>
    %11 = tpu.matmul %7, %0, %cst_13 {dimension_numbers = #tpu.dot_dimension_numbers<[1], [0], [0], [1], [0, 0, 1, 1], [], []>} : vector<128x96xbf16>, vector<96x256xbf16>, vector<128x256xf32> -> vector<128x256xf32>
    %12 = arith.maximumf %10, %11 : vector<128x256xf32>
    %cst_14 = arith.constant dense<0.000000e+00> : vector<128x256xf32>
    %13 = tpu.matmul %7, %1, %cst_14 {dimension_numbers = #tpu.dot_dimension_numbers<[1], [0], [0], [1], [0, 0, 1, 1], [], []>} : vector<128x96xbf16>, vector<96x256xbf16>, vector<128x256xf32> -> vector<128x256xf32>
    %14 = arith.maximumf %12, %13 : vector<128x256xf32>
    %15 = vector.broadcast %2 : vector<1x256xf32> to vector<128x256xf32>
    %16 = arith.addf %14, %15 : vector<128x256xf32>
    %cst_15 = arith.constant 0.000000e+00 : f32
    %17 = vector.broadcast %cst_15 : f32 to vector<128x256xf32>
    %18 = arith.maximumf %16, %17 : vector<128x256xf32>
    %19 = arith.truncf %18 : vector<128x256xf32> to vector<128x256xbf16>
    %c0_16 = arith.constant 0 : index
    %c0_17 = arith.constant 0 : index
    %20 = vector.load %arg13[%c0_16, %c0_17] : memref<144x256xbf16, #tpu.memory_space<vmem>>, vector<128x256xbf16>
    tpu.vector_store %arg13[%c0_16, %c0_17], %19 {strides = array<i32>} : memref<144x256xbf16, #tpu.memory_space<vmem>>, vector<128x256xbf16>,
    %c0_18 = arith.constant 0 : index
    %c0_19 = arith.constant 0 : index
    %21 = vector.load %arg13[%c0_18, %c0_19] : memref<144x256xbf16, #tpu.memory_space<vmem>>, vector<16x256xbf16>
    tpu.vector_store %arg13[%c0_18, %c0_19], %3 {strides = array<i32>} : memref<144x256xbf16, #tpu.memory_space<vmem>>, vector<16x256xbf16>,
    %c128 = arith.constant 128 : index
    %c0_20 = arith.constant 0 : index
    %22 = vector.load %arg13[%c128, %c0_20] : memref<144x256xbf16, #tpu.memory_space<vmem>>, vector<16x256xbf16>
    tpu.vector_store %arg13[%c128, %c0_20], %3 {strides = array<i32>} : memref<144x256xbf16, #tpu.memory_space<vmem>>, vector<16x256xbf16>,
    %c0_21 = arith.constant 0 : index
    %c0_22 = arith.constant 0 : index
    %c0_23 = arith.constant 0 : index
    %23 = vector.load %arg3[%c0_21, %c0_22, %c0_23] : memref<8x16x96xbf16, #tpu.memory_space<vmem>>, vector<8x16x96xbf16>
    %24 = vector.shape_cast %23 : vector<8x16x96xbf16> to vector<128x96xbf16>
    %c0_24 = arith.constant 0 : index
    %c0_25 = arith.constant 0 : index
    %c0_26 = arith.constant 0 : index
    %25 = vector.load %arg4[%c0_24, %c0_25, %c0_26] : memref<8x16x96xbf16, #tpu.memory_space<vmem>>, vector<8x16x96xbf16>
    %26 = vector.shape_cast %25 : vector<8x16x96xbf16> to vector<128x96xbf16>
    %cst_27 = arith.constant dense<0.000000e+00> : vector<128x256xf32>
    %27 = tpu.matmul %24, %0, %cst_27 {dimension_numbers = #tpu.dot_dimension_numbers<[1], [0], [0], [1], [0, 0, 1, 1], [], []>} : vector<128x96xbf16>, vector<96x256xbf16>, vector<128x256xf32> -> vector<128x256xf32>
    %cst_28 = arith.constant dense<0.000000e+00> : vector<128x256xf32>
    %28 = tpu.matmul %24, %1, %cst_28 {dimension_numbers = #tpu.dot_dimension_numbers<[1], [0], [0], [1], [0, 0, 1, 1], [], []>} : vector<128x96xbf16>, vector<96x256xbf16>, vector<128x256xf32> -> vector<128x256xf32>
    %29 = arith.maximumf %27, %28 : vector<128x256xf32>
    %cst_29 = arith.constant dense<0.000000e+00> : vector<128x256xf32>
    %30 = tpu.matmul %26, %0, %cst_29 {dimension_numbers = #tpu.dot_dimension_numbers<[1], [0], [0], [1], [0, 0, 1, 1], [], []>} : vector<128x96xbf16>, vector<96x256xbf16>, vector<128x256xf32> -> vector<128x256xf32>
    %31 = arith.maximumf %29, %30 : vector<128x256xf32>
    %cst_30 = arith.constant dense<0.000000e+00> : vector<128x256xf32>
    %32 = tpu.matmul %26, %1, %cst_30 {dimension_numbers = #tpu.dot_dimension_numbers<[1], [0], [0], [1], [0, 0, 1, 1], [], []>} : vector<128x96xbf16>, vector<96x256xbf16>, vector<128x256xf32> -> vector<128x256xf32>
    %33 = arith.maximumf %31, %32 : vector<128x256xf32>
    %34 = vector.broadcast %2 : vector<1x256xf32> to vector<128x256xf32>
    %35 = arith.addf %33, %34 : vector<128x256xf32>
    %cst_31 = arith.constant 0.000000e+00 : f32
    %36 = vector.broadcast %cst_31 : f32 to vector<128x256xf32>
    %37 = arith.maximumf %35, %36 : vector<128x256xf32>
    %38 = arith.truncf %37 : vector<128x256xf32> to vector<128x256xbf16>
    %c0_32 = arith.constant 0 : index
    %c0_33 = arith.constant 0 : index
    %39 = vector.load %arg14[%c0_32, %c0_33] : memref<144x256xbf16, #tpu.memory_space<vmem>>, vector<128x256xbf16>
    tpu.vector_store %arg14[%c0_32, %c0_33], %38 {strides = array<i32>} : memref<144x256xbf16, #tpu.memory_space<vmem>>, vector<128x256xbf16>,
    %c112 = arith.constant 112 : index
    %c0_34 = arith.constant 0 : index
    %40 = vector.load %arg14[%c112, %c0_34] : memref<144x256xbf16, #tpu.memory_space<vmem>>, vector<16x256xbf16>
    tpu.vector_store %arg14[%c112, %c0_34], %3 {strides = array<i32>} : memref<144x256xbf16, #tpu.memory_space<vmem>>, vector<16x256xbf16>,
    %c128_35 = arith.constant 128 : index
    %c0_36 = arith.constant 0 : index
    %41 = vector.load %arg14[%c128_35, %c0_36] : memref<144x256xbf16, #tpu.memory_space<vmem>>, vector<16x256xbf16>
    tpu.vector_store %arg14[%c128_35, %c0_36], %3 {strides = array<i32>} : memref<144x256xbf16, #tpu.memory_space<vmem>>, vector<16x256xbf16>,
    %c0_37 = arith.constant 0 : index
    %c0_38 = arith.constant 0 : index
    %42 = vector.load %arg13[%c0_37, %c0_38] : memref<144x256xbf16, #tpu.memory_space<vmem>>, vector<128x256xbf16>
    %c0_39 = arith.constant 0 : index
    %c0_40 = arith.constant 0 : index
    %43 = vector.load %arg14[%c0_39, %c0_40] : memref<144x256xbf16, #tpu.memory_space<vmem>>, vector<128x256xbf16>
    %c16 = arith.constant 16 : index
    %c0_41 = arith.constant 0 : index
    %44 = vector.load %arg13[%c16, %c0_41] : memref<144x256xbf16, #tpu.memory_space<vmem>>, vector<128x256xbf16>
    %c16_42 = arith.constant 16 : index
    %c0_43 = arith.constant 0 : index
    %45 = vector.load %arg14[%c16_42, %c0_43] : memref<144x256xbf16, #tpu.memory_space<vmem>>, vector<128x256xbf16>
    %c0_44 = arith.constant 0 : index
    %c0_45 = arith.constant 0 : index
    %c0_46 = arith.constant 0 : index
    %46 = vector.load %arg8[%c0_44, %c0_45, %c0_46] : memref<6x256x256xbf16, #tpu.memory_space<vmem>>, vector<1x256x256xbf16>
    %47 = vector.shape_cast %46 : vector<1x256x256xbf16> to vector<256x256xbf16>
    %cst_47 = arith.constant dense<0.000000e+00> : vector<128x256xf32>
    %48 = tpu.matmul %42, %47, %cst_47 {dimension_numbers = #tpu.dot_dimension_numbers<[1], [0], [0], [1], [0, 0, 1, 1], [], []>} : vector<128x256xbf16>, vector<256x256xbf16>, vector<128x256xf32> -> vector<128x256xf32>
    %c1 = arith.constant 1 : index
    %c0_48 = arith.constant 0 : index
    %c0_49 = arith.constant 0 : index
    %49 = vector.load %arg8[%c1, %c0_48, %c0_49] : memref<6x256x256xbf16, #tpu.memory_space<vmem>>, vector<1x256x256xbf16>
    %50 = vector.shape_cast %49 : vector<1x256x256xbf16> to vector<256x256xbf16>
    %cst_50 = arith.constant dense<0.000000e+00> : vector<128x256xf32>
    %51 = tpu.matmul %43, %50, %cst_50 {dimension_numbers = #tpu.dot_dimension_numbers<[1], [0], [0], [1], [0, 0, 1, 1], [], []>} : vector<128x256xbf16>, vector<256x256xbf16>, vector<128x256xf32> -> vector<128x256xf32>
    %52 = arith.addf %48, %51 : vector<128x256xf32>
    %c2 = arith.constant 2 : index
    %c0_51 = arith.constant 0 : index
    %c0_52 = arith.constant 0 : index
    %53 = vector.load %arg8[%c2, %c0_51, %c0_52] : memref<6x256x256xbf16, #tpu.memory_space<vmem>>, vector<1x256x256xbf16>
    %54 = vector.shape_cast %53 : vector<1x256x256xbf16> to vector<256x256xbf16>
    %cst_53 = arith.constant dense<0.000000e+00> : vector<128x256xf32>
    %55 = tpu.matmul %44, %54, %cst_53 {dimension_numbers = #tpu.dot_dimension_numbers<[1], [0], [0], [1], [0, 0, 1, 1], [], []>} : vector<128x256xbf16>, vector<256x256xbf16>, vector<128x256xf32> -> vector<128x256xf32>
    %56 = arith.addf %52, %55 : vector<128x256xf32>
    %c3 = arith.constant 3 : index
    %c0_54 = arith.constant 0 : index
    %c0_55 = arith.constant 0 : index
    %57 = vector.load %arg8[%c3, %c0_54, %c0_55] : memref<6x256x256xbf16, #tpu.memory_space<vmem>>, vector<1x256x256xbf16>
    %58 = vector.shape_cast %57 : vector<1x256x256xbf16> to vector<256x256xbf16>
    %cst_56 = arith.constant dense<0.000000e+00> : vector<128x256xf32>
    %59 = tpu.matmul %42, %58, %cst_56 {dimension_numbers = #tpu.dot_dimension_numbers<[1], [0], [0], [1], [0, 0, 1, 1], [], []>} : vector<128x256xbf16>, vector<256x256xbf16>, vector<128x256xf32> -> vector<128x256xf32>
    %c4 = arith.constant 4 : index
    %c0_57 = arith.constant 0 : index
    %c0_58 = arith.constant 0 : index
    %60 = vector.load %arg8[%c4, %c0_57, %c0_58] : memref<6x256x256xbf16, #tpu.memory_space<vmem>>, vector<1x256x256xbf16>
    %61 = vector.shape_cast %60 : vector<1x256x256xbf16> to vector<256x256xbf16>
    %cst_59 = arith.constant dense<0.000000e+00> : vector<128x256xf32>
    %62 = tpu.matmul %43, %61, %cst_59 {dimension_numbers = #tpu.dot_dimension_numbers<[1], [0], [0], [1], [0, 0, 1, 1], [], []>} : vector<128x256xbf16>, vector<256x256xbf16>, vector<128x256xf32> -> vector<128x256xf32>
    %63 = arith.addf %59, %62 : vector<128x256xf32>
    %c5 = arith.constant 5 : index
    %c0_60 = arith.constant 0 : index
    %c0_61 = arith.constant 0 : index
    %64 = vector.load %arg8[%c5, %c0_60, %c0_61] : memref<6x256x256xbf16, #tpu.memory_space<vmem>>, vector<1x256x256xbf16>
    %65 = vector.shape_cast %64 : vector<1x256x256xbf16> to vector<256x256xbf16>
    %cst_62 = arith.constant dense<0.000000e+00> : vector<128x256xf32>
    %66 = tpu.matmul %44, %65, %cst_62 {dimension_numbers = #tpu.dot_dimension_numbers<[1], [0], [0], [1], [0, 0, 1, 1], [], []>} : vector<128x256xbf16>, vector<256x256xbf16>, vector<128x256xf32> -> vector<128x256xf32>
    %67 = arith.addf %63, %66 : vector<128x256xf32>
    %68 = arith.maximumf %56, %67 : vector<128x256xf32>
    %c0_63 = arith.constant 0 : index
    %c0_64 = arith.constant 0 : index
    %c0_65 = arith.constant 0 : index
    %69 = vector.load %arg8[%c0_63, %c0_64, %c0_65] : memref<6x256x256xbf16, #tpu.memory_space<vmem>>, vector<1x256x256xbf16>
    %70 = vector.shape_cast %69 : vector<1x256x256xbf16> to vector<256x256xbf16>
    %cst_66 = arith.constant dense<0.000000e+00> : vector<128x256xf32>
    %71 = tpu.matmul %43, %70, %cst_66 {dimension_numbers = #tpu.dot_dimension_numbers<[1], [0], [0], [1], [0, 0, 1, 1], [], []>} : vector<128x256xbf16>, vector<256x256xbf16>, vector<128x256xf32> -> vector<128x256xf32>
    %c1_67 = arith.constant 1 : index
    %c0_68 = arith.constant 0 : index
    %c0_69 = arith.constant 0 : index
    %72 = vector.load %arg8[%c1_67, %c0_68, %c0_69] : memref<6x256x256xbf16, #tpu.memory_space<vmem>>, vector<1x256x256xbf16>
    %73 = vector.shape_cast %72 : vector<1x256x256xbf16> to vector<256x256xbf16>
    %cst_70 = arith.constant dense<0.000000e+00> : vector<128x256xf32>
    %74 = tpu.matmul %44, %73, %cst_70 {dimension_numbers = #tpu.dot_dimension_numbers<[1], [0], [0], [1], [0, 0, 1, 1], [], []>} : vector<128x256xbf16>, vector<256x256xbf16>, vector<128x256xf32> -> vector<128x256xf32>
    %75 = arith.addf %71, %74 : vector<128x256xf32>
    %c2_71 = arith.constant 2 : index
    %c0_72 = arith.constant 0 : index
    %c0_73 = arith.constant 0 : index
    %76 = vector.load %arg8[%c2_71, %c0_72, %c0_73] : memref<6x256x256xbf16, #tpu.memory_space<vmem>>, vector<1x256x256xbf16>
    %77 = vector.shape_cast %76 : vector<1x256x256xbf16> to vector<256x256xbf16>
    %cst_74 = arith.constant dense<0.000000e+00> : vector<128x256xf32>
    %78 = tpu.matmul %45, %77, %cst_74 {dimension_numbers = #tpu.dot_dimension_numbers<[1], [0], [0], [1], [0, 0, 1, 1], [], []>} : vector<128x256xbf16>, vector<256x256xbf16>, vector<128x256xf32> -> vector<128x256xf32>
    %79 = arith.addf %75, %78 : vector<128x256xf32>
    %80 = arith.maximumf %68, %79 : vector<128x256xf32>
    %c3_75 = arith.constant 3 : index
    %c0_76 = arith.constant 0 : index
    %c0_77 = arith.constant 0 : index
    %81 = vector.load %arg8[%c3_75, %c0_76, %c0_77] : memref<6x256x256xbf16, #tpu.memory_space<vmem>>, vector<1x256x256xbf16>
    %82 = vector.shape_cast %81 : vector<1x256x256xbf16> to vector<256x256xbf16>
    %cst_78 = arith.constant dense<0.000000e+00> : vector<128x256xf32>
    %83 = tpu.matmul %43, %82, %cst_78 {dimension_numbers = #tpu.dot_dimension_numbers<[1], [0], [0], [1], [0, 0, 1, 1], [], []>} : vector<128x256xbf16>, vector<256x256xbf16>, vector<128x256xf32> -> vector<128x256xf32>
    %c4_79 = arith.constant 4 : index
    %c0_80 = arith.constant 0 : index
    %c0_81 = arith.constant 0 : index
    %84 = vector.load %arg8[%c4_79, %c0_80, %c0_81] : memref<6x256x256xbf16, #tpu.memory_space<vmem>>, vector<1x256x256xbf16>
    %85 = vector.shape_cast %84 : vector<1x256x256xbf16> to vector<256x256xbf16>
    %cst_82 = arith.constant dense<0.000000e+00> : vector<128x256xf32>
    %86 = tpu.matmul %44, %85, %cst_82 {dimension_numbers = #tpu.dot_dimension_numbers<[1], [0], [0], [1], [0, 0, 1, 1], [], []>} : vector<128x256xbf16>, vector<256x256xbf16>, vector<128x256xf32> -> vector<128x256xf32>
    %87 = arith.addf %83, %86 : vector<128x256xf32>
    %c5_83 = arith.constant 5 : index
    %c0_84 = arith.constant 0 : index
    %c0_85 = arith.constant 0 : index
    %88 = vector.load %arg8[%c5_83, %c0_84, %c0_85] : memref<6x256x256xbf16, #tpu.memory_space<vmem>>, vector<1x256x256xbf16>
    %89 = vector.shape_cast %88 : vector<1x256x256xbf16> to vector<256x256xbf16>
    %cst_86 = arith.constant dense<0.000000e+00> : vector<128x256xf32>
    %90 = tpu.matmul %45, %89, %cst_86 {dimension_numbers = #tpu.dot_dimension_numbers<[1], [0], [0], [1], [0, 0, 1, 1], [], []>} : vector<128x256xbf16>, vector<256x256xbf16>, vector<128x256xf32> -> vector<128x256xf32>
    %91 = arith.addf %87, %90 : vector<128x256xf32>
    %92 = arith.maximumf %80, %91 : vector<128x256xf32>
    %c0_87 = arith.constant 0 : index
    %c0_88 = arith.constant 0 : index
    %93 = vector.load %arg9[%c0_87, %c0_88] : memref<1x256xf32, #tpu.memory_space<vmem>>, vector<1x256xf32>
    %94 = vector.broadcast %93 : vector<1x256xf32> to vector<128x256xf32>
    %95 = arith.addf %92, %94 : vector<128x256xf32>
    %cst_89 = arith.constant 0.000000e+00 : f32
    %96 = vector.broadcast %cst_89 : f32 to vector<128x256xf32>
    %97 = arith.maximumf %95, %96 : vector<128x256xf32>
    %98 = arith.truncf %97 : vector<128x256xf32> to vector<128x256xbf16>
    %cst_90 = arith.constant 0.000000e+00 : f32
    %99 = vector.broadcast %cst_90 : f32 to vector<16x128xf32>
    %100 = vector.extract_strided_slice %98 {offsets = [0, 0], sizes = [16, 256], strides = [1, 1]} : vector<128x256xbf16> to vector<16x256xbf16>
    %c0_91 = arith.constant 0 : index
    %c0_92 = arith.constant 0 : index
    %c0_93 = arith.constant 0 : index
    %101 = vector.load %arg10[%c0_91, %c0_92, %c0_93] : memref<7x256x128xbf16, #tpu.memory_space<vmem>>, vector<1x256x128xbf16>
    %102 = vector.shape_cast %101 : vector<1x256x128xbf16> to vector<256x128xbf16>
    %cst_94 = arith.constant dense<0.000000e+00> : vector<16x128xf32>
    %103 = tpu.matmul %100, %102, %cst_94 {dimension_numbers = #tpu.dot_dimension_numbers<[1], [0], [0], [1], [0, 0, 1, 1], [], []>} : vector<16x256xbf16>, vector<256x128xbf16>, vector<16x128xf32> -> vector<16x128xf32>
    %104 = arith.addf %99, %103 : vector<16x128xf32>
    %105 = vector.extract_strided_slice %98 {offsets = [16, 0], sizes = [16, 256], strides = [1, 1]} : vector<128x256xbf16> to vector<16x256xbf16>
    %c1_95 = arith.constant 1 : index
    %c0_96 = arith.constant 0 : index
    %c0_97 = arith.constant 0 : index
    %106 = vector.load %arg10[%c1_95, %c0_96, %c0_97] : memref<7x256x128xbf16, #tpu.memory_space<vmem>>, vector<1x256x128xbf16>
    %107 = vector.shape_cast %106 : vector<1x256x128xbf16> to vector<256x128xbf16>
    %cst_98 = arith.constant dense<0.000000e+00> : vector<16x128xf32>
    %108 = tpu.matmul %105, %107, %cst_98 {dimension_numbers = #tpu.dot_dimension_numbers<[1], [0], [0], [1], [0, 0, 1, 1], [], []>} : vector<16x256xbf16>, vector<256x128xbf16>, vector<16x128xf32> -> vector<16x128xf32>
    %109 = arith.addf %104, %108 : vector<16x128xf32>
    %110 = vector.extract_strided_slice %98 {offsets = [32, 0], sizes = [16, 256], strides = [1, 1]} : vector<128x256xbf16> to vector<16x256xbf16>
    %c2_99 = arith.constant 2 : index
    %c0_100 = arith.constant 0 : index
    %c0_101 = arith.constant 0 : index
    %111 = vector.load %arg10[%c2_99, %c0_100, %c0_101] : memref<7x256x128xbf16, #tpu.memory_space<vmem>>, vector<1x256x128xbf16>
    %112 = vector.shape_cast %111 : vector<1x256x128xbf16> to vector<256x128xbf16>
    %cst_102 = arith.constant dense<0.000000e+00> : vector<16x128xf32>
    %113 = tpu.matmul %110, %112, %cst_102 {dimension_numbers = #tpu.dot_dimension_numbers<[1], [0], [0], [1], [0, 0, 1, 1], [], []>} : vector<16x256xbf16>, vector<256x128xbf16>, vector<16x128xf32> -> vector<16x128xf32>
    %114 = arith.addf %109, %113 : vector<16x128xf32>
    %115 = vector.extract_strided_slice %98 {offsets = [48, 0], sizes = [16, 256], strides = [1, 1]} : vector<128x256xbf16> to vector<16x256xbf16>
    %c3_103 = arith.constant 3 : index
    %c0_104 = arith.constant 0 : index
    %c0_105 = arith.constant 0 : index
    %116 = vector.load %arg10[%c3_103, %c0_104, %c0_105] : memref<7x256x128xbf16, #tpu.memory_space<vmem>>, vector<1x256x128xbf16>
    %117 = vector.shape_cast %116 : vector<1x256x128xbf16> to vector<256x128xbf16>
    %cst_106 = arith.constant dense<0.000000e+00> : vector<16x128xf32>
    %118 = tpu.matmul %115, %117, %cst_106 {dimension_numbers = #tpu.dot_dimension_numbers<[1], [0], [0], [1], [0, 0, 1, 1], [], []>} : vector<16x256xbf16>, vector<256x128xbf16>, vector<16x128xf32> -> vector<16x128xf32>
    %119 = arith.addf %114, %118 : vector<16x128xf32>
    %120 = vector.extract_strided_slice %98 {offsets = [64, 0], sizes = [16, 256], strides = [1, 1]} : vector<128x256xbf16> to vector<16x256xbf16>
    %c4_107 = arith.constant 4 : index
    %c0_108 = arith.constant 0 : index
    %c0_109 = arith.constant 0 : index
    %121 = vector.load %arg10[%c4_107, %c0_108, %c0_109] : memref<7x256x128xbf16, #tpu.memory_space<vmem>>, vector<1x256x128xbf16>
    %122 = vector.shape_cast %121 : vector<1x256x128xbf16> to vector<256x128xbf16>
    %cst_110 = arith.constant dense<0.000000e+00> : vector<16x128xf32>
    %123 = tpu.matmul %120, %122, %cst_110 {dimension_numbers = #tpu.dot_dimension_numbers<[1], [0], [0], [1], [0, 0, 1, 1], [], []>} : vector<16x256xbf16>, vector<256x128xbf16>, vector<16x128xf32> -> vector<16x128xf32>
    %124 = arith.addf %119, %123 : vector<16x128xf32>
    %125 = vector.extract_strided_slice %98 {offsets = [80, 0], sizes = [16, 256], strides = [1, 1]} : vector<128x256xbf16> to vector<16x256xbf16>
    %c5_111 = arith.constant 5 : index
    %c0_112 = arith.constant 0 : index
    %c0_113 = arith.constant 0 : index
    %126 = vector.load %arg10[%c5_111, %c0_112, %c0_113] : memref<7x256x128xbf16, #tpu.memory_space<vmem>>, vector<1x256x128xbf16>
    %127 = vector.shape_cast %126 : vector<1x256x128xbf16> to vector<256x128xbf16>
    %cst_114 = arith.constant dense<0.000000e+00> : vector<16x128xf32>
    %128 = tpu.matmul %125, %127, %cst_114 {dimension_numbers = #tpu.dot_dimension_numbers<[1], [0], [0], [1], [0, 0, 1, 1], [], []>} : vector<16x256xbf16>, vector<256x128xbf16>, vector<16x128xf32> -> vector<16x128xf32>
    %129 = arith.addf %124, %128 : vector<16x128xf32>
    %130 = vector.extract_strided_slice %98 {offsets = [96, 0], sizes = [16, 256], strides = [1, 1]} : vector<128x256xbf16> to vector<16x256xbf16>
    %c6 = arith.constant 6 : index
    %c0_115 = arith.constant 0 : index
    %c0_116 = arith.constant 0 : index
    %131 = vector.load %arg10[%c6, %c0_115, %c0_116] : memref<7x256x128xbf16, #tpu.memory_space<vmem>>, vector<1x256x128xbf16>
    %132 = vector.shape_cast %131 : vector<1x256x128xbf16> to vector<256x128xbf16>
    %cst_117 = arith.constant dense<0.000000e+00> : vector<16x128xf32>
    %133 = tpu.matmul %130, %132, %cst_117 {dimension_numbers = #tpu.dot_dimension_numbers<[1], [0], [0], [1], [0, 0, 1, 1], [], []>} : vector<16x256xbf16>, vector<256x128xbf16>, vector<16x128xf32> -> vector<16x128xf32>
    %134 = arith.addf %129, %133 : vector<16x128xf32>
    %c0_118 = arith.constant 0 : index
    %c0_119 = arith.constant 0 : index
    %135 = vector.load %arg11[%c0_118, %c0_119] : memref<1x128xf32, #tpu.memory_space<vmem>>, vector<1x128xf32>
    %136 = vector.broadcast %135 : vector<1x128xf32> to vector<16x128xf32>
    %137 = arith.addf %134, %136 : vector<16x128xf32>
    %c0_120 = arith.constant 0 : index
    %c0_121 = arith.constant 0 : index
    %138 = vector.load %arg12[%c0_120, %c0_121] : memref<16x128xf32, #tpu.memory_space<vmem>>, vector<16x128xf32>
    tpu.vector_store %arg12[%c0_120, %c0_121], %137 {strides = array<i32>} : memref<16x128xf32, #tpu.memory_space<vmem>>, vector<16x128xf32>,
    return
  }
  func.func @transform_0(%arg0: i32) -> (i32, i32, i32) {
    %c0_i32 = arith.constant 0 : i32
    %c0_i32_0 = arith.constant 0 : i32
    %c0_i32_1 = arith.constant 0 : i32
    return %c0_i32, %arg0, %c0_i32_0 : i32, i32, i32
  }
  func.func @transform_1(%arg0: i32) -> (i32, i32, i32) {
    %c0_i32 = arith.constant 0 : i32
    %c0_i32_0 = arith.constant 0 : i32
    %c0_i32_1 = arith.constant 0 : i32
    return %c0_i32, %arg0, %c0_i32_0 : i32, i32, i32
  }
  func.func @transform_2(%arg0: i32) -> (i32, i32, i32) {
    %c0_i32 = arith.constant 0 : i32
    %c0_i32_0 = arith.constant 0 : i32
    %c0_i32_1 = arith.constant 0 : i32
    return %c0_i32, %arg0, %c0_i32_0 : i32, i32, i32
  }
  func.func @transform_3(%arg0: i32) -> (i32, i32, i32) {
    %c0_i32 = arith.constant 0 : i32
    %c0_i32_0 = arith.constant 0 : i32
    %c0_i32_1 = arith.constant 0 : i32
    return %c0_i32, %arg0, %c0_i32_0 : i32, i32, i32
  }
  func.func @transform_4(%arg0: i32) -> (i32, i32) {
    %c0_i32 = arith.constant 0 : i32
    %c0_i32_0 = arith.constant 0 : i32
    %c0_i32_1 = arith.constant 0 : i32
    return %c0_i32, %c0_i32_0 : i32, i32
  }
  func.func @transform_5(%arg0: i32) -> (i32, i32) {
    %c0_i32 = arith.constant 0 : i32
    %c0_i32_0 = arith.constant 0 : i32
    %c0_i32_1 = arith.constant 0 : i32
    return %c0_i32, %c0_i32_0 : i32, i32
  }
  func.func @transform_6(%arg0: i32) -> (i32, i32) {
    %c0_i32 = arith.constant 0 : i32
    %c0_i32_0 = arith.constant 0 : i32
    %c0_i32_1 = arith.constant 0 : i32
    return %c0_i32, %c0_i32_0 : i32, i32
  }
  func.func @transform_7(%arg0: i32) -> (i32, i32, i32) {
    %c0_i32 = arith.constant 0 : i32
    %c0_i32_0 = arith.constant 0 : i32
    %c0_i32_1 = arith.constant 0 : i32
    %c0_i32_2 = arith.constant 0 : i32
    return %c0_i32, %c0_i32_0, %c0_i32_1 : i32, i32, i32
  }
  func.func @transform_8(%arg0: i32) -> (i32, i32) {
    %c0_i32 = arith.constant 0 : i32
    %c0_i32_0 = arith.constant 0 : i32
    %c0_i32_1 = arith.constant 0 : i32
    return %c0_i32, %c0_i32_0 : i32, i32
  }
  func.func @transform_9(%arg0: i32) -> (i32, i32, i32) {
    %c0_i32 = arith.constant 0 : i32
    %c0_i32_0 = arith.constant 0 : i32
    %c0_i32_1 = arith.constant 0 : i32
    %c0_i32_2 = arith.constant 0 : i32
    return %c0_i32, %c0_i32_0, %c0_i32_1 : i32, i32, i32
  }
  func.func @transform_10(%arg0: i32) -> (i32, i32) {
    %c0_i32 = arith.constant 0 : i32
    %c0_i32_0 = arith.constant 0 : i32
    %c0_i32_1 = arith.constant 0 : i32
    return %c0_i32, %c0_i32_0 : i32, i32
  }
  func.func @transform_11(%arg0: i32) -> (i32, i32) {
    %c0_i32 = arith.constant 0 : i32
    %c0_i32_0 = arith.constant 0 : i32
    return %arg0, %c0_i32 : i32, i32
  }
}

</mosaic_0001>

<bundles_post_ra>
// kernel: tile.13
= control target key start
LH: loop header
LB: loop body
LE: loop exit
PB: predicated region body
PF: predicated region fallthrough
CT: control target
= control target key end

     0   :  { %s28_s0 = inlined_call_operand.vmem [shape: f32[16], index: 0, kind: input, shape index: {}]   ;;  %s29_s1 = inlined_call_operand.vmem [shape: f32[14,16], index: 1, kind: output, shape index: {}]  }
   0x1   :  { %v4_v0 = vld [vmem:[%s28_s0] ss:$0 sm:$0xff] }
   0x2   :  { %5 = vst [vmem:[%s29_s1] sm:$0xff] %v4_v0  ;;  %8 = vst [vmem:[%s29_s1 + $0x8] sm:$0xff] %v4_v0 }

// kernel: tile.14
= control target key start
LH: loop header
LB: loop body
LE: loop exit
PB: predicated region body
PF: predicated region fallthrough
CT: control target
= control target key end

     0   :  { %s20_s8 = smov 3  ;;  %s109_s9 = smov 112   ;;  %s163_s0 = inlined_call_operand.vmem [shape: f32[14,16], index: 0, kind: input, shape index: {}]   ;;  %s164_s1 = inlined_call_operand.hbm [shape: f32[224], index: 1, kind: output, shape index: {}]  }
   0x1   :  { %v70_v0 = vld [vmem:[%s163_s0 + $0x7] sm:$0x1]   ;;  %v72_v1 = vld [vmem:[%s163_s0 + $0x5] ss:$8 sm:%s20_s8]   ;;  %s110_s12 = smov 80   ;;  %s27_s15 = smov 3 }
   0x2   :  { %9 = vrot.lane.b32.xlu0 %v70_v0, %s109_s9  ;;  %22 = vrot.lane.b32.xlu1 %v72_v1, %s110_s12  ;;  %v71_v2 = vld [vmem:[%s163_s0 + $0x6] sm:$0x1]   ;;  %s34_s18 = smov 3  ;;  %s41_s19 = smov 3 }
   0x3   :  { %v73_v3 = vld [vmem:[%s163_s0 + $0x4] ss:$8 sm:%s27_s15]  }
   0x4   :  { %2 = vsyncpa [#allocation1], 0  ;;  %s111_s20 = smov 96   ;;  %vm5_vm0 = vcmask 130048   ;;  %s112_s21 = smov 64   ;;  %vm11_vm1 = vcmask 1048448  }
   0x5   :  { %v74_v4 = vld [vmem:[%s163_s0 + $0x3] ss:$8 sm:%s34_s18]   ;;  %s3_s24 = smov 3  ;;  %v75_v5 = vld [vmem:[%s163_s0 + $0x2] ss:$8 sm:%s41_s19]   ;;  %s48_s27 = smov 3 }
   0x6   :  { %15 = vrot.lane.b32.xlu0 %v71_v2, %s111_s20  ;;  %29 = vrot.lane.b32.xlu1 %v73_v3, %s112_s21  ;;  %v4_v6 = vld [vmem:[%s163_s0] ss:$8 sm:%s3_s24]   ;;  %s113_s30 = smov 48   ;;  %s114_s2 = smov 32   ;;  %vm17_vm2 = vcmask 917248   ;;  %vm24_vm3 = vcmask 786048  }
   0x7   :  { %6 = vst.msk [vmem:[#allocation2] sm:$0x3] %vm5_vm0, %v4_v6   ;;  %v76_v7 = vld [vmem:[%s163_s0 + $0x1] ss:$8 sm:%s48_s27]   ;;  %s115_s0 = smov 16   ;;  %vm31_vm4 = vcmask 654848  }
   0x8   :  { %vm38_vm5 = vcmask 523648   ;;  %vm45_vm6 = vcmask 392448   ;;  %vm52_vm7 = vcmask 261248   ;;  %s116_s5 = smov [#allocation0]  }
   0x9   :  { %s64_s6 = sshll.u32 %s116_s5, 4  ;;  %s65_s6 = int_to_ptr.vmem [resolvable:$true] %s64_s6 }
   0xa   :  { %36 = vrot.lane.b32.xlu0 %v74_v4, %s113_s30  ;;  %43 = vrot.lane.b32.xlu1 %v75_v5, %s114_s2  ;;  %s85_s7 = scalar_lea.vmem %s65_s6, 32  ;;  %p90_p1 = scmp.lt.s32.totalorder %s65_s6, %s65_s6 }
   0xb   :  { %p86_p0 = scmp.ne.s32.totalorder %s65_s6, %s85_s7  ;;  %p91_p2 = scmp.lt.s32.totalorder %s85_s7, %s85_s7 }
   0xd   :  { %p92_p3 = por %p91_p2, %p90_p1 }
   0xe   :  { %50 = vrot.lane.b32.xlu0 %v76_v7, %s115_s0 }
   0xf   :  { %p93_p4 = pnand %p92_p3, %p86_p0 }
  0x74   :  { %v10_v8 = vpop.permute.xlu0 %9   ;;  %v23_v9 = vpop.permute.xlu1 %22  }
  0x75   :  { %12 = vst.msk [vmem:[#allocation2] sm:$0x1] %vm11_vm1, %v10_v8  }
  0x78   :  { %v16_v10 = vpop.permute.xlu0 %15   ;;  %v30_v11 = vpop.permute.xlu1 %29  }
  0x79   :  { %18 = vst.msk [vmem:[#allocation2] sm:$0x1] %vm17_vm2, %v16_v10  }
  0x7a   :  { %25 = vst.msk [vmem:[#allocation2] sm:$0x3] %vm24_vm3, %v23_v9  }
  0x7b   :  { %32 = vst.msk [vmem:[#allocation2] sm:$0x3] %vm31_vm4, %v30_v11  }
  0x7c   :  { %v37_v12 = vpop.permute.xlu0 %36   ;;  %v44_v13 = vpop.permute.xlu1 %43  }
  0x7d   :  { %39 = vst.msk [vmem:[#allocation2] sm:$0x3] %vm38_vm5, %v37_v12  }
  0x7e   :  { %46 = vst.msk [vmem:[#allocation2] sm:$0x3] %vm45_vm6, %v44_v13  }
  0x80   :  { %v51_v14 = vpop.permute.xlu0 %50  }
  0x81   :  { %53 = vst.msk [vmem:[#allocation2] sm:$0x3] %vm52_vm7, %v51_v14  }
  0x88   :  { %v57_v15 = vld [vmem:[#allocation2] sm:$0x3] }
  0x89   :  { %59 = vst [vmem:[#allocation0] sm:$0x3] %v57_v15 }
  0x8a   :  { %96 = shalt.err (!%p93_p4)
}
  0x8b   :  { %s97_s10 = scalar_lea.hbm %s164_s1, 32 }
  0x8c   :  { %p98_p5 = scmp.ne.s32.totalorder %s164_s1, %s97_s10  ;;  %p101_p6 = scmp.lt.u32.totalorder %s97_s10, %s164_s1 }
  0x8e   :  { %p103_p7 = pnand %p101_p6, %p98_p5 }
  0x90   :  { %106 = shalt.err (!%p103_p7)
}
  0x91   :  { %67 = dma.vmem_to_hbm [thread:$0]  %s65_s6, 32, %s164_s1, [#allocation1]  }
  0x92   :  { %107 = dma.done.wait [#allocation1], 32  }
  0x93   :  { %108 = vsyncadd [#allocation1], 4294967264 }
  0x94   :  { %69 = vsyncpa [#allocation1], 1 }

// kernel: tile.18
= control target key start
LH: loop header
LB: loop body
LE: loop exit
PB: predicated region body
PF: predicated region fallthrough
CT: control target
= control target key end

     0   :  { %s22_s0 = inlined_call_operand.vmem [shape: f32[32], index: 0, kind: input, shape index: {}]   ;;  %s23_s1 = inlined_call_operand.vmem [shape: f32[7,32], index: 1, kind: output, shape index: {}]  }
   0x1   :  { %v4_v0 = vld [vmem:[%s22_s0] ss:$0 sm:$0xff] }
   0x2   :  { %5 = vst [vmem:[%s23_s1] sm:$0xff] %v4_v0 }

// kernel: tile.19
= control target key start
LH: loop header
LB: loop body
LE: loop exit
PB: predicated region body
PF: predicated region fallthrough
CT: control target
= control target key end

     0   :  { %s13_s8 = smov 3  ;;  %s38_s9 = smov 96   ;;  %vm4_vm0 = vcmask 261120   ;;  %vm10_vm1 = vcmask 1048320   ;;  %vm17_vm2 = vcmask 785920   ;;  %vm24_vm3 = vcmask 523520   ;;  %s66_s0 = inlined_call_operand.vmem [shape: f32[7,32], index: 0, kind: input, shape index: {}]   ;;  %s67_s1 = inlined_call_operand.vmem [shape: f32[224], index: 1, kind: output, shape index: {}]  }
   0x1   :  { %v32_v0 = vld [vmem:[%s66_s0 + $0x3] sm:$0x1]   ;;  %s20_s10 = smov 3  ;;  %v33_v1 = vld [vmem:[%s66_s0 + $0x2] ss:$4 sm:%s13_s8]   ;;  %s2_s15 = smov 3 }
   0x2   :  { %8 = vrot.lane.b32.xlu0 %v32_v0, %s38_s9  ;;  %v34_v2 = vld [vmem:[%s66_s0 + $0x1] ss:$4 sm:%s20_s10]   ;;  %s39_s16 = smov 32  }
   0x3   :  { %22 = vrot.lane.b32.xlu1 %v34_v2, %s39_s16  ;;  %v3_v3 = vld [vmem:[%s66_s0] ss:$4 sm:%s2_s15]   ;;  %s40_s0 = smov 64  }
   0x4   :  { %5 = vst.msk [vmem:[#allocation0] sm:$0x3] %vm4_vm0, %v3_v3  }
   0x6   :  { %15 = vrot.lane.b32.xlu0 %v33_v1, %s40_s0 }
  0x74   :  { %v9_v4 = vpop.permute.xlu0 %8  }
  0x75   :  { %11 = vst.msk [vmem:[#allocation0] sm:$0x1] %vm10_vm1, %v9_v4   ;;  %v23_v5 = vpop.permute.xlu1 %22  }
  0x78   :  { %v16_v6 = vpop.permute.xlu0 %15  }
  0x79   :  { %18 = vst.msk [vmem:[#allocation0] sm:$0x3] %vm17_vm2, %v16_v6  }
  0x7a   :  { %25 = vst.msk [vmem:[#allocation0] sm:$0x3] %vm24_vm3, %v23_v5  }
  0x81   :  { %v29_v7 = vld [vmem:[#allocation0] sm:$0x3] }
  0x82   :  { %31 = vst [vmem:[%s67_s1] sm:$0x3] %v29_v7 }

// kernel: simple_cnn_forward.1
= control target key start
LH: loop header
LB: loop body
LE: loop exit
PB: predicated region body
PF: predicated region fallthrough
CT: control target
= control target key end

     0   :  { %v10788_v1 = vmov 0   ;;  %vm196_vm0 = vcmask 785408   ;;  %s10776_s4 = inlined_call_operand.vmem [shape: bf16[96,256], index: 4, kind: input, shape index: {}]   ;;  %s10777_s5 = inlined_call_operand.vmem [shape: bf16[96,256], index: 5, kind: input, shape index: {}]   ;;  %s10778_s0 = inlined_call_operand.vmem [shape: bf16[8,16,96], index: 0, kind: input, shape index: {}]   ;;  %s10779_s1 = inlined_call_operand.vmem [shape: bf16[8,16,96], index: 1, kind: input, shape index: {}]   ;;  %s10780_s2 = inlined_call_operand.vmem [shape: bf16[8,16,96], index: 2, kind: input, shape index: {}]   ;;  %s10781_s3 = inlined_call_operand.vmem [shape: bf16[8,16,96], index: 3, kind: input, shape index: {}]   ;;  %s10782_s7 = inlined_call_operand.vmem [shape: bf16[6,256,256], index: 7, kind: input, shape index: {}]   ;;  %s10783_s6 = inlined_call_operand.vmem [shape: f32[1,256], index: 6, kind: input, shape index: {}]   ;;  %s10784_s9 = inlined_call_operand.vmem [shape: bf16[7,256,128], index: 9, kind: input, shape index: {}]   ;;  %s10785_s8 = inlined_call_operand.vmem [shape: f32[1,256], index: 8, kind: input, shape index: {}]   ;;  %s10786_s10 = inlined_call_operand.vmem [shape: f32[1,128], index: 10, kind: input, shape index: {}]   ;;  %s10787_s11 = inlined_call_operand.vmem [shape: f32[16,128], index: 11, kind: output, shape index: {}]  }
   0x1   :  { %v7603_v0 = vld [vmem:[%s10776_s4 + $0x4] ss:$8 sps:$4 sm:$0xff]   ;;  %253 = vmatprep.mubr.bf16.mxu0 %v10788_v1  ;;  %426 = vmatprep.mubr.bf16.mxu1 %v10788_v1  ;;  %v7616_v3 = vld [vmem:[%s10776_s4] ss:$8 sps:$4 sm:$0xff]   ;;  %v7627_v5 = vld [vmem:[%s10776_s4 + $0x14] ss:$8 sps:$4 sm:$0xff]  }
   0x2   :  { %v7610_v2 = vld [vmem:[%s10777_s5 + $0x4] ss:$8 sps:$4 sm:$0xff]   ;;  %221 = vmatprep.subr.bf16.mxu0 %v7603_v0  ;;  %v7621_v4 = vld [vmem:[%s10777_s5] ss:$8 sps:$4 sm:$0xff]   ;;  %v7634_v6 = vld [vmem:[%s10777_s5 + $0x14] ss:$8 sps:$4 sm:$0xff]  }
   0x3   :  { %394 = vmatprep.subr.bf16.mxu1 %v7610_v2  ;;  %222 = vmatpush1.bf16.msra.mxu0 %v7616_v3  ;;  %v7639_v7 = vld [vmem:[%s10776_s4 + $0x10] ss:$8 sps:$4 sm:$0xff]   ;;  %v7651_v9 = vld [vmem:[%s10776_s4 + $0x24] ss:$8 sps:$4 sm:$0xff]   ;;  %v7661_v11 = vld [vmem:[%s10776_s4 + $0x20] ss:$8 sps:$4 sm:$0xff]  }
   0x4   :  { %395 = vmatpush1.bf16.msra.mxu1 %v7621_v4  ;;  %223 = vmatprep.subr.bf16.mxu0 %v7627_v5  ;;  %v7645_v8 = vld [vmem:[%s10777_s5 + $0x10] ss:$8 sps:$4 sm:$0xff]   ;;  %v7656_v10 = vld [vmem:[%s10777_s5 + $0x24] ss:$8 sps:$4 sm:$0xff]   ;;  %v7666_v12 = vld [vmem:[%s10777_s5 + $0x20] ss:$8 sps:$4 sm:$0xff]  }
   0x5   :  { %396 = vmatprep.subr.bf16.mxu1 %v7634_v6  ;;  %v7673_v13 = vld [vmem:[%s10776_s4 + $0x34] ss:$8 sps:$4 sm:$0xff]   ;;  %v7685_v15 = vld [vmem:[%s10776_s4 + $0x30] ss:$8 sps:$4 sm:$0xff]   ;;  %v7697_v17 = vld [vmem:[%s10776_s4 + $0x44] ss:$8 sps:$4 sm:$0xff]  }
   0x6   :  { %v7680_v14 = vld [vmem:[%s10777_s5 + $0x34] ss:$8 sps:$4 sm:$0xff]   ;;  %v7692_v16 = vld [vmem:[%s10777_s5 + $0x30] ss:$8 sps:$4 sm:$0xff]   ;;  %v7704_v18 = vld [vmem:[%s10777_s5 + $0x44] ss:$8 sps:$4 sm:$0xff]  }
   0x7   :  { %224 = vmatpush1.bf16.msra.mxu0 %v7639_v7  ;;  %v7709_v19 = vld [vmem:[%s10776_s4 + $0x40] ss:$8 sps:$4 sm:$0xff]   ;;  %v7721_v21 = vld [vmem:[%s10776_s4 + $0x54] ss:$8 sps:$4 sm:$0xff]   ;;  %v7733_v23 = vld [vmem:[%s10776_s4 + $0x50] ss:$8 sps:$4 sm:$0xff]  }
   0x8   :  { %397 = vmatpush1.bf16.msra.mxu1 %v7645_v8  ;;  %225 = vmatprep.subr.bf16.mxu0 %v7651_v9  ;;  %v7714_v20 = vld [vmem:[%s10777_s5 + $0x40] ss:$8 sps:$4 sm:$0xff]   ;;  %v7728_v22 = vld [vmem:[%s10777_s5 + $0x54] ss:$8 sps:$4 sm:$0xff]   ;;  %v7740_v24 = vld [vmem:[%s10777_s5 + $0x50] ss:$8 sps:$4 sm:$0xff]  }
   0x9   :  { %398 = vmatprep.subr.bf16.mxu1 %v7656_v10  ;;  %v7025_v25 = vld [vmem:[%s10778_s0] sm:$0xff]   ;;  %v7026_v26 = vld [vmem:[%s10778_s0 + $0x8] sm:$0xff]   ;;  %v7027_v27 = vld [vmem:[%s10778_s0 + $0x10] sm:$0xff]  }
   0xa   :  { %v7028_v28 = vld [vmem:[%s10778_s0 + $0x18] sm:$0xff]   ;;  %v7029_v29 = vld [vmem:[%s10778_s0 + $0x20] sm:$0xff]   ;;  %v7030_v30 = vld [vmem:[%s10778_s0 + $0x28] sm:$0xff]  }
   0xb   :  { %226 = vmatpush1.bf16.msra.mxu0 %v7661_v11  ;;  %v7031_v31 = vld [vmem:[%s10778_s0 + $0x30] sm:$0xff]   ;;  %v7032_v32 = vld [vmem:[%s10778_s0 + $0x38] sm:$0xff]   ;;  %v7033_v33 = vld [vmem:[%s10779_s1] sm:$0xff]  }
   0xc   :  { %399 = vmatpush1.bf16.msra.mxu1 %v7666_v12  ;;  %227 = vmatprep.subr.bf16.mxu0 %v7673_v13  ;;  %v7034_v34 = vld [vmem:[%s10779_s1 + $0x8] sm:$0xff]   ;;  %v7035_v35 = vld [vmem:[%s10779_s1 + $0x10] sm:$0xff]   ;;  %v7036_v36 = vld [vmem:[%s10779_s1 + $0x18] sm:$0xff]  }
   0xd   :  { %400 = vmatprep.subr.bf16.mxu1 %v7680_v14  ;;  %v7037_v37 = vld [vmem:[%s10779_s1 + $0x20] sm:$0xff]   ;;  %v7038_v38 = vld [vmem:[%s10779_s1 + $0x28] sm:$0xff]   ;;  %v7039_v39 = vld [vmem:[%s10779_s1 + $0x30] sm:$0xff]  }
   0xe   :  { %v7040_v40 = vld [vmem:[%s10779_s1 + $0x38] sm:$0xff]   ;;  %v7041_v41 = vld [vmem:[%s10780_s2] sm:$0xff]   ;;  %v7042_v42 = vld [vmem:[%s10780_s2 + $0x8] sm:$0xff]  }
   0xf   :  { %228 = vmatpush1.bf16.msra.mxu0 %v7685_v15  ;;  %v7043_v43 = vld [vmem:[%s10780_s2 + $0x10] sm:$0xff]   ;;  %v7044_v44 = vld [vmem:[%s10780_s2 + $0x18] sm:$0xff]   ;;  %v7045_v45 = vld [vmem:[%s10780_s2 + $0x20] sm:$0xff]  }
  0x10   :  { %401 = vmatpush1.bf16.msra.mxu1 %v7692_v16  ;;  %229 = vmatprep.subr.bf16.mxu0 %v7697_v17  ;;  %v7046_v46 = vld [vmem:[%s10780_s2 + $0x28] sm:$0xff]   ;;  %v7047_v47 = vld [vmem:[%s10780_s2 + $0x30] sm:$0xff]   ;;  %v7048_v48 = vld [vmem:[%s10780_s2 + $0x38] sm:$0xff]  }
  0x11   :  { %402 = vmatprep.subr.bf16.mxu1 %v7704_v18  ;;  %v7049_v49 = vld [vmem:[%s10781_s3] sm:$0xff]   ;;  %v7050_v50 = vld [vmem:[%s10781_s3 + $0x8] sm:$0xff]   ;;  %v7051_v51 = vld [vmem:[%s10781_s3 + $0x10] sm:$0xff]  }
  0x12   :  { %v7052_v56 = vld [vmem:[%s10781_s3 + $0x18] sm:$0xff]  }
  0x13   :  { %230 = vmatpush1.bf16.msra.mxu0 %v7709_v19 }
  0x14   :  { %403 = vmatpush1.bf16.msra.mxu1 %v7714_v20  ;;  %231 = vmatprep.subr.bf16.mxu0 %v7721_v21 }
  0x15   :  { %404 = vmatprep.subr.bf16.mxu1 %v7728_v22 }
  0x17   :  { %232 = vmatpush1.bf16.msra.mxu0 %v7733_v23 }
  0x18   :  { %405 = vmatpush1.bf16.msra.mxu1 %v7740_v24  ;;  %603 = vmatprep.subr.bf16.mxu0 %v7603_v0 }
  0x19   :  { %748 = vmatprep.subr.bf16.mxu1 %v7610_v2 }
  0x1a   :  { %5853 = vmatmul.mubr.msk.bf16.vlgmr.msra.gmra.mrb[0].mxu0 %vm196_vm0, %v7025_v25 }
  0x1b   :  { %5873 = vmatmul.mubr.msk.bf16.vlgmr.msra.gmra.mrb[0].mxu1 %vm196_vm0, %v7025_v25  ;;  %604 = vmatpush1.bf16.msra.mxu0 %v7616_v3 }
  0x1c   :  { %749 = vmatpush1.bf16.msra.mxu1 %v7621_v4  ;;  %263 = vmatprep.mubr.bf16.mxu0 %v10788_v1 }
  0x1d   :  { %436 = vmatprep.mubr.bf16.mxu1 %v10788_v1  ;;  %605 = vmatprep.subr.bf16.mxu0 %v7627_v5 }
  0x1e   :  { %750 = vmatprep.subr.bf16.mxu1 %v7634_v6 }
  0x1f   :  { %606 = vmatpush1.bf16.msra.mxu0 %v7639_v7 }
  0x20   :  { %751 = vmatpush1.bf16.msra.mxu1 %v7645_v8  ;;  %607 = vmatprep.subr.bf16.mxu0 %v7651_v9 }
  0x21   :  { %752 = vmatprep.subr.bf16.mxu1 %v7656_v10 }
  0x22   :  { %5854 = vmatmul.mubr.msk.bf16.gmra.mrb[4].mxu0 %vm196_vm0, %v7026_v26 }
  0x23   :  { %5874 = vmatmul.mubr.msk.bf16.gmra.mrb[4].mxu1 %vm196_vm0, %v7026_v26  ;;  %273 = vmatprep.mubr.bf16.mxu0 %v10788_v1  ;;  %v7062_v26 = vld [vmem:[%s10782_s7 + $0x110] ss:$8 sps:$4 sm:$0xff]  }
  0x24   :  { %446 = vmatprep.mubr.bf16.mxu1 %v10788_v1  ;;  %608 = vmatpush1.bf16.msra.mxu0 %v7661_v11 }
  0x25   :  { %753 = vmatpush1.bf16.msra.mxu1 %v7666_v12  ;;  %609 = vmatprep.subr.bf16.mxu0 %v7673_v13 }
  0x26   :  { %754 = vmatprep.subr.bf16.mxu1 %v7680_v14 }
  0x28   :  { %610 = vmatpush1.bf16.msra.mxu0 %v7685_v15 }
  0x29   :  { %755 = vmatpush1.bf16.msra.mxu1 %v7692_v16  ;;  %611 = vmatprep.subr.bf16.mxu0 %v7697_v17 }
  0x2a   :  { %756 = vmatprep.subr.bf16.mxu1 %v7704_v18  ;;  %5855 = vmatmul.mubr.msk.bf16.gmra.mrb[8].mxu0 %vm196_vm0, %v7027_v27 }
  0x2b   :  { %5875 = vmatmul.mubr.msk.bf16.gmra.mrb[8].mxu1 %vm196_vm0, %v7027_v27  ;;  %283 = vmatprep.mubr.bf16.mxu0 %v10788_v1  ;;  %v7065_v27 = vld [vmem:[%s10782_s7 + $0x410] ss:$8 sps:$4 sm:$0xff]  }
  0x2c   :  { %456 = vmatprep.mubr.bf16.mxu1 %v10788_v1  ;;  %612 = vmatpush1.bf16.msra.mxu0 %v7709_v19 }
  0x2d   :  { %757 = vmatpush1.bf16.msra.mxu1 %v7714_v20  ;;  %613 = vmatprep.subr.bf16.mxu0 %v7721_v21 }
  0x2e   :  { %758 = vmatprep.subr.bf16.mxu1 %v7728_v22 }
  0x30   :  { %614 = vmatpush1.bf16.msra.mxu0 %v7733_v23 }
  0x31   :  { %759 = vmatpush1.bf16.msra.mxu1 %v7740_v24  ;;  %1100 = vmatprep.subr.bf16.mxu0 %v7603_v0 }
  0x32   :  { %1213 = vmatprep.subr.bf16.mxu1 %v7610_v2  ;;  %5856 = vmatmul.mubr.msk.bf16.gmra.mrb[12].mxu0 %vm196_vm0, %v7028_v28 }
  0x33   :  { %5876 = vmatmul.mubr.msk.bf16.gmra.mrb[12].mxu1 %vm196_vm0, %v7028_v28  ;;  %293 = vmatprep.mubr.bf16.mxu0 %v10788_v1  ;;  %v7116_v28 = vld [vmem:[%s10782_s7 + $0x1a0] ss:$8 sps:$4 sm:$0xff]  }
  0x34   :  { %466 = vmatprep.mubr.bf16.mxu1 %v10788_v1 }
  0x3a   :  { %5857 = vmatmul.mubr.msk.bf16.gmra.mrb[16].mxu0 %vm196_vm0, %v7029_v29 }
  0x3b   :  { %5877 = vmatmul.mubr.msk.bf16.gmra.mrb[16].mxu1 %vm196_vm0, %v7029_v29  ;;  %303 = vmatprep.mubr.bf16.mxu0 %v10788_v1 }
  0x3c   :  { %476 = vmatprep.mubr.bf16.mxu1 %v10788_v1 }
  0x42   :  { %5858 = vmatmul.mubr.msk.bf16.gmra.mrb[20].mxu0 %vm196_vm0, %v7030_v30 }
  0x43   :  { %5878 = vmatmul.mubr.msk.bf16.gmra.mrb[20].mxu1 %vm196_vm0, %v7030_v30  ;;  %313 = vmatprep.mubr.bf16.mxu0 %v10788_v1 }
  0x44   :  { %486 = vmatprep.mubr.bf16.mxu1 %v10788_v1 }
  0x4a   :  { %5859 = vmatmul.mubr.msk.bf16.gmra.mrb[24].mxu0 %vm196_vm0, %v7031_v31 }
  0x4b   :  { %5879 = vmatmul.mubr.msk.bf16.gmra.mrb[24].mxu1 %vm196_vm0, %v7031_v31  ;;  %323 = vmatprep.mubr.bf16.mxu0 %v10788_v1  ;;  %v7118_v31 = vld [vmem:[%s10782_s7 + $0x1a4] ss:$8 sps:$4 sm:$0xff]  }
  0x4c   :  { %496 = vmatprep.mubr.bf16.mxu1 %v10788_v1 }
  0x52   :  { %5860 = vmatmul.mubr.msk.bf16.gmra.mrb[28].mxu0 %vm196_vm0, %v7032_v32 }
  0x53   :  { %5880 = vmatmul.mubr.msk.bf16.gmra.mrb[28].mxu1 %vm196_vm0, %v7032_v32  ;;  %635 = vmatprep.mubr.bf16.mxu0 %v10788_v1  ;;  %v7070_v32 = vld [vmem:[%s10782_s7 + $0x124] ss:$8 sps:$4 sm:$0xff]  }
  0x54   :  { %780 = vmatprep.mubr.bf16.mxu1 %v10788_v1 }
  0x5a   :  { %5889 = vmatmul.mubr.msk.bf16.vlgmr.msra.gmra.mrb[32].mxu0 %vm196_vm0, %v7033_v33 }
  0x5b   :  { %5897 = vmatmul.mubr.msk.bf16.vlgmr.msra.gmra.mrb[32].mxu1 %vm196_vm0, %v7033_v33  ;;  %1101 = vmatpush1.bf16.msra.mxu0 %v7616_v3  ;;  %v7068_v33 = vld [vmem:[%s10782_s7 + $0x120] ss:$8 sps:$4 sm:$0xff]  }
  0x5c   :  { %1214 = vmatpush1.bf16.msra.mxu1 %v7621_v4  ;;  %645 = vmatprep.mubr.bf16.mxu0 %v10788_v1 }
  0x5d   :  { %790 = vmatprep.mubr.bf16.mxu1 %v10788_v1  ;;  %1102 = vmatprep.subr.bf16.mxu0 %v7627_v5 }
  0x5e   :  { %1215 = vmatprep.subr.bf16.mxu1 %v7634_v6 }
  0x5f   :  { %1103 = vmatpush1.bf16.msra.mxu0 %v7639_v7 }
  0x60   :  { %1216 = vmatpush1.bf16.msra.mxu1 %v7645_v8  ;;  %1104 = vmatprep.subr.bf16.mxu0 %v7651_v9 }
  0x61   :  { %1217 = vmatprep.subr.bf16.mxu1 %v7656_v10 }
  0x62   :  { %5890 = vmatmul.mubr.msk.bf16.gmra.mrb[36].mxu0 %vm196_vm0, %v7034_v34 }
  0x63   :  { %5898 = vmatmul.mubr.msk.bf16.gmra.mrb[36].mxu1 %vm196_vm0, %v7034_v34  ;;  %655 = vmatprep.mubr.bf16.mxu0 %v10788_v1  ;;  %v7071_v34 = vld [vmem:[%s10782_s7 + $0x420] ss:$8 sps:$4 sm:$0xff]  }
  0x64   :  { %800 = vmatprep.mubr.bf16.mxu1 %v10788_v1  ;;  %1105 = vmatpush1.bf16.msra.mxu0 %v7661_v11 }
  0x65   :  { %1218 = vmatpush1.bf16.msra.mxu1 %v7666_v12  ;;  %1106 = vmatprep.subr.bf16.mxu0 %v7673_v13 }
  0x66   :  { %1219 = vmatprep.subr.bf16.mxu1 %v7680_v14 }
  0x68   :  { %1107 = vmatpush1.bf16.msra.mxu0 %v7685_v15 }
  0x69   :  { %1220 = vmatpush1.bf16.msra.mxu1 %v7692_v16  ;;  %1108 = vmatprep.subr.bf16.mxu0 %v7697_v17 }
  0x6a   :  { %1221 = vmatprep.subr.bf16.mxu1 %v7704_v18  ;;  %5891 = vmatmul.mubr.msk.bf16.gmra.mrb[40].mxu0 %vm196_vm0, %v7035_v35 }
  0x6b   :  { %5899 = vmatmul.mubr.msk.bf16.gmra.mrb[40].mxu1 %vm196_vm0, %v7035_v35  ;;  %665 = vmatprep.mubr.bf16.mxu0 %v10788_v1  ;;  %v7073_v35 = vld [vmem:[%s10782_s7 + $0x424] ss:$8 sps:$4 sm:$0xff]  }
  0x6c   :  { %810 = vmatprep.mubr.bf16.mxu1 %v10788_v1  ;;  %1109 = vmatpush1.bf16.msra.mxu0 %v7709_v19 }
  0x6d   :  { %1222 = vmatpush1.bf16.msra.mxu1 %v7714_v20  ;;  %1110 = vmatprep.subr.bf16.mxu0 %v7721_v21 }
  0x6e   :  { %1223 = vmatprep.subr.bf16.mxu1 %v7728_v22 }
  0x70   :  { %1111 = vmatpush1.bf16.msra.mxu0 %v7733_v23 }
  0x71   :  { %1224 = vmatpush1.bf16.msra.mxu1 %v7740_v24  ;;  %1422 = vmatprep.subr.bf16.mxu0 %v7603_v0 }
  0x72   :  { %1567 = vmatprep.subr.bf16.mxu1 %v7610_v2  ;;  %5892 = vmatmul.mubr.msk.bf16.gmra.mrb[44].mxu0 %vm196_vm0, %v7036_v36 }
  0x73   :  { %5900 = vmatmul.mubr.msk.bf16.gmra.mrb[44].mxu1 %vm196_vm0, %v7036_v36  ;;  %675 = vmatprep.mubr.bf16.mxu0 %v10788_v1  ;;  %v7055_v36 = vld [vmem:[%s10781_s3 + $0x30] sm:$0xff]  }
  0x74   :  { %820 = vmatprep.mubr.bf16.mxu1 %v10788_v1 }
  0x7a   :  { %5893 = vmatmul.mubr.msk.bf16.gmra.mrb[48].mxu0 %vm196_vm0, %v7037_v37 }
  0x7b   :  { %5901 = vmatmul.mubr.msk.bf16.gmra.mrb[48].mxu1 %vm196_vm0, %v7037_v37  ;;  %685 = vmatprep.mubr.bf16.mxu0 %v10788_v1 }
  0x7c   :  { %830 = vmatprep.mubr.bf16.mxu1 %v10788_v1 }
  0x82   :  { %5894 = vmatmul.mubr.msk.bf16.gmra.mrb[52].mxu0 %vm196_vm0, %v7038_v38 }
  0x83   :  { %5902 = vmatmul.mubr.msk.bf16.gmra.mrb[52].mxu1 %vm196_vm0, %v7038_v38  ;;  %695 = vmatprep.mubr.bf16.mxu0 %v10788_v1 }
  0x84   :  { %840 = vmatprep.mubr.bf16.mxu1 %v10788_v1 }
  0x8a   :  { %5895 = vmatmul.mubr.msk.bf16.gmra.mrb[56].mxu0 %vm196_vm0, %v7039_v39 }
  0x8b   :  { %5903 = vmatmul.mubr.msk.bf16.gmra.mrb[56].mxu1 %vm196_vm0, %v7039_v39  ;;  %705 = vmatprep.mubr.bf16.mxu0 %v10788_v1 }
  0x8c   :  { %850 = vmatprep.mubr.bf16.mxu1 %v10788_v1 }
  0x92   :  { %5896 = vmatmul.mubr.msk.bf16.gmra.mrb[60].mxu0 %vm196_vm0, %v7040_v40 }
  0x93   :  { %5904 = vmatmul.mubr.msk.bf16.gmra.mrb[60].mxu1 %vm196_vm0, %v7040_v40  ;;  %1132 = vmatprep.mubr.bf16.mxu0 %v10788_v1 }
  0x94   :  { %1245 = vmatprep.mubr.bf16.mxu1 %v10788_v1 }
  0x9a   :  { %5913 = vmatmul.mubr.msk.bf16.vlgmr.msra.gmra.mrb[64].mxu0 %vm196_vm0, %v7041_v41 }
  0x9b   :  { %5921 = vmatmul.mubr.msk.bf16.vlgmr.msra.gmra.mrb[64].mxu1 %vm196_vm0, %v7041_v41  ;;  %1423 = vmatpush1.bf16.msra.mxu0 %v7616_v3  ;;  %v7053_v3 = vld [vmem:[%s10781_s3 + $0x20] sm:$0xff]  }
  0x9c   :  { %1568 = vmatpush1.bf16.msra.mxu1 %v7621_v4  ;;  %1142 = vmatprep.mubr.bf16.mxu0 %v10788_v1  ;;  %v7122_v4 = vld [vmem:[%s10782_s7 + $0x1b0] ss:$8 sps:$4 sm:$0xff]  }
  0x9d   :  { %1255 = vmatprep.mubr.bf16.mxu1 %v10788_v1  ;;  %1424 = vmatprep.subr.bf16.mxu0 %v7627_v5 }
  0x9e   :  { %1569 = vmatprep.subr.bf16.mxu1 %v7634_v6 }
  0x9f   :  { %1425 = vmatpush1.bf16.msra.mxu0 %v7639_v7 }
  0xa0   :  { %1570 = vmatpush1.bf16.msra.mxu1 %v7645_v8  ;;  %1426 = vmatprep.subr.bf16.mxu0 %v7651_v9 }
  0xa1   :  { %1571 = vmatprep.subr.bf16.mxu1 %v7656_v10 }
  0xa2   :  { %5914 = vmatmul.mubr.msk.bf16.gmra.mrb[68].mxu0 %vm196_vm0, %v7042_v42 }
  0xa3   :  { %5922 = vmatmul.mubr.msk.bf16.gmra.mrb[68].mxu1 %vm196_vm0, %v7042_v42  ;;  %1152 = vmatprep.mubr.bf16.mxu0 %v10788_v1  ;;  %v7076_v42 = vld [vmem:[%s10782_s7 + $0x134] ss:$8 sps:$4 sm:$0xff]  }
  0xa4   :  { %1265 = vmatprep.mubr.bf16.mxu1 %v10788_v1  ;;  %1427 = vmatpush1.bf16.msra.mxu0 %v7661_v11  ;;  %v7056_v11 = vld [vmem:[%s10782_s7 + $0x100] ss:$8 sps:$4 sm:$0xff]  }
  0xa5   :  { %1572 = vmatpush1.bf16.msra.mxu1 %v7666_v12  ;;  %1428 = vmatprep.subr.bf16.mxu0 %v7673_v13  ;;  %v7058_v12 = vld [vmem:[%s10782_s7 + $0x104] ss:$8 sps:$4 sm:$0xff]  }
  0xa6   :  { %1573 = vmatprep.subr.bf16.mxu1 %v7680_v14  ;;  %v7054_v13 = vld [vmem:[%s10781_s3 + $0x28] sm:$0xff]  }
  0xa7   :  { %v7059_v14 = vld [vmem:[%s10782_s7 + $0x400] ss:$8 sps:$4 sm:$0xff]  }
  0xa8   :  { %1429 = vmatpush1.bf16.msra.mxu0 %v7685_v15  ;;  %v7061_v15 = vld [vmem:[%s10782_s7 + $0x404] ss:$8 sps:$4 sm:$0xff]  }
  0xa9   :  { %1574 = vmatpush1.bf16.msra.mxu1 %v7692_v16  ;;  %1430 = vmatprep.subr.bf16.mxu0 %v7697_v17 }
  0xaa   :  { %1575 = vmatprep.subr.bf16.mxu1 %v7704_v18  ;;  %5915 = vmatmul.mubr.msk.bf16.gmra.mrb[72].mxu0 %vm196_vm0, %v7043_v43  ;;  %v7124_v18 = vld [vmem:[%s10782_s7 + $0x1b4] ss:$8 sps:$4 sm:$0xff]  }
  0xab   :  { %5923 = vmatmul.mubr.msk.bf16.gmra.mrb[72].mxu1 %vm196_vm0, %v7043_v43  ;;  %1162 = vmatprep.mubr.bf16.mxu0 %v10788_v1  ;;  %v7079_v43 = vld [vmem:[%s10782_s7 + $0x434] ss:$8 sps:$4 sm:$0xff]  }
  0xac   :  { %1275 = vmatprep.mubr.bf16.mxu1 %v10788_v1  ;;  %1431 = vmatpush1.bf16.msra.mxu0 %v7709_v19 }
  0xad   :  { %1576 = vmatpush1.bf16.msra.mxu1 %v7714_v20  ;;  %1432 = vmatprep.subr.bf16.mxu0 %v7721_v21  ;;  %v7064_v21 = vld [vmem:[%s10782_s7 + $0x114] ss:$8 sps:$4 sm:$0xff]  }
  0xae   :  { %1577 = vmatprep.subr.bf16.mxu1 %v7728_v22  ;;  %v7067_v22 = vld [vmem:[%s10782_s7 + $0x414] ss:$8 sps:$4 sm:$0xff]  }
  0xb0   :  { %1433 = vmatpush1.bf16.msra.mxu0 %v7733_v23 }
  0xb1   :  { %1578 = vmatpush1.bf16.msra.mxu1 %v7740_v24  ;;  %2101 = vmatprep.subr.bf16.mxu0 %v7058_v12  ;;  %v7091_v12 = vld [vmem:[%s10782_s7 + $0x454] ss:$8 sps:$4 sm:$0xff]  }
  0xb2   :  { %5916 = vmatmul.mubr.msk.bf16.gmra.mrb[76].mxu0 %vm196_vm0, %v7044_v44  ;;  %3035 = vmatprep.subr.bf16.mxu1 %v7061_v15 }
  0xb3   :  { %5924 = vmatmul.mubr.msk.bf16.gmra.mrb[76].mxu1 %vm196_vm0, %v7044_v44  ;;  %1172 = vmatprep.mubr.bf16.mxu0 %v10788_v1 }
  0xb4   :  { %1285 = vmatprep.mubr.bf16.mxu1 %v10788_v1 }
  0xba   :  { %5917 = vmatmul.mubr.msk.bf16.gmra.mrb[80].mxu0 %vm196_vm0, %v7045_v45 }
  0xbb   :  { %5925 = vmatmul.mubr.msk.bf16.gmra.mrb[80].mxu1 %vm196_vm0, %v7045_v45  ;;  %1182 = vmatprep.mubr.bf16.mxu0 %v10788_v1 }
  0xbc   :  { %1295 = vmatprep.mubr.bf16.mxu1 %v10788_v1 }
  0xc2   :  { %5918 = vmatmul.mubr.msk.bf16.gmra.mrb[84].mxu0 %vm196_vm0, %v7046_v46 }
  0xc3   :  { %5926 = vmatmul.mubr.msk.bf16.gmra.mrb[84].mxu1 %vm196_vm0, %v7046_v46  ;;  %1192 = vmatprep.mubr.bf16.mxu0 %v10788_v1 }
  0xc4   :  { %1305 = vmatprep.mubr.bf16.mxu1 %v10788_v1 }
  0xca   :  { %5919 = vmatmul.mubr.msk.bf16.gmra.mrb[88].mxu0 %vm196_vm0, %v7047_v47 }
  0xcb   :  { %5927 = vmatmul.mubr.msk.bf16.gmra.mrb[88].mxu1 %vm196_vm0, %v7047_v47  ;;  %1202 = vmatprep.mubr.bf16.mxu0 %v10788_v1  ;;  %v7074_v47 = vld [vmem:[%s10782_s7 + $0x130] ss:$8 sps:$4 sm:$0xff]  }
  0xcc   :  { %1315 = vmatprep.mubr.bf16.mxu1 %v10788_v1 }
  0xd2   :  { %5920 = vmatmul.mubr.msk.bf16.gmra.mrb[92].mxu0 %vm196_vm0, %v7048_v48 }
  0xd3   :  { %5928 = vmatmul.mubr.msk.bf16.gmra.mrb[92].mxu1 %vm196_vm0, %v7048_v48  ;;  %1454 = vmatprep.mubr.bf16.mxu0 %v10788_v1  ;;  %v7077_v48 = vld [vmem:[%s10782_s7 + $0x430] ss:$8 sps:$4 sm:$0xff]  }
  0xd4   :  { %1599 = vmatprep.mubr.bf16.mxu1 %v10788_v1 }
  0xda   :  { %5937 = vmatmul.mubr.msk.bf16.vlgmr.msra.gmra.mrb[96].mxu0 %vm196_vm0, %v7049_v49 }
  0xdb   :  { %5945 = vmatmul.mubr.msk.bf16.vlgmr.msra.gmra.mrb[96].mxu1 %vm196_vm0, %v7049_v49  ;;  %1464 = vmatprep.mubr.bf16.mxu0 %v10788_v1  ;;  %v7119_v49 = vld [vmem:[%s10782_s7 + $0x4a0] ss:$8 sps:$4 sm:$0xff]  }
  0xdc   :  { %1609 = vmatprep.mubr.bf16.mxu1 %v10788_v1  ;;  %2102 = vmatpush1.bf16.msra.mxu0 %v7056_v11  ;;  %v7088_v11 = vld [vmem:[%s10782_s7 + $0x154] ss:$8 sps:$4 sm:$0xff]  }
  0xdd   :  { %3036 = vmatpush1.bf16.msra.mxu1 %v7059_v14  ;;  %2103 = vmatprep.subr.bf16.mxu0 %v7064_v21  ;;  %v7086_v21 = vld [vmem:[%s10782_s7 + $0x150] ss:$8 sps:$4 sm:$0xff]  }
  0xde   :  { %3037 = vmatprep.subr.bf16.mxu1 %v7067_v22  ;;  %v7089_v22 = vld [vmem:[%s10782_s7 + $0x450] ss:$8 sps:$4 sm:$0xff]  }
  0xe0   :  { %2104 = vmatpush1.bf16.msra.mxu0 %v7062_v26  ;;  %v7104_v26 = vld [vmem:[%s10782_s7 + $0x180] ss:$8 sps:$4 sm:$0xff]  }
  0xe1   :  { %3038 = vmatpush1.bf16.msra.mxu1 %v7065_v27  ;;  %2105 = vmatprep.subr.bf16.mxu0 %v7070_v32 }
  0xe2   :  { %5938 = vmatmul.mubr.msk.bf16.gmra.mrb[100].mxu0 %vm196_vm0, %v7050_v50  ;;  %3039 = vmatprep.subr.bf16.mxu1 %v7073_v35  ;;  %v7092_v35 = vld [vmem:[%s10782_s7 + $0x160] ss:$8 sps:$4 sm:$0xff]  }
  0xe3   :  { %5946 = vmatmul.mubr.msk.bf16.gmra.mrb[100].mxu1 %vm196_vm0, %v7050_v50  ;;  %1474 = vmatprep.mubr.bf16.mxu0 %v10788_v1 }
  0xe4   :  { %1619 = vmatprep.mubr.bf16.mxu1 %v10788_v1  ;;  %2106 = vmatpush1.bf16.msra.mxu0 %v7068_v33  ;;  %v7106_v33 = vld [vmem:[%s10782_s7 + $0x184] ss:$8 sps:$4 sm:$0xff]  }
  0xe5   :  { %3040 = vmatpush1.bf16.msra.mxu1 %v7071_v34  ;;  %2107 = vmatprep.subr.bf16.mxu0 %v7076_v42  ;;  %v7094_v34 = vld [vmem:[%s10782_s7 + $0x164] ss:$8 sps:$4 sm:$0xff]  }
  0xe6   :  { %3041 = vmatprep.subr.bf16.mxu1 %v7079_v43  ;;  %v7097_v42 = vld [vmem:[%s10782_s7 + $0x464] ss:$8 sps:$4 sm:$0xff]  }
  0xe8   :  { %2108 = vmatpush1.bf16.msra.mxu0 %v7074_v47 }
  0xe9   :  { %3042 = vmatpush1.bf16.msra.mxu1 %v7077_v48 }
  0xea   :  { %5939 = vmatmul.mubr.msk.bf16.gmra.mrb[104].mxu0 %vm196_vm0, %v7051_v51 }
  0xeb   :  { %5947 = vmatmul.mubr.msk.bf16.gmra.mrb[104].mxu1 %vm196_vm0, %v7051_v51  ;;  %1484 = vmatprep.mubr.bf16.mxu0 %v10788_v1 }
  0xec   :  { %1629 = vmatprep.mubr.bf16.mxu1 %v10788_v1 }
  0xed   :  { %v255_v52 = vpop.f32.mrb[0].mxu0 }
  0xee   :  { %v428_v53 = vpop.f32.mrb[0].mxu1  ;;  %v257_v54 = vpop.f32.mrb[1].mxu0  ;;  %v7113_v52 = vld [vmem:[%s10782_s7 + $0x490] ss:$8 sps:$4 sm:$0xff]  }
  0xef   :  { %v430_v55 = vpop.f32.mrb[1].mxu1  ;;  %v259_v57 = vpop.f32.mrb[2].mxu0  ;;  %v7082_v53 = vld [vmem:[%s10782_s7 + $0x144] ss:$8 sps:$4 sm:$0xff]   ;;  %v7080_v54 = vld [vmem:[%s10782_s7 + $0x140] ss:$8 sps:$4 sm:$0xff]  }
  0xf0   :  { %v432_v58 = vpop.f32.mrb[2].mxu1  ;;  %v261_v59 = vpop.f32.mrb[3].mxu0  ;;  %v7083_v55 = vld [vmem:[%s10782_s7 + $0x440] ss:$8 sps:$4 sm:$0xff]   ;;  %2109 = vmatprep.subr.bf16.mxu0 %v7082_v53 }
  0xf1   :  { %v434_v60 = vpop.f32.mrb[3].mxu1  ;;  %2110 = vmatpush1.bf16.msra.mxu0 %v7080_v54  ;;  %v7112_v59 = vld [vmem:[%s10782_s7 + $0x194] ss:$8 sps:$4 sm:$0xff]  }
  0xf2   :  { %5940 = vmatmul.mubr.msk.bf16.gmra.mrb[108].mxu0 %vm196_vm0, %v7052_v56  ;;  %2111 = vmatprep.subr.bf16.mxu0 %v7088_v11 }
  0xf3   :  { %5948 = vmatmul.mubr.msk.bf16.gmra.mrb[108].mxu1 %vm196_vm0, %v7052_v56  ;;  %1494 = vmatprep.mubr.bf16.mxu0 %v10788_v1  ;;  %v7085_v56 = vld [vmem:[%s10782_s7 + $0x444] ss:$8 sps:$4 sm:$0xff]  }
  0xf4   :  { %1639 = vmatprep.mubr.bf16.mxu1 %v10788_v1  ;;  %3043 = vmatprep.subr.bf16.mxu1 %v7085_v56  ;;  %v7103_v56 = vld [vmem:[%s10782_s7 + $0x474] ss:$8 sps:$4 sm:$0xff]  }
  0xf5   :  { %v8014_v61 = vpop.f32.mrb[4].mxu0  ;;  %3044 = vmatpush1.bf16.msra.mxu1 %v7083_v55  ;;  %2112 = vmatpush1.bf16.msra.mxu0 %v7086_v21  ;;  %v7100_v55 = vld [vmem:[%s10782_s7 + $0x174] ss:$8 sps:$4 sm:$0xff]  }
  0xf6   :  { %v8016_v62 = vpop.f32.mrb[4].mxu1  ;;  %v8020_v0 = vpop.f32.mrb[5].mxu0  ;;  %3045 = vmatprep.subr.bf16.mxu1 %v7091_v12  ;;  %2113 = vmatprep.subr.bf16.mxu0 %v7094_v34  ;;  %v7101_v34 = vld [vmem:[%s10782_s7 + $0x470] ss:$8 sps:$4 sm:$0xff]  }
  0xf7   :  { %v8022_v2 = vpop.f32.mrb[5].mxu1  ;;  %v8029_v5 = vpop.f32.mrb[6].mxu0 }
  0xf8   :  { %v8031_v6 = vpop.f32.mrb[6].mxu1  ;;  %v8035_v8 = vpop.f32.mrb[7].mxu0 }
  0xf9   :  { %v8037_v9 = vpop.f32.mrb[7].mxu1  ;;  %3046 = vmatpush1.bf16.msra.mxu1 %v7089_v22  ;;  %v7098_v22 = vld [vmem:[%s10782_s7 + $0x170] ss:$8 sps:$4 sm:$0xff]   ;;  %2114 = vmatpush1.bf16.msra.mxu0 %v7092_v35  ;;  %v7109_v35 = vld [vmem:[%s10782_s7 + $0x484] ss:$8 sps:$4 sm:$0xff]  }
  0xfa   :  { %5941 = vmatmul.mubr.msk.bf16.gmra.mrb[112].mxu0 %vm196_vm0, %v7053_v3  ;;  %3047 = vmatprep.subr.bf16.mxu1 %v7097_v42  ;;  %v7107_v42 = vld [vmem:[%s10782_s7 + $0x480] ss:$8 sps:$4 sm:$0xff]  }
  0xfb   :  { %5949 = vmatmul.mubr.msk.bf16.gmra.mrb[112].mxu1 %vm196_vm0, %v7053_v3  ;;  %1504 = vmatprep.mubr.bf16.mxu0 %v10788_v1 }
  0xfc   :  { %1649 = vmatprep.mubr.bf16.mxu1 %v10788_v1  ;;  %2115 = vmatprep.subr.bf16.mxu0 %v7100_v55 }
  0xfd   :  { %v8060_v16 = vpop.f32.mrb[8].mxu0  ;;  %2116 = vmatpush1.bf16.msra.mxu0 %v7098_v22  ;;  %v7115_v22 = vld [vmem:[%s10782_s7 + $0x494] ss:$8 sps:$4 sm:$0xff]  }
  0xfe   :  { %v8062_v17 = vpop.f32.mrb[8].mxu1  ;;  %v8066_v19 = vpop.f32.mrb[9].mxu0  ;;  %2117 = vmatprep.subr.bf16.mxu0 %v7106_v33 }
  0xff   :  { %v8068_v20 = vpop.f32.mrb[9].mxu1  ;;  %v8078_v24 = vpop.f32.mrb[10].mxu0 }
 0x100   :  { %v8080_v25 = vpop.f32.mrb[10].mxu1  ;;  %v8090_v29 = vpop.f32.mrb[11].mxu0 }
 0x101   :  { %v8092_v30 = vpop.f32.mrb[11].mxu1  ;;  %2118 = vmatpush1.bf16.msra.mxu0 %v7104_v26  ;;  %v7121_v26 = vld [vmem:[%s10782_s7 + $0x4a4] ss:$8 sps:$4 sm:$0xff]  }
 0x102   :  { %5942 = vmatmul.mubr.msk.bf16.gmra.mrb[116].mxu0 %vm196_vm0, %v7054_v13  ;;  %2119 = vmatprep.subr.bf16.mxu0 %v7112_v59 }
 0x103   :  { %5950 = vmatmul.mubr.msk.bf16.gmra.mrb[116].mxu1 %vm196_vm0, %v7054_v13  ;;  %1514 = vmatprep.mubr.bf16.mxu0 %v10788_v1 }
 0x104   :  { %1659 = vmatprep.mubr.bf16.mxu1 %v10788_v1 }
 0x105   :  { %v8115_v37 = vpop.f32.mrb[12].mxu0 }
 0x106   :  { %v8117_v38 = vpop.f32.mrb[12].mxu1  ;;  %v8121_v40 = vpop.f32.mrb[13].mxu0 }
 0x107   :  { %v8123_v41 = vpop.f32.mrb[13].mxu1  ;;  %v8133_v45 = vpop.f32.mrb[14].mxu0 }
 0x108   :  { %v8135_v46 = vpop.f32.mrb[14].mxu1  ;;  %v8145_v50 = vpop.f32.mrb[15].mxu0 }
 0x109   :  { %v8147_v51 = vpop.f32.mrb[15].mxu1 }
 0x10a   :  { %5943 = vmatmul.mubr.msk.bf16.gmra.mrb[120].mxu0 %vm196_vm0, %v7055_v36 }
 0x10b   :  { %5951 = vmatmul.mubr.msk.bf16.gmra.mrb[120].mxu1 %vm196_vm0, %v7055_v36  ;;  %1524 = vmatprep.mubr.bf16.mxu0 %v10788_v1  ;;  %v7095_v36 = vld [vmem:[%s10782_s7 + $0x460] ss:$8 sps:$4 sm:$0xff]  }
 0x10c   :  { %1669 = vmatprep.mubr.bf16.mxu1 %v10788_v1  ;;  %3048 = vmatpush1.bf16.msra.mxu1 %v7095_v36 }
 0x10d   :  { %v8167_v57 = vpop.f32.mrb[16].mxu0  ;;  %3049 = vmatprep.subr.bf16.mxu1 %v7103_v56  ;;  %v7110_v56 = vld [vmem:[%s10782_s7 + $0x190] ss:$8 sps:$4 sm:$0xff]  }
 0x10e   :  { %v8169_v58 = vpop.f32.mrb[16].mxu1  ;;  %v8173_v60 = vpop.f32.mrb[17].mxu0  ;;  %2120 = vmatpush1.bf16.msra.mxu0 %v7110_v56  ;;  %v7125_v56 = vld [vmem:[%s10782_s7 + $0x4b0] ss:$8 sps:$4 sm:$0xff]  }
 0x10f   :  { %v8175_v3 = vpop.f32.mrb[17].mxu1  ;;  %v8185_v14 = vpop.f32.mrb[18].mxu0  ;;  %2121 = vmatprep.subr.bf16.mxu0 %v7118_v31 }
 0x110   :  { %v8187_v15 = vpop.f32.mrb[18].mxu1  ;;  %v8197_v27 = vpop.f32.mrb[19].mxu0  ;;  %3050 = vmatpush1.bf16.msra.mxu1 %v7101_v34 }
 0x111   :  { %v8199_v32 = vpop.f32.mrb[19].mxu1  ;;  %3051 = vmatprep.subr.bf16.mxu1 %v7109_v35 }
 0x112   :  { %2122 = vmatpush1.bf16.msra.mxu0 %v7116_v28  ;;  %v7133_v28 = vld [vmem:[%s10782_s7 + $0x4c4] ss:$8 sps:$4 sm:$0xff]  }
 0x113   :  { %2123 = vmatprep.subr.bf16.mxu0 %v7124_v18 }
 0x114   :  { %3052 = vmatpush1.bf16.msra.mxu1 %v7107_v42 }
 0x115   :  { %v8215_v43 = vpop.f32.mrb[20].mxu0  ;;  %3053 = vmatprep.subr.bf16.mxu1 %v7115_v22  ;;  %v7130_v22 = vld [vmem:[%s10782_s7 + $0x1c4] ss:$8 sps:$4 sm:$0xff]  }
 0x116   :  { %v8217_v47 = vpop.f32.mrb[20].mxu1  ;;  %v8221_v53 = vpop.f32.mrb[21].mxu0  ;;  %2124 = vmatpush1.bf16.msra.mxu0 %v7122_v4  ;;  %v7134_v4 = vld [vmem:[%s10782_s7 + $0x1d0] ss:$8 sps:$4 sm:$0xff]  }
 0x117   :  { %v8223_v54 = vpop.f32.mrb[21].mxu1  ;;  %v8233_v12 = vpop.f32.mrb[22].mxu0  ;;  %2125 = vmatprep.subr.bf16.mxu0 %v7130_v22  ;;  %v7140_v22 = vld [vmem:[%s10781_s3 + $0x38] sm:$0xff]  }
 0x118   :  { %v8235_v21 = vpop.f32.mrb[22].mxu1  ;;  %v8245_v1 = vpop.f32.mrb[23].mxu0  ;;  %3054 = vmatpush1.bf16.msra.mxu1 %v7113_v52  ;;  %v7127_v52 = vld [vmem:[%s10782_s7 + $0x4b4] ss:$8 sps:$4 sm:$0xff]   ;;  %5944 = vmatmul.mubr.msk.bf16.gmra.mrb[124].mxu0 %vm196_vm0, %v7140_v22 }
 0x119   :  { %v8247_v48 = vpop.f32.mrb[23].mxu1  ;;  %3055 = vmatprep.subr.bf16.mxu1 %v7121_v26  ;;  %5952 = vmatmul.mubr.msk.bf16.gmra.mrb[124].mxu1 %vm196_vm0, %v7140_v22 }
 0x11c   :  { %3056 = vmatpush1.bf16.msra.mxu1 %v7119_v49  ;;  %v7128_v49 = vld [vmem:[%s10782_s7 + $0x1c0] ss:$8 sps:$4 sm:$0xff]  }
 0x11d   :  { %v8263_v36 = vpop.f32.mrb[24].mxu0  ;;  %3057 = vmatprep.subr.bf16.mxu1 %v7127_v52  ;;  %2126 = vmatpush1.bf16.msra.mxu0 %v7128_v49 }
 0x11e   :  { %v8265_v55 = vpop.f32.mrb[24].mxu1  ;;  %v8269_v11 = vpop.f32.mrb[25].mxu0 }
 0x11f   :  { %v8271_v13 = vpop.f32.mrb[25].mxu1  ;;  %v8281_v33 = vpop.f32.mrb[26].mxu0 }
 0x120   :  { %10932 = vst [vmem:[#allocation4_spill] sm:$0xff] %v8281_v33  ;;  %v8283_v35 = vpop.f32.mrb[26].mxu1  ;;  %v8293_v44 = vpop.f32.mrb[27].mxu0  ;;  %3058 = vmatpush1.bf16.msra.mxu1 %v7125_v56  ;;  %v7143_v56 = vld [vmem:[%s10782_s7 + $0x1e4] ss:$8 sps:$4 sm:$0xff]  }
 0x121   :  { %10933 = vst [vmem:[#allocation5_spill] sm:$0xff] %v8283_v35  ;;  %10934 = vst [vmem:[#allocation6_spill] sm:$0xff] %v8293_v44  ;;  %v8295_v39 = vpop.f32.mrb[27].mxu1  ;;  %3059 = vmatprep.subr.bf16.mxu1 %v7133_v28  ;;  %v10948_v35 = vmax.f32 %v8029_v5, %v8031_v6  ;;  %v7158_v5 = vld [vmem:[%s10782_s7 + $0x304] ss:$8 sps:$4 sm:$0xff]  }
 0x122   :  { %10935 = vst [vmem:[#allocation7_spill] sm:$0xff] %v8295_v39  ;;  %v7149_v39 = vld [vmem:[%s10782_s7 + $0x1f4] ss:$8 sps:$4 sm:$0xff]  }
 0x125   :  { %v8311_v59 = vpop.f32.mrb[28].mxu0 }
 0x126   :  { %10936 = vst [vmem:[#allocation8_spill] sm:$0xff] %v8311_v59  ;;  %v8313_v42 = vpop.f32.mrb[28].mxu1  ;;  %v8317_v34 = vpop.f32.mrb[29].mxu0 }
 0x127   :  { %10937 = vst [vmem:[#allocation9_spill] sm:$0xff] %v8313_v42  ;;  %10938 = vst [vmem:[#allocation10_spill] sm:$0xff] %v8317_v34  ;;  %v8319_v23 = vpop.f32.mrb[29].mxu1  ;;  %v8329_v31 = vpop.f32.mrb[30].mxu0  ;;  %v7139_v34 = vld [vmem:[%s10782_s7 + $0x4d4] ss:$8 sps:$4 sm:$0xff]  }
 0x128   :  { %10939 = vst [vmem:[#allocation11_spill] sm:$0xff] %v8319_v23  ;;  %10940 = vst [vmem:[#allocation12_spill] sm:$0xff] %v8329_v31  ;;  %v8331_v26 = vpop.f32.mrb[30].mxu1  ;;  %v8335_v10 = vpop.f32.mrb[31].mxu0  ;;  %v894_v23 = vlaneseq  ;;  %v7136_v31 = vld [vmem:[%s10782_s7 + $0x1d4] ss:$8 sps:$4 sm:$0xff]  }
 0x129   :  { %10941 = vst [vmem:[#allocation13_spill] sm:$0xff] %v8331_v26  ;;  %10942 = vst [vmem:[#allocation14_spill] sm:$0xff] %v8335_v10  ;;  %v8337_v7 = vpop.f32.mrb[31].mxu1  ;;  %v7131_v26 = vld [vmem:[%s10782_s7 + $0x4c0] ss:$8 sps:$4 sm:$0xff]   ;;  %2127 = vmatprep.subr.bf16.mxu0 %v7136_v31 }
 0x12a   :  { %10943 = vst [vmem:[#allocation15_spill] sm:$0xff] %v8337_v7  ;;  %v8359_v63 = vshrl.u32 %v894_v23, 7  ;;  %v7137_v23 = vld [vmem:[%s10782_s7 + $0x4d0] ss:$8 sps:$4 sm:$0xff]   ;;  %3060 = vmatpush1.bf16.msra.mxu1 %v7131_v26  ;;  %v7146_v26 = vld [vmem:[%s10782_s7 + $0x4e4] ss:$8 sps:$4 sm:$0xff]   ;;  %2128 = vmatpush1.bf16.msra.mxu0 %v7134_v4 }
 0x12b   :  { %3061 = vmatprep.subr.bf16.mxu1 %v7139_v34  ;;  %v7141_v34 = vld [vmem:[%s10782_s7 + $0x1e0] ss:$8 sps:$4 sm:$0xff]   ;;  %2129 = vmatprep.subr.bf16.mxu0 %v7143_v56  ;;  %v7152_v4 = vld [vmem:[%s10782_s7 + $0x4f4] ss:$8 sps:$4 sm:$0xff]  }
 0x12c   :  { %10944 = vst [vmem:[#allocation16_spill] sm:$0xff] %v8359_v63  ;;  %v7144_v31 = vld [vmem:[%s10782_s7 + $0x4e0] ss:$8 sps:$4 sm:$0xff]  }
 0x12d   :  { %v637_v18 = vpop.f32.mrb[32].mxu0 }
 0x12e   :  { %v782_v52 = vpop.f32.mrb[32].mxu1  ;;  %v639_v7 = vpop.f32.mrb[33].mxu0  ;;  %3062 = vmatpush1.bf16.msra.mxu1 %v7137_v23  ;;  %v10946_v23 = vmax.f32 %v8020_v0, %v8022_v2  ;;  %2130 = vmatpush1.bf16.msra.mxu0 %v7141_v34 }
 0x12f   :  { %v784_v10 = vpop.f32.mrb[33].mxu1  ;;  %v641_v42 = vpop.f32.mrb[34].mxu0  ;;  %3063 = vmatprep.subr.bf16.mxu1 %v7146_v26  ;;  %v10945_v52 = vmax.f32 %v8014_v61, %v8016_v62  ;;  %v10947_v61 = vsub.s32 1, %v8359_v63  ;;  %2131 = vmatprep.subr.bf16.mxu0 %v7149_v39 }
 0x130   :  { %v786_v59 = vpop.f32.mrb[34].mxu1  ;;  %v643_v7 = vpop.f32.mrb[35].mxu0  ;;  %v10799_v42 = vsub.s32 0, %v8359_v63 }
 0x131   :  { %v788_v10 = vpop.f32.mrb[35].mxu1  ;;  %v63_v59 = vld [vmem:[%s10783_s6] sm:$0x3] }
 0x132   :  { %v8400_v10 = vrot.slane %v63_v59, %v10799_v42  ;;  %v8413_v62 = vrot.slane %v63_v59, %v10947_v61  ;;  %v7150_v42 = vld [vmem:[%s10782_s7 + $0x4f0] ss:$8 sps:$4 sm:$0xff]   ;;  %3064 = vmatpush1.bf16.msra.mxu1 %v7144_v31  ;;  %v10950_v31 = vmax.f32 %v8060_v16, %v8062_v17 }
 0x133   :  { %3065 = vmatprep.subr.bf16.mxu1 %v7152_v4 }
 0x135   :  { %v647_v49 = vpop.f32.mrb[36].mxu0 }
 0x136   :  { %v792_v18 = vpop.f32.mrb[36].mxu1  ;;  %v720_v7 = vmax.f32 %v10945_v52, %v647_v49  ;;  %v649_v22 = vpop.f32.mrb[37].mxu0  ;;  %v7147_v52 = vld [vmem:[%s10782_s7 + $0x1f0] ss:$8 sps:$4 sm:$0xff]   ;;  %3066 = vmatpush1.bf16.msra.mxu1 %v7150_v42 }
 0x137   :  { %v794_v28 = vpop.f32.mrb[37].mxu1  ;;  %v721_v56 = vmax.f32 %v10946_v23, %v649_v22  ;;  %v651_v26 = vpop.f32.mrb[38].mxu0  ;;  %v10949_v23 = vmax.f32 %v8035_v8, %v8037_v9  ;;  %2132 = vmatpush1.bf16.msra.mxu0 %v7147_v52  ;;  %3304 = vmatprep.subr.bf16.mxu1 %v7158_v5 }
 0x138   :  { %v796_v49 = vpop.f32.mrb[38].mxu1  ;;  %v865_v44 = vmax.f32 %v720_v7, %v792_v18  ;;  %v722_v0 = vmax.f32 %v10948_v35, %v651_v26  ;;  %v653_v2 = vpop.f32.mrb[39].mxu0  ;;  %v7155_v18 = vld [vmem:[%s10782_s7 + $0x4] ss:$8 sps:$4 sm:$0xff]  }
 0x139   :  { %v798_v22 = vpop.f32.mrb[39].mxu1  ;;  %v866_v59 = vmax.f32 %v721_v56, %v794_v28  ;;  %v723_v61 = vmax.f32 %v10949_v23, %v653_v2  ;;  %2370 = vmatprep.subr.bf16.mxu0 %v7155_v18  ;;  %v10955_v18 = vmax.f32 %v8090_v29, %v8092_v30 }
 0x13a   :  { %v908_v63 = vadd.f32 %v8400_v10, %v865_v44  ;;  %v867_v33 = vmax.f32 %v722_v0, %v796_v49 }
 0x13b   :  { %v909_v6 = vadd.f32 %v8413_v62, %v866_v59  ;;  %v868_v35 = vmax.f32 %v723_v61, %v798_v22 }
 0x13c   :  { %v910_v28 = vadd.f32 %v8400_v10, %v867_v33  ;;  %v940_v44 = vmax.f32 %v908_v63, 0.0  ;;  %v10951_v33 = vmax.f32 %v8066_v19, %v8068_v20  ;;  %v10953_v63 = vmax.f32 %v8078_v24, %v8080_v25 }
 0x13d   :  { %v911_v8 = vadd.f32 %v8413_v62, %v868_v35  ;;  %v657_v9 = vpop.f32.mrb[40].mxu0  ;;  %v941_v26 = vmax.f32 %v909_v6, 0.0 }
 0x13e   :  { %v802_v39 = vpop.f32.mrb[40].mxu1  ;;  %v942_v34 = vmax.f32 %v910_v28, 0.0  ;;  %v724_v7 = vmax.f32 %v10950_v31, %v657_v9  ;;  %v659_v4 = vpop.f32.mrb[41].mxu0 }
 0x13f   :  { %v804_v56 = vpop.f32.mrb[41].mxu1  ;;  %v943_v49 = vmax.f32 %v911_v8, 0.0  ;;  %v725_v42 = vmax.f32 %v10951_v33, %v659_v4  ;;  %v661_v52 = vpop.f32.mrb[42].mxu0  ;;  %v10957_v4 = vmax.f32 %v8121_v40, %v8123_v41 }
 0x140   :  { %v806_v0 = vpop.f32.mrb[42].mxu1  ;;  %v8443_v2 = vpack.c.bf16 %v942_v34, %v940_v44  ;;  %v869_v22 = vmax.f32 %v724_v7, %v802_v39  ;;  %v726_v59 = vmax.f32 %v10953_v63, %v661_v52  ;;  %v663_v23 = vpop.f32.mrb[43].mxu0  ;;  %v10956_v44 = vmax.f32 %v8115_v37, %v8117_v38 }
 0x141   :  { %v808_v16 = vpop.f32.mrb[43].mxu1  ;;  %v8448_v17 = vpack.c.bf16 %v943_v49, %v941_v26  ;;  %v870_v61 = vmax.f32 %v725_v42, %v804_v56  ;;  %v727_v5 = vmax.f32 %v10955_v18, %v663_v23  ;;  %v10959_v52 = vmax.f32 %v8133_v45, %v8135_v46 }
 0x142   :  { %10952 = vst [vmem:[#allocation17_spill] sm:$0xff] %v8443_v2  ;;  %v912_v19 = vadd.f32 %v8400_v10, %v869_v22  ;;  %v871_v20 = vmax.f32 %v726_v59, %v806_v0  ;;  %v10961_v59 = vmax.f32 %v8145_v50, %v8147_v51 }
 0x143   :  { %10954 = vst [vmem:[#allocation18_spill] sm:$0xff] %v8448_v17  ;;  %v913_v6 = vadd.f32 %v8413_v62, %v870_v61  ;;  %v872_v35 = vmax.f32 %v727_v5, %v808_v16 }
 0x144   :  { %v914_v28 = vadd.f32 %v8400_v10, %v871_v20  ;;  %v944_v9 = vmax.f32 %v912_v19, 0.0 }
 0x145   :  { %v915_v24 = vadd.f32 %v8413_v62, %v872_v35  ;;  %v667_v25 = vpop.f32.mrb[44].mxu0  ;;  %v945_v31 = vmax.f32 %v913_v6, 0.0  ;;  %v10962_v6 = vmax.f32 %v8167_v57, %v8169_v58 }
 0x146   :  { %v812_v8 = vpop.f32.mrb[44].mxu1  ;;  %v946_v39 = vmax.f32 %v914_v28, 0.0  ;;  %v728_v34 = vmax.f32 %v10956_v44, %v667_v25  ;;  %v669_v29 = vpop.f32.mrb[45].mxu0  ;;  %v10963_v25 = vmax.f32 %v8173_v60, %v8175_v3 }
 0x147   :  { %v814_v30 = vpop.f32.mrb[45].mxu1  ;;  %v947_v7 = vmax.f32 %v915_v24, 0.0  ;;  %v729_v56 = vmax.f32 %v10957_v4, %v669_v29  ;;  %v671_v26 = vpop.f32.mrb[46].mxu0  ;;  %v10965_v29 = vmax.f32 %v8185_v14, %v8187_v15  ;;  %v10967_v4 = vmax.f32 %v8197_v27, %v8199_v32 }
 0x148   :  { %v816_v49 = vpop.f32.mrb[46].mxu1  ;;  %v8463_v33 = vpack.c.bf16 %v946_v39, %v944_v9  ;;  %v873_v42 = vmax.f32 %v728_v34, %v812_v8  ;;  %v730_v0 = vmax.f32 %v10959_v52, %v671_v26  ;;  %v673_v22 = vpop.f32.mrb[47].mxu0 }
 0x149   :  { %v818_v37 = vpop.f32.mrb[47].mxu1  ;;  %v8468_v38 = vpack.c.bf16 %v947_v7, %v945_v31  ;;  %v874_v63 = vmax.f32 %v729_v56, %v814_v30  ;;  %v731_v23 = vmax.f32 %v10961_v59, %v673_v22 }
 0x14a   :  { %10958 = vst [vmem:[#allocation19_spill] sm:$0xff] %v8463_v33  ;;  %v916_v40 = vadd.f32 %v8400_v10, %v873_v42  ;;  %v875_v41 = vmax.f32 %v730_v0, %v816_v49 }
 0x14b   :  { %10960 = vst [vmem:[#allocation20_spill] sm:$0xff] %v8468_v38  ;;  %v917_v16 = vadd.f32 %v8413_v62, %v874_v63  ;;  %v876_v61 = vmax.f32 %v731_v23, %v818_v37  ;;  %v10968_v37 = vmax.f32 %v8215_v43, %v8217_v47 }
 0x14c   :  { %v918_v18 = vadd.f32 %v8400_v10, %v875_v41  ;;  %v948_v19 = vmax.f32 %v916_v40, 0.0  ;;  %v10969_v40 = vmax.f32 %v8221_v53, %v8223_v54 }
 0x14d   :  { %v919_v45 = vadd.f32 %v8413_v62, %v876_v61  ;;  %v677_v46 = vpop.f32.mrb[48].mxu0  ;;  %v949_v28 = vmax.f32 %v917_v16, 0.0 }
 0x14e   :  { %v822_v5 = vpop.f32.mrb[48].mxu1  ;;  %v950_v20 = vmax.f32 %v918_v18, 0.0  ;;  %v732_v35 = vmax.f32 %v10962_v6, %v677_v46  ;;  %v679_v50 = vpop.f32.mrb[49].mxu0  ;;  %v10971_v46 = vmax.f32 %v8233_v12, %v8235_v21  ;;  %v10973_v6 = vmax.f32 %v8245_v1, %v8247_v48 }
 0x14f   :  { %v824_v51 = vpop.f32.mrb[49].mxu1  ;;  %v951_v24 = vmax.f32 %v919_v45, 0.0  ;;  %v733_v8 = vmax.f32 %v10963_v25, %v679_v50  ;;  %v681_v9 = vpop.f32.mrb[50].mxu0 }
 0x150   :  { %v826_v39 = vpop.f32.mrb[50].mxu1  ;;  %v8483_v44 = vpack.c.bf16 %v950_v20, %v948_v19  ;;  %v877_v34 = vmax.f32 %v732_v35, %v822_v5  ;;  %v734_v30 = vmax.f32 %v10965_v29, %v681_v9  ;;  %v683_v31 = vpop.f32.mrb[51].mxu0  ;;  %v10974_v9 = vmax.f32 %v8263_v36, %v8265_v55 }
 0x151   :  { %v828_v57 = vpop.f32.mrb[51].mxu1  ;;  %v8488_v58 = vpack.c.bf16 %v951_v24, %v949_v28  ;;  %v878_v7 = vmax.f32 %v733_v8, %v824_v51  ;;  %v735_v56 = vmax.f32 %v10967_v4, %v683_v31 }
 0x152   :  { %10964 = vst [vmem:[#allocation21_spill] sm:$0xff] %v8483_v44  ;;  %v920_v60 = vadd.f32 %v8400_v10, %v877_v34  ;;  %v879_v3 = vmax.f32 %v734_v30, %v826_v39  ;;  %v10975_v30 = vmax.f32 %v8269_v11, %v8271_v13 }
 0x153   :  { %10966 = vst [vmem:[#allocation22_spill] sm:$0xff] %v8488_v58  ;;  %v921_v26 = vadd.f32 %v8413_v62, %v878_v7  ;;  %v880_v49 = vmax.f32 %v735_v56, %v828_v57 }
 0x154   :  { %v922_v42 = vadd.f32 %v8400_v10, %v879_v3  ;;  %v952_v0 = vmax.f32 %v920_v60, 0.0  ;;  %v10977_v60 = vld [vmem:[#allocation4_spill] sm:$0xff]  ;;  %v10978_v3 = vld [vmem:[#allocation5_spill] sm:$0xff] }
 0x155   :  { %v923_v14 = vadd.f32 %v8413_v62, %v880_v49  ;;  %v687_v15 = vpop.f32.mrb[52].mxu0  ;;  %v953_v59 = vmax.f32 %v921_v26, 0.0  ;;  %v10979_v26 = vmax.f32 %v10977_v60, %v10978_v3 }
 0x156   :  { %v832_v52 = vpop.f32.mrb[52].mxu1  ;;  %v954_v22 = vmax.f32 %v922_v42, 0.0  ;;  %v736_v63 = vmax.f32 %v10968_v37, %v687_v15  ;;  %v689_v27 = vpop.f32.mrb[53].mxu0  ;;  %v10981_v15 = vld [vmem:[#allocation6_spill] sm:$0xff] }
 0x157   :  { %v834_v32 = vpop.f32.mrb[53].mxu1  ;;  %v955_v23 = vmax.f32 %v923_v14, 0.0  ;;  %v737_v41 = vmax.f32 %v10969_v40, %v689_v27  ;;  %v691_v16 = vpop.f32.mrb[54].mxu0 }
 0x158   :  { %v836_v61 = vpop.f32.mrb[54].mxu1  ;;  %v8503_v18 = vpack.c.bf16 %v954_v22, %v952_v0  ;;  %v881_v45 = vmax.f32 %v736_v63, %v832_v52  ;;  %v738_v5 = vmax.f32 %v10971_v46, %v691_v16  ;;  %v693_v19 = vpop.f32.mrb[55].mxu0  ;;  %v10982_v52 = vld [vmem:[#allocation7_spill] sm:$0xff]  ;;  %v10984_v16 = vld [vmem:[#allocation8_spill] sm:$0xff] }
 0x159   :  { %v838_v43 = vpop.f32.mrb[55].mxu1  ;;  %v8508_v47 = vpack.c.bf16 %v955_v23, %v953_v59  ;;  %v882_v20 = vmax.f32 %v737_v41, %v834_v32  ;;  %v739_v35 = vmax.f32 %v10973_v6, %v693_v19  ;;  %v10983_v0 = vmax.f32 %v10981_v15, %v10982_v52  ;;  %v10987_v6 = vld [vmem:[#allocation10_spill] sm:$0xff] }
 0x15a   :  { %10970 = vst [vmem:[#allocation23_spill] sm:$0xff] %v8503_v18  ;;  %v924_v53 = vadd.f32 %v8400_v10, %v881_v45  ;;  %v883_v54 = vmax.f32 %v738_v5, %v836_v61  ;;  %v10985_v61 = vld [vmem:[#allocation9_spill] sm:$0xff] }
 0x15b   :  { %10972 = vst [vmem:[#allocation24_spill] sm:$0xff] %v8508_v47  ;;  %v925_v50 = vadd.f32 %v8413_v62, %v882_v20  ;;  %v884_v51 = vmax.f32 %v739_v35, %v838_v43  ;;  %v10986_v45 = vmax.f32 %v10984_v16, %v10985_v61  ;;  %v10988_v35 = vld [vmem:[#allocation11_spill] sm:$0xff] }
 0x15c   :  { %v926_v28 = vadd.f32 %v8400_v10, %v883_v54  ;;  %v956_v25 = vmax.f32 %v924_v53, 0.0  ;;  %v10989_v53 = vmax.f32 %v10987_v6, %v10988_v35 }
 0x15d   :  { %v927_v12 = vadd.f32 %v8413_v62, %v884_v51  ;;  %v697_v21 = vpop.f32.mrb[56].mxu0  ;;  %v957_v34 = vmax.f32 %v925_v50, 0.0 }
 0x15e   :  { %v842_v24 = vpop.f32.mrb[56].mxu1  ;;  %v958_v8 = vmax.f32 %v926_v28, 0.0  ;;  %v740_v39 = vmax.f32 %v10974_v9, %v697_v21  ;;  %v699_v1 = vpop.f32.mrb[57].mxu0  ;;  %v10991_v21 = vld [vmem:[#allocation12_spill] sm:$0xff] }
 0x15f   :  { %v844_v48 = vpop.f32.mrb[57].mxu1  ;;  %v959_v29 = vmax.f32 %v927_v12, 0.0  ;;  %v741_v31 = vmax.f32 %v10975_v30, %v699_v1  ;;  %v701_v57 = vpop.f32.mrb[58].mxu0 }
 0x160   :  { %v846_v7 = vpop.f32.mrb[58].mxu1  ;;  %v8523_v4 = vpack.c.bf16 %v958_v8, %v956_v25  ;;  %v885_v56 = vmax.f32 %v740_v39, %v842_v24  ;;  %v742_v49 = vmax.f32 %v10979_v26, %v701_v57  ;;  %v703_v42 = vpop.f32.mrb[59].mxu0  ;;  %v10992_v24 = vld [vmem:[#allocation13_spill] sm:$0xff] }
 0x161   :  { %v848_v36 = vpop.f32.mrb[59].mxu1  ;;  %v8528_v55 = vpack.c.bf16 %v959_v29, %v957_v34  ;;  %v886_v14 = vmax.f32 %v741_v31, %v844_v48  ;;  %v743_v22 = vmax.f32 %v10983_v0, %v703_v42  ;;  %v10993_v25 = vmax.f32 %v10991_v21, %v10992_v24  ;;  %v10995_v34 = vld [vmem:[#allocation14_spill] sm:$0xff]  ;;  %v10996_v29 = vld [vmem:[#allocation15_spill] sm:$0xff] }
 0x162   :  { %10976 = vst [vmem:[#allocation25_spill] sm:$0xff] %v8523_v4  ;;  %v928_v13 = vadd.f32 %v8400_v10, %v885_v56  ;;  %v887_v11 = vmax.f32 %v742_v49, %v846_v7  ;;  %v10997_v30 = vmax.f32 %v10995_v34, %v10996_v29 }
 0x163   :  { %10980 = vst [vmem:[#allocation4_spill] sm:$0xff] %v8528_v55  ;;  %v929_v37 = vadd.f32 %v8413_v62, %v886_v14  ;;  %v888_v63 = vmax.f32 %v743_v22, %v848_v36 }
 0x164   :  { %v930_v27 = vadd.f32 %v8400_v10, %v887_v11  ;;  %v960_v40 = vmax.f32 %v928_v13, 0.0 }
 0x165   :  { %v931_v32 = vadd.f32 %v8413_v62, %v888_v63  ;;  %v707_v59 = vpop.f32.mrb[60].mxu0  ;;  %v961_v43 = vmax.f32 %v929_v37, 0.0 }
 0x166   :  { %v852_v23 = vpop.f32.mrb[60].mxu1  ;;  %v962_v41 = vmax.f32 %v930_v27, 0.0  ;;  %v744_v46 = vmax.f32 %v10986_v45, %v707_v59  ;;  %v709_v5 = vpop.f32.mrb[61].mxu0 }
 0x167   :  { %v854_v19 = vpop.f32.mrb[61].mxu1  ;;  %v963_v20 = vmax.f32 %v931_v32, 0.0  ;;  %v745_v54 = vmax.f32 %v10989_v53, %v709_v5  ;;  %v711_v50 = vpop.f32.mrb[62].mxu0 }
 0x168   :  { %v856_v51 = vpop.f32.mrb[62].mxu1  ;;  %v8543_v28 = vpack.c.bf16 %v962_v41, %v960_v40  ;;  %v889_v12 = vmax.f32 %v744_v46, %v852_v23  ;;  %v746_v8 = vmax.f32 %v10993_v25, %v711_v50  ;;  %v713_v9 = vpop.f32.mrb[63].mxu0 }
 0x169   :  { %v858_v39 = vpop.f32.mrb[63].mxu1  ;;  %v8548_v1 = vpack.c.bf16 %v963_v20, %v961_v43  ;;  %v890_v48 = vmax.f32 %v745_v54, %v854_v19  ;;  %v747_v31 = vmax.f32 %v10997_v30, %v713_v9 }
 0x16a   :  { %10990 = vst [vmem:[#allocation5_spill] sm:$0xff] %v8543_v28  ;;  %v932_v57 = vadd.f32 %v8400_v10, %v889_v12  ;;  %v891_v7 = vmax.f32 %v746_v8, %v856_v51 }
 0x16b   :  { %10994 = vst [vmem:[#allocation6_spill] sm:$0xff] %v8548_v1  ;;  %v933_v56 = vadd.f32 %v8413_v62, %v890_v48  ;;  %v892_v60 = vmax.f32 %v747_v31, %v858_v39 }
 0x16c   :  { %v934_v3 = vadd.f32 %v8400_v10, %v891_v7  ;;  %v964_v36 = vmax.f32 %v932_v57, 0.0 }
 0x16d   :  { %v935_v26 = vadd.f32 %v8413_v62, %v892_v60  ;;  %v8557_v49 = vpop.f32.mrb[64].mxu0  ;;  %v965_v22 = vmax.f32 %v933_v56, 0.0 }
 0x16e   :  { %v8559_v42 = vpop.f32.mrb[64].mxu1  ;;  %v966_v14 = vmax.f32 %v934_v3, 0.0  ;;  %v8563_v52 = vpop.f32.mrb[65].mxu0 }
 0x16f   :  { %v8565_v0 = vpop.f32.mrb[65].mxu1  ;;  %v967_v13 = vmax.f32 %v935_v26, 0.0  ;;  %v8569_v37 = vpop.f32.mrb[66].mxu0 }
 0x170   :  { %v8571_v63 = vpop.f32.mrb[66].mxu1  ;;  %v8573_v27 = vpack.c.bf16 %v966_v14, %v964_v36  ;;  %v8577_v59 = vpop.f32.mrb[67].mxu0  ;;  %v11010_v36 = vmax.f32 %v8557_v49, %v8559_v42 }
 0x171   :  { %v8579_v23 = vpop.f32.mrb[67].mxu1  ;;  %v8581_v40 = vpack.c.bf16 %v967_v13, %v965_v22 }
 0x172   :  { %10998 = vst [vmem:[#allocation7_spill] sm:$0xff] %v8573_v27  ;;  %v11013_v49 = vmax.f32 %v8577_v59, %v8579_v23 }
 0x173   :  { %10999 = vst [vmem:[#allocation8_spill] sm:$0xff] %v8581_v40 }
 0x175   :  { %v8585_v16 = vpop.f32.mrb[68].mxu0 }
 0x176   :  { %v8587_v61 = vpop.f32.mrb[68].mxu1  ;;  %v8591_v46 = vpop.f32.mrb[69].mxu0 }
 0x177   :  { %v8593_v5 = vpop.f32.mrb[69].mxu1  ;;  %v8597_v43 = vpop.f32.mrb[70].mxu0 }
 0x178   :  { %v8599_v20 = vpop.f32.mrb[70].mxu1  ;;  %v8603_v35 = vpop.f32.mrb[71].mxu0 }
 0x179   :  { %v8605_v53 = vpop.f32.mrb[71].mxu1 }
 0x17d   :  { %v8609_v50 = vpop.f32.mrb[72].mxu0 }
 0x17e   :  { %v8611_v51 = vpop.f32.mrb[72].mxu1  ;;  %v8615_v21 = vpop.f32.mrb[73].mxu0 }
 0x17f   :  { %v8617_v24 = vpop.f32.mrb[73].mxu1  ;;  %v8621_v8 = vpop.f32.mrb[74].mxu0 }
 0x180   :  { %v8623_v9 = vpop.f32.mrb[74].mxu1  ;;  %v8627_v48 = vpop.f32.mrb[75].mxu0 }
 0x181   :  { %v8629_v34 = vpop.f32.mrb[75].mxu1 }
 0x185   :  { %v8633_v30 = vpop.f32.mrb[76].mxu0 }
 0x186   :  { %v8635_v31 = vpop.f32.mrb[76].mxu1  ;;  %v8639_v7 = vpop.f32.mrb[77].mxu0 }
 0x187   :  { %v8641_v56 = vpop.f32.mrb[77].mxu1  ;;  %v8645_v3 = vpop.f32.mrb[78].mxu0 }
 0x188   :  { %v8647_v26 = vpop.f32.mrb[78].mxu1  ;;  %v8651_v14 = vpop.f32.mrb[79].mxu0 }
 0x189   :  { %v8653_v22 = vpop.f32.mrb[79].mxu1 }
 0x18d   :  { %v8657_v57 = vpop.f32.mrb[80].mxu0 }
 0x18e   :  { %v8659_v29 = vpop.f32.mrb[80].mxu1  ;;  %v8663_v39 = vpop.f32.mrb[81].mxu0 }
 0x18f   :  { %v8665_v25 = vpop.f32.mrb[81].mxu1  ;;  %v8669_v12 = vpop.f32.mrb[82].mxu0 }
 0x190   :  { %v8671_v54 = vpop.f32.mrb[82].mxu1  ;;  %v8675_v6 = vpop.f32.mrb[83].mxu0 }
 0x191   :  { %v8677_v19 = vpop.f32.mrb[83].mxu1 }
 0x195   :  { %v8681_v45 = vpop.f32.mrb[84].mxu0 }
 0x196   :  { %v8683_v41 = vpop.f32.mrb[84].mxu1  ;;  %v8687_v32 = vpop.f32.mrb[85].mxu0 }
 0x197   :  { %v8689_v11 = vpop.f32.mrb[85].mxu1  ;;  %v8693_v15 = vpop.f32.mrb[86].mxu0 }
 0x198   :  { %11000 = vst [vmem:[#allocation9_spill] sm:$0xff] %v8693_v15  ;;  %v8695_v27 = vpop.f32.mrb[86].mxu1  ;;  %v8699_v40 = vpop.f32.mrb[87].mxu0  ;;  %v11011_v15 = vmax.f32 %v8563_v52, %v8565_v0 }
 0x199   :  { %11001 = vst [vmem:[#allocation10_spill] sm:$0xff] %v8695_v27  ;;  %11002 = vst [vmem:[#allocation11_spill] sm:$0xff] %v8699_v40  ;;  %v8701_v28 = vpop.f32.mrb[87].mxu1 }
 0x19a   :  { %11003 = vst [vmem:[#allocation12_spill] sm:$0xff] %v8701_v28 }
 0x19d   :  { %v8705_v1 = vpop.f32.mrb[88].mxu0 }
 0x19e   :  { %11004 = vst [vmem:[#allocation13_spill] sm:$0xff] %v8705_v1  ;;  %v8707_v4 = vpop.f32.mrb[88].mxu1  ;;  %v8711_v55 = vpop.f32.mrb[89].mxu0 }
 0x19f   :  { %11005 = vst [vmem:[#allocation14_spill] sm:$0xff] %v8707_v4  ;;  %11006 = vst [vmem:[#allocation15_spill] sm:$0xff] %v8711_v55  ;;  %v8713_v18 = vpop.f32.mrb[89].mxu1  ;;  %v8717_v47 = vpop.f32.mrb[90].mxu0 }
 0x1a0   :  { %11007 = vst [vmem:[#allocation26_spill] sm:$0xff] %v8713_v18  ;;  %11008 = vst [vmem:[#allocation27_spill] sm:$0xff] %v8717_v47  ;;  %v8719_v44 = vpop.f32.mrb[90].mxu1  ;;  %v8723_v58 = vpop.f32.mrb[91].mxu0 }
 0x1a1   :  { %11009 = vst [vmem:[#allocation28_spill] sm:$0xff] %v8719_v44  ;;  %v8725_v33 = vpop.f32.mrb[91].mxu1 }
 0x1a5   :  { %v1204_v38 = vpop.f32.mrb[92].mxu0 }
 0x1a6   :  { %v1317_v2 = vpop.f32.mrb[92].mxu1  ;;  %v1206_v17 = vpop.f32.mrb[93].mxu0 }
 0x1a7   :  { %v1319_v4 = vpop.f32.mrb[93].mxu1  ;;  %v1208_v1 = vpop.f32.mrb[94].mxu0 }
 0x1a8   :  { %v1321_v60 = vpop.f32.mrb[94].mxu1  ;;  %v1210_v18 = vpop.f32.mrb[95].mxu0  ;;  %v11012_v4 = vmax.f32 %v8569_v37, %v8571_v63 }
 0x1a9   :  { %v1323_v55 = vpop.f32.mrb[95].mxu1 }
 0x1ad   :  { %v1456_v28 = vpop.f32.mrb[96].mxu0 }
 0x1ae   :  { %v1601_v40 = vpop.f32.mrb[96].mxu1  ;;  %v1535_v44 = vmax.f32 %v11010_v36, %v1456_v28  ;;  %v1458_v47 = vpop.f32.mrb[97].mxu0 }
 0x1af   :  { %v1603_v27 = vpop.f32.mrb[97].mxu1  ;;  %v1536_v13 = vmax.f32 %v11011_v15, %v1458_v47  ;;  %v1460_v38 = vpop.f32.mrb[98].mxu0 }
 0x1b0   :  { %v1605_v2 = vpop.f32.mrb[98].mxu1  ;;  %v1680_v17 = vmax.f32 %v1535_v44, %v1601_v40  ;;  %v1537_v18 = vmax.f32 %v11012_v4, %v1460_v38  ;;  %v1462_v55 = vpop.f32.mrb[99].mxu0 }
 0x1b1   :  { %v1607_v1 = vpop.f32.mrb[99].mxu1  ;;  %v1681_v60 = vmax.f32 %v1536_v13, %v1603_v27  ;;  %v1538_v28 = vmax.f32 %v11013_v49, %v1462_v55  ;;  %v11014_v27 = vmax.f32 %v8585_v16, %v8587_v61  ;;  %v11017_v49 = vmax.f32 %v8597_v43, %v8599_v20 }
 0x1b2   :  { %v1712_v42 = vadd.f32 %v1680_v17, %v8400_v10  ;;  %v1682_v36 = vmax.f32 %v1537_v18, %v1605_v2  ;;  %v11015_v2 = vmax.f32 %v8591_v46, %v8593_v5  ;;  %v7153_v46 = vld [vmem:[%s10782_s7] ss:$8 sps:$4 sm:$0xff]  }
 0x1b3   :  { %v1713_v52 = vadd.f32 %v1681_v60, %v8413_v62  ;;  %v1683_v47 = vmax.f32 %v1538_v28, %v1607_v1  ;;  %v7156_v5 = vld [vmem:[%s10782_s7 + $0x300] ss:$8 sps:$4 sm:$0xff]  }
 0x1b4   :  { %v1714_v15 = vadd.f32 %v1682_v36, %v8400_v10  ;;  %v1744_v63 = vmax.f32 %v1712_v42, 0.0 }
 0x1b5   :  { %v1715_v44 = vadd.f32 %v1683_v47, %v8413_v62  ;;  %v1466_v0 = vpop.f32.mrb[100].mxu0  ;;  %v1745_v38 = vmax.f32 %v1713_v52, 0.0  ;;  %v11018_v52 = vmax.f32 %v8603_v35, %v8605_v53  ;;  %v7164_v35 = vld [vmem:[%s10782_s7 + $0x314] ss:$8 sps:$4 sm:$0xff]  }
 0x1b6   :  { %v1611_v37 = vpop.f32.mrb[100].mxu1  ;;  %v1746_v40 = vmax.f32 %v1714_v15, 0.0  ;;  %v1539_v13 = vmax.f32 %v11014_v27, %v1466_v0  ;;  %v1468_v59 = vpop.f32.mrb[101].mxu0  ;;  %v7161_v15 = vld [vmem:[%s10782_s7 + $0x14] ss:$8 sps:$4 sm:$0xff]  }
 0x1b7   :  { %v1613_v23 = vpop.f32.mrb[101].mxu1  ;;  %v1747_v17 = vmax.f32 %v1715_v44, 0.0  ;;  %v1540_v4 = vmax.f32 %v11015_v2, %v1468_v59  ;;  %v1470_v18 = vpop.f32.mrb[102].mxu0  ;;  %v7167_v59 = vld [vmem:[%s10782_s7 + $0x24] ss:$8 sps:$4 sm:$0xff]  }
 0x1b8   :  { %v1615_v55 = vpop.f32.mrb[102].mxu1  ;;  %v8751_v1 = vpack.c.bf16 %v1746_v40, %v1744_v63  ;;  %v1684_v60 = vmax.f32 %v1539_v13, %v1611_v37  ;;  %v1541_v28 = vmax.f32 %v11017_v49, %v1470_v18  ;;  %v1472_v42 = vpop.f32.mrb[103].mxu0  ;;  %v7159_v37 = vld [vmem:[%s10782_s7 + $0x10] ss:$8 sps:$4 sm:$0xff]  }
 0x1b9   :  { %v1617_v16 = vpop.f32.mrb[103].mxu1  ;;  %v8756_v61 = vpack.c.bf16 %v1747_v17, %v1745_v38  ;;  %v1685_v36 = vmax.f32 %v1540_v4, %v1613_v23  ;;  %v1542_v47 = vmax.f32 %v11018_v52, %v1472_v42  ;;  %v7162_v13 = vld [vmem:[%s10782_s7 + $0x310] ss:$8 sps:$4 sm:$0xff]   ;;  %v11019_v17 = vmax.f32 %v8609_v50, %v8611_v51 }
 0x1ba   :  { %11016 = vst [vmem:[#allocation29_spill] sm:$0xff] %v8751_v1  ;;  %v1716_v43 = vadd.f32 %v1684_v60, %v8400_v10  ;;  %v1686_v20 = vmax.f32 %v1541_v28, %v1615_v55  ;;  %v7170_v55 = vld [vmem:[%s10782_s7 + $0x324] ss:$8 sps:$4 sm:$0xff]   ;;  %v11020_v28 = vmax.f32 %v8615_v21, %v8617_v24  ;;  %v11022_v51 = vmax.f32 %v8621_v8, %v8623_v9  ;;  %v7165_v21 = vld [vmem:[%s10782_s7 + $0x20] ss:$8 sps:$4 sm:$0xff]  }
 0x1bb   :  { %v1717_v53 = vadd.f32 %v1685_v36, %v8413_v62  ;;  %v1687_v44 = vmax.f32 %v1542_v47, %v1617_v16  ;;  %2133 = vmatprep.mubr.bf16.mxu0 %v8756_v61  ;;  %3067 = vmatprep.mubr.bf16.mxu1 %v8756_v61  ;;  %v7168_v24 = vld [vmem:[%s10782_s7 + $0x320] ss:$8 sps:$4 sm:$0xff]  }
 0x1bc   :  { %v1718_v0 = vadd.f32 %v1686_v20, %v8400_v10  ;;  %2134 = vmatmul.mubr.bf16.vlgmr.msra.gmra.mrb[128].mxu0 %v8751_v1  ;;  %3068 = vmatmul.mubr.bf16.vlgmr.msra.gmra.mrb[128].mxu1 %v8751_v1  ;;  %v1748_v23 = vmax.f32 %v1716_v43, 0.0 }
 0x1bd   :  { %v1719_v63 = vadd.f32 %v1687_v44, %v8413_v62  ;;  %v1476_v40 = vpop.f32.mrb[104].mxu0  ;;  %2371 = vmatpush1.bf16.msra.mxu0 %v7153_v46  ;;  %3305 = vmatpush1.bf16.msra.mxu1 %v7156_v5  ;;  %v1749_v60 = vmax.f32 %v1717_v53, 0.0 }
 0x1be   :  { %v1621_v27 = vpop.f32.mrb[104].mxu1  ;;  %v1750_v38 = vmax.f32 %v1718_v0, 0.0  ;;  %v1543_v2 = vmax.f32 %v11019_v17, %v1476_v40  ;;  %v1478_v4 = vpop.f32.mrb[105].mxu0  ;;  %2372 = vmatprep.subr.bf16.mxu0 %v7161_v15  ;;  %3306 = vmatprep.subr.bf16.mxu1 %v7164_v35  ;;  %v11024_v15 = vmax.f32 %v8627_v48, %v8629_v34  ;;  %v7173_v48 = vld [vmem:[%s10782_s7 + $0x34] ss:$8 sps:$4 sm:$0xff]   ;;  %v11025_v17 = vmax.f32 %v8633_v30, %v8635_v31 }
 0x1bf   :  { %v1623_v18 = vpop.f32.mrb[105].mxu1  ;;  %v1751_v49 = vmax.f32 %v1719_v63, 0.0  ;;  %v1544_v42 = vmax.f32 %v11020_v28, %v1478_v4  ;;  %v1480_v16 = vpop.f32.mrb[106].mxu0  ;;  %v7176_v34 = vld [vmem:[%s10782_s7 + $0x334] ss:$8 sps:$4 sm:$0xff]   ;;  %v11026_v28 = vmax.f32 %v8639_v7, %v8641_v56  ;;  %v11028_v31 = vmax.f32 %v8645_v3, %v8647_v26 }
 0x1c0   :  { %v1625_v36 = vpop.f32.mrb[106].mxu1  ;;  %v8799_v52 = vpack.c.bf16 %v1750_v38, %v1748_v23  ;;  %v1688_v50 = vmax.f32 %v1543_v2, %v1621_v27  ;;  %v1545_v47 = vmax.f32 %v11022_v51, %v1480_v16  ;;  %v1482_v46 = vpop.f32.mrb[107].mxu0  ;;  %v8860_v7 = vld [vmem:[%s10782_s7 + $0x40] ss:$8 sps:$4 sm:$0xff]  }
 0x1c1   :  { %v1627_v5 = vpop.f32.mrb[107].mxu1  ;;  %v8804_v43 = vpack.c.bf16 %v1751_v49, %v1749_v60  ;;  %v1689_v20 = vmax.f32 %v1544_v42, %v1623_v18  ;;  %v1546_v35 = vmax.f32 %v11024_v15, %v1482_v46  ;;  %2373 = vmatpush1.bf16.msra.mxu0 %v7159_v37  ;;  %3307 = vmatpush1.bf16.msra.mxu1 %v7162_v13  ;;  %v7171_v37 = vld [vmem:[%s10782_s7 + $0x30] ss:$8 sps:$4 sm:$0xff]   ;;  %v8865_v56 = vld [vmem:[%s10782_s7 + $0x340] ss:$8 sps:$4 sm:$0xff]  }
 0x1c2   :  { %11021 = vst [vmem:[#allocation30_spill] sm:$0xff] %v8799_v52  ;;  %v1720_v8 = vadd.f32 %v1688_v50, %v8400_v10  ;;  %v1690_v9 = vmax.f32 %v1545_v47, %v1625_v36  ;;  %2374 = vmatprep.subr.bf16.mxu0 %v7167_v59  ;;  %3308 = vmatprep.subr.bf16.mxu1 %v7170_v55  ;;  %v7174_v13 = vld [vmem:[%s10782_s7 + $0x330] ss:$8 sps:$4 sm:$0xff]   ;;  %v7179_v59 = vld [vmem:[%s10782_s7 + $0x44] ss:$8 sps:$4 sm:$0xff]  }
 0x1c3   :  { %11023 = vst [vmem:[#allocation31_spill] sm:$0xff] %v8804_v43  ;;  %v1721_v53 = vadd.f32 %v1689_v20, %v8413_v62  ;;  %v1691_v44 = vmax.f32 %v1546_v35, %v1627_v5  ;;  %2143 = vmatprep.mubr.bf16.mxu0 %v8804_v43  ;;  %3077 = vmatprep.mubr.bf16.mxu1 %v8804_v43  ;;  %v7182_v55 = vld [vmem:[%s10782_s7 + $0x344] ss:$8 sps:$4 sm:$0xff]  }
 0x1c4   :  { %v1722_v0 = vadd.f32 %v1690_v9, %v8400_v10  ;;  %2144 = vmatmul.mubr.bf16.gmra.mrb[132].mxu0 %v8799_v52  ;;  %3078 = vmatmul.mubr.bf16.gmra.mrb[132].mxu1 %v8799_v52  ;;  %v1752_v23 = vmax.f32 %v1720_v8, 0.0  ;;  %v11030_v15 = vmax.f32 %v8651_v14, %v8653_v22  ;;  %v8871_v14 = vld [vmem:[%s10782_s7 + $0x54] ss:$8 sps:$4 sm:$0xff]   ;;  %v8887_v9 = vld [vmem:[%s10782_s7 + $0x50] ss:$8 sps:$4 sm:$0xff]  }
 0x1c5   :  { %v1723_v63 = vadd.f32 %v1691_v44, %v8413_v62  ;;  %v1486_v40 = vpop.f32.mrb[108].mxu0  ;;  %2375 = vmatpush1.bf16.msra.mxu0 %v7165_v21  ;;  %3309 = vmatpush1.bf16.msra.mxu1 %v7168_v24  ;;  %v1753_v60 = vmax.f32 %v1721_v53, 0.0  ;;  %v8876_v22 = vld [vmem:[%s10782_s7 + $0x354] ss:$8 sps:$4 sm:$0xff]   ;;  %v8895_v44 = vld [vmem:[%s10782_s7 + $0x350] ss:$8 sps:$4 sm:$0xff]  }
 0x1c6   :  { %v1631_v27 = vpop.f32.mrb[108].mxu1  ;;  %v1754_v38 = vmax.f32 %v1722_v0, 0.0  ;;  %v1547_v2 = vmax.f32 %v11025_v17, %v1486_v40  ;;  %v1488_v4 = vpop.f32.mrb[109].mxu0  ;;  %2376 = vmatprep.subr.bf16.mxu0 %v7173_v48  ;;  %3310 = vmatprep.subr.bf16.mxu1 %v7176_v34  ;;  %v8900_v0 = vld [vmem:[%s10782_s7 + $0x64] ss:$8 sps:$4 sm:$0xff]   ;;  %v11031_v40 = vmax.f32 %v8657_v57, %v8659_v29 }
 0x1c7   :  { %v1633_v18 = vpop.f32.mrb[109].mxu1  ;;  %v1755_v49 = vmax.f32 %v1723_v63, 0.0  ;;  %v1548_v42 = vmax.f32 %v11026_v28, %v1488_v4  ;;  %v1490_v16 = vpop.f32.mrb[110].mxu0  ;;  %v9304_v52 = vld [vmem:[%s10782_s7 + $0x234] ss:$8 sps:$4 sm:$0xff]  }
 0x1c8   :  { %v1635_v36 = vpop.f32.mrb[110].mxu1  ;;  %v8847_v50 = vpack.c.bf16 %v1754_v38, %v1752_v23  ;;  %v1692_v30 = vmax.f32 %v1547_v2, %v1631_v27  ;;  %v1549_v51 = vmax.f32 %v11028_v31, %v1490_v16  ;;  %v1492_v47 = vpop.f32.mrb[111].mxu0  ;;  %v8910_v23 = vld [vmem:[%s10782_s7 + $0x364] ss:$8 sps:$4 sm:$0xff]   ;;  %v11032_v2 = vmax.f32 %v8663_v39, %v8665_v25  ;;  %v8930_v25 = vld [vmem:[%s10782_s7 + $0x60] ss:$8 sps:$4 sm:$0xff]  }
 0x1c9   :  { %v1637_v46 = vpop.f32.mrb[111].mxu1  ;;  %v8852_v5 = vpack.c.bf16 %v1755_v49, %v1753_v60  ;;  %v1693_v20 = vmax.f32 %v1548_v42, %v1633_v18  ;;  %v1550_v35 = vmax.f32 %v11030_v15, %v1492_v47  ;;  %2377 = vmatpush1.bf16.msra.mxu0 %v7171_v37  ;;  %3311 = vmatpush1.bf16.msra.mxu1 %v7174_v13 }
 0x1ca   :  { %11027 = vst [vmem:[#allocation32_spill] sm:$0xff] %v8847_v50  ;;  %v1724_v3 = vadd.f32 %v1692_v30, %v8400_v10  ;;  %v1694_v26 = vmax.f32 %v1549_v51, %v1635_v36  ;;  %2378 = vmatprep.subr.bf16.mxu0 %v7179_v59  ;;  %3312 = vmatprep.subr.bf16.mxu1 %v7182_v55  ;;  %11079 = vst [vmem:[#allocation47_spill] sm:$0xff] %v9304_v52 }
 0x1cb   :  { %11029 = vst [vmem:[#allocation33_spill] sm:$0xff] %v8852_v5  ;;  %v1725_v21 = vadd.f32 %v1693_v20, %v8413_v62  ;;  %v1695_v24 = vmax.f32 %v1550_v35, %v1637_v46  ;;  %2153 = vmatprep.mubr.bf16.mxu0 %v8852_v5  ;;  %3087 = vmatprep.mubr.bf16.mxu1 %v8852_v5  ;;  %v8959_v20 = vld [vmem:[%s10782_s7 + $0x70] ss:$8 sps:$4 sm:$0xff]   ;;  %v9298_v5 = vld [vmem:[%s10782_s7 + $0x520] ss:$8 sps:$4 sm:$0xff]  }
 0x1cc   :  { %v1726_v8 = vadd.f32 %v1694_v26, %v8400_v10  ;;  %2154 = vmatmul.mubr.bf16.gmra.mrb[136].mxu0 %v8847_v50  ;;  %3088 = vmatmul.mubr.bf16.gmra.mrb[136].mxu1 %v8847_v50  ;;  %v1756_v37 = vmax.f32 %v1724_v3, 0.0  ;;  %v11034_v60 = vmax.f32 %v8669_v12, %v8671_v54  ;;  %v11036_v30 = vmax.f32 %v8675_v6, %v8677_v19  ;;  %v8935_v54 = vld [vmem:[%s10782_s7 + $0x360] ss:$8 sps:$4 sm:$0xff]   ;;  %v8943_v19 = vld [vmem:[%s10782_s7 + $0x74] ss:$8 sps:$4 sm:$0xff]  }
 0x1cd   :  { %v1727_v48 = vadd.f32 %v1695_v24, %v8413_v62  ;;  %v1496_v34 = vpop.f32.mrb[112].mxu0  ;;  %2379 = vmatpush1.bf16.msra.mxu0 %v8860_v7  ;;  %3313 = vmatpush1.bf16.msra.mxu1 %v8865_v56  ;;  %v1757_v38 = vmax.f32 %v1725_v21, 0.0  ;;  %v8948_v6 = vld [vmem:[%s10782_s7 + $0x374] ss:$8 sps:$4 sm:$0xff]   ;;  %v8967_v26 = vld [vmem:[%s10782_s7 + $0x370] ss:$8 sps:$4 sm:$0xff]  }
 0x1ce   :  { %v1641_v53 = vpop.f32.mrb[112].mxu1  ;;  %v1758_v63 = vmax.f32 %v1726_v8, 0.0  ;;  %v1551_v27 = vmax.f32 %v11031_v40, %v1496_v34  ;;  %v1498_v13 = vpop.f32.mrb[113].mxu0  ;;  %2380 = vmatprep.subr.bf16.mxu0 %v8871_v14  ;;  %3314 = vmatprep.subr.bf16.mxu1 %v8876_v22  ;;  %v8972_v21 = vld [vmem:[%s10782_s7 + $0x84] ss:$8 sps:$4 sm:$0xff]   ;;  %11078 = vst [vmem:[#allocation46_spill] sm:$0xff] %v9298_v5 }
 0x1cf   :  { %v1643_v59 = vpop.f32.mrb[113].mxu1  ;;  %v1759_v17 = vmax.f32 %v1727_v48, 0.0  ;;  %v1552_v4 = vmax.f32 %v11032_v2, %v1498_v13  ;;  %v1500_v18 = vpop.f32.mrb[114].mxu0  ;;  %v11037_v48 = vmax.f32 %v8681_v45, %v8683_v41  ;;  %v11038_v13 = vmax.f32 %v8687_v32, %v8689_v11  ;;  %v11040_v2 = vld [vmem:[#allocation9_spill] sm:$0xff] }
 0x1d0   :  { %v1645_v29 = vpop.f32.mrb[114].mxu1  ;;  %v8915_v57 = vpack.c.bf16 %v1758_v63, %v1756_v37  ;;  %v1696_v55 = vmax.f32 %v1551_v27, %v1641_v53  ;;  %v1553_v49 = vmax.f32 %v11034_v60, %v1500_v18  ;;  %v1502_v28 = vpop.f32.mrb[115].mxu0  ;;  %v8982_v63 = vld [vmem:[%s10782_s7 + $0x384] ss:$8 sps:$4 sm:$0xff]   ;;  %v9002_v11 = vld [vmem:[%s10782_s7 + $0x80] ss:$8 sps:$4 sm:$0xff]  }
 0x1d1   :  { %v1647_v42 = vpop.f32.mrb[115].mxu1  ;;  %v8920_v16 = vpack.c.bf16 %v1759_v17, %v1757_v38  ;;  %v1697_v36 = vmax.f32 %v1552_v4, %v1643_v59  ;;  %v1554_v31 = vmax.f32 %v11036_v30, %v1502_v28  ;;  %2381 = vmatpush1.bf16.msra.mxu0 %v8887_v9  ;;  %3315 = vmatpush1.bf16.msra.mxu1 %v8895_v44  ;;  %v11041_v4 = vld [vmem:[#allocation10_spill] sm:$0xff]  ;;  %v9007_v32 = vld [vmem:[%s10782_s7 + $0x380] ss:$8 sps:$4 sm:$0xff]  }
 0x1d2   :  { %11033 = vst [vmem:[#allocation34_spill] sm:$0xff] %v8915_v57  ;;  %v1728_v12 = vadd.f32 %v1696_v55, %v8400_v10  ;;  %v1698_v39 = vmax.f32 %v1553_v49, %v1645_v29  ;;  %2382 = vmatprep.subr.bf16.mxu0 %v8900_v0  ;;  %3316 = vmatprep.subr.bf16.mxu1 %v8910_v23  ;;  %v9291_v50 = vld [vmem:[%s10782_s7 + $0x220] ss:$8 sps:$4 sm:$0xff]  }
 0x1d3   :  { %11035 = vst [vmem:[#allocation35_spill] sm:$0xff] %v8920_v16  ;;  %v1729_v51 = vadd.f32 %v1697_v36, %v8413_v62  ;;  %v1699_v47 = vmax.f32 %v1554_v31, %v1647_v42  ;;  %2163 = vmatprep.mubr.bf16.mxu0 %v8920_v16  ;;  %3097 = vmatprep.mubr.bf16.mxu1 %v8920_v16  ;;  %v11044_v42 = vld [vmem:[#allocation11_spill] sm:$0xff]  ;;  %v11045_v36 = vld [vmem:[#allocation12_spill] sm:$0xff]  ;;  %11077 = vst [vmem:[#allocation45_spill] sm:$0xff] %v9291_v50 }
 0x1d4   :  { %v1730_v46 = vadd.f32 %v1698_v39, %v8400_v10  ;;  %2164 = vmatmul.mubr.bf16.gmra.mrb[140].mxu0 %v8915_v57  ;;  %3098 = vmatmul.mubr.bf16.gmra.mrb[140].mxu1 %v8915_v57  ;;  %v1760_v24 = vmax.f32 %v1728_v12, 0.0  ;;  %v11042_v18 = vmax.f32 %v11040_v2, %v11041_v4  ;;  %v11046_v30 = vmax.f32 %v11044_v42, %v11045_v36  ;;  %v9054_v2 = vld [vmem:[%s10782_s7 + $0x3a4] ss:$8 sps:$4 sm:$0xff]  }
 0x1d5   :  { %v1731_v15 = vadd.f32 %v1699_v47, %v8413_v62  ;;  %v1506_v35 = vpop.f32.mrb[116].mxu0  ;;  %2383 = vmatpush1.bf16.msra.mxu0 %v8930_v25  ;;  %3317 = vmatpush1.bf16.msra.mxu1 %v8935_v54  ;;  %v1761_v40 = vmax.f32 %v1729_v51, 0.0  ;;  %v9015_v51 = vld [vmem:[%s10782_s7 + $0x94] ss:$8 sps:$4 sm:$0xff]   ;;  %v9278_v57 = vld [vmem:[%s10782_s7 + $0x224] ss:$8 sps:$4 sm:$0xff]  }
 0x1d6   :  { %v1651_v3 = vpop.f32.mrb[116].mxu1  ;;  %v1762_v8 = vmax.f32 %v1730_v46, 0.0  ;;  %v1555_v34 = vmax.f32 %v11037_v48, %v1506_v35  ;;  %v1508_v53 = vpop.f32.mrb[117].mxu0  ;;  %2384 = vmatprep.subr.bf16.mxu0 %v8943_v19  ;;  %3318 = vmatprep.subr.bf16.mxu1 %v8948_v6  ;;  %v9020_v47 = vld [vmem:[%s10782_s7 + $0x394] ss:$8 sps:$4 sm:$0xff]   ;;  %11075 = vst [vmem:[#allocation43_spill] sm:$0xff] %v9278_v57 }
 0x1d7   :  { %v1653_v37 = vpop.f32.mrb[117].mxu1  ;;  %v1763_v27 = vmax.f32 %v1731_v15, 0.0  ;;  %v1556_v59 = vmax.f32 %v11038_v13, %v1508_v53  ;;  %v1510_v38 = vpop.f32.mrb[118].mxu0  ;;  %v9044_v53 = vld [vmem:[%s10782_s7 + $0xa4] ss:$8 sps:$4 sm:$0xff]   ;;  %v11048_v13 = vld [vmem:[#allocation14_spill] sm:$0xff] }
 0x1d8   :  { %v1655_v41 = vpop.f32.mrb[118].mxu1  ;;  %v8987_v45 = vpack.c.bf16 %v1762_v8, %v1760_v24  ;;  %v1700_v17 = vmax.f32 %v1555_v34, %v1651_v3  ;;  %v1557_v29 = vmax.f32 %v11042_v18, %v1510_v38  ;;  %v1512_v55 = vpop.f32.mrb[119].mxu0  ;;  %v9031_v3 = vld [vmem:[%s10782_s7 + $0x90] ss:$8 sps:$4 sm:$0xff]   ;;  %v9285_v16 = vld [vmem:[%s10782_s7 + $0x524] ss:$8 sps:$4 sm:$0xff]  }
 0x1d9   :  { %v1657_v60 = vpop.f32.mrb[119].mxu1  ;;  %v8992_v49 = vpack.c.bf16 %v1763_v27, %v1761_v40  ;;  %v1701_v28 = vmax.f32 %v1556_v59, %v1653_v37  ;;  %v1558_v31 = vmax.f32 %v11046_v30, %v1512_v55  ;;  %2385 = vmatpush1.bf16.msra.mxu0 %v8959_v20  ;;  %3319 = vmatpush1.bf16.msra.mxu1 %v8967_v26  ;;  %v9039_v34 = vld [vmem:[%s10782_s7 + $0x390] ss:$8 sps:$4 sm:$0xff]   ;;  %v11047_v27 = vld [vmem:[#allocation13_spill] sm:$0xff] }
 0x1da   :  { %11039 = vst [vmem:[#allocation36_spill] sm:$0xff] %v8987_v45  ;;  %v1732_v12 = vadd.f32 %v1700_v17, %v8400_v10  ;;  %v1702_v39 = vmax.f32 %v1557_v29, %v1655_v41  ;;  %2386 = vmatprep.subr.bf16.mxu0 %v8972_v21  ;;  %3320 = vmatprep.subr.bf16.mxu1 %v8982_v63  ;;  %v11050_v29 = vld [vmem:[#allocation15_spill] sm:$0xff]  ;;  %v11051_v55 = vld [vmem:[#allocation26_spill] sm:$0xff]  ;;  %11076 = vst [vmem:[#allocation44_spill] sm:$0xff] %v9285_v16 }
 0x1db   :  { %11043 = vst [vmem:[#allocation9_spill] sm:$0xff] %v8992_v49  ;;  %v1733_v46 = vadd.f32 %v1701_v28, %v8413_v62  ;;  %v1703_v15 = vmax.f32 %v1558_v31, %v1657_v60  ;;  %2173 = vmatprep.mubr.bf16.mxu0 %v8992_v49  ;;  %3107 = vmatprep.mubr.bf16.mxu1 %v8992_v49  ;;  %v9273_v49 = vld [vmem:[%s10782_s7 + $0x510] ss:$8 sps:$4 sm:$0xff]  }
 0x1dc   :  { %v1734_v35 = vadd.f32 %v1702_v39, %v8400_v10  ;;  %2174 = vmatmul.mubr.bf16.gmra.mrb[144].mxu0 %v8987_v45  ;;  %3108 = vmatmul.mubr.bf16.gmra.mrb[144].mxu1 %v8987_v45  ;;  %v1764_v37 = vmax.f32 %v1732_v12, 0.0  ;;  %v11049_v59 = vmax.f32 %v11047_v27, %v11048_v13  ;;  %v11052_v60 = vmax.f32 %v11050_v29, %v11051_v55  ;;  %v11054_v12 = vld [vmem:[#allocation27_spill] sm:$0xff]  ;;  %v11055_v39 = vld [vmem:[#allocation28_spill] sm:$0xff] }
 0x1dd   :  { %v1735_v24 = vadd.f32 %v1703_v15, %v8413_v62  ;;  %v1516_v8 = vpop.f32.mrb[120].mxu0  ;;  %2387 = vmatpush1.bf16.msra.mxu0 %v9002_v11  ;;  %3321 = vmatpush1.bf16.msra.mxu1 %v9007_v32  ;;  %v1765_v4 = vmax.f32 %v1733_v46, 0.0  ;;  %v11056_v15 = vmax.f32 %v11054_v12, %v11055_v39  ;;  %v11058_v46 = vmax.f32 %v8723_v58, %v8725_v33  ;;  %v9087_v33 = vld [vmem:[%s10782_s7 + $0xb4] ss:$8 sps:$4 sm:$0xff]   ;;  %v9106_v29 = vld [vmem:[%s10782_s7 + $0xb0] ss:$8 sps:$4 sm:$0xff]  }
 0x1de   :  { %v1661_v48 = vpop.f32.mrb[120].mxu1  ;;  %v1766_v40 = vmax.f32 %v1734_v35, 0.0  ;;  %v1559_v38 = vmax.f32 %v11049_v59, %v1516_v8  ;;  %v1518_v41 = vpop.f32.mrb[121].mxu0  ;;  %2388 = vmatprep.subr.bf16.mxu0 %v9015_v51  ;;  %3322 = vmatprep.subr.bf16.mxu1 %v9020_v47  ;;  %v9092_v58 = vld [vmem:[%s10782_s7 + $0x3b4] ss:$8 sps:$4 sm:$0xff]   ;;  %11074 = vst [vmem:[#allocation42_spill] sm:$0xff] %v9273_v49 }
 0x1df   :  { %v1663_v17 = vpop.f32.mrb[121].mxu1  ;;  %v1767_v18 = vmax.f32 %v1735_v24, 0.0  ;;  %v1560_v28 = vmax.f32 %v11052_v60, %v1518_v41  ;;  %v1520_v42 = vpop.f32.mrb[122].mxu0  ;;  %v9111_v55 = vld [vmem:[%s10782_s7 + $0x3b0] ss:$8 sps:$4 sm:$0xff]  }
 0x1e0   :  { %v1665_v36 = vpop.f32.mrb[122].mxu1  ;;  %v9059_v30 = vpack.c.bf16 %v1766_v40, %v1764_v37  ;;  %v1704_v31 = vmax.f32 %v1559_v38, %v1661_v48  ;;  %v1561_v35 = vmax.f32 %v11056_v15, %v1520_v42  ;;  %v1522_v8 = vpop.f32.mrb[123].mxu0  ;;  %v9074_v48 = vld [vmem:[%s10782_s7 + $0xa0] ss:$8 sps:$4 sm:$0xff]   ;;  %v9266_v45 = vld [vmem:[%s10782_s7 + $0x210] ss:$8 sps:$4 sm:$0xff]  }
 0x1e1   :  { %v1667_v27 = vpop.f32.mrb[123].mxu1  ;;  %v9064_v13 = vpack.c.bf16 %v1767_v18, %v1765_v4  ;;  %v1705_v59 = vmax.f32 %v1560_v28, %v1663_v17  ;;  %v1562_v24 = vmax.f32 %v11058_v46, %v1522_v8  ;;  %2389 = vmatpush1.bf16.msra.mxu0 %v9031_v3  ;;  %3323 = vmatpush1.bf16.msra.mxu1 %v9039_v34  ;;  %v9079_v37 = vld [vmem:[%s10782_s7 + $0x3a0] ss:$8 sps:$4 sm:$0xff]   ;;  %v9123_v28 = vld [vmem:[%s10782_s7 + $0x3c4] ss:$8 sps:$4 sm:$0xff]  }
 0x1e2   :  { %11053 = vst [vmem:[#allocation10_spill] sm:$0xff] %v9059_v30  ;;  %v1736_v40 = vadd.f32 %v1704_v31, %v8400_v10  ;;  %v1706_v38 = vmax.f32 %v1561_v35, %v1665_v36  ;;  %2390 = vmatprep.subr.bf16.mxu0 %v9044_v53  ;;  %3324 = vmatprep.subr.bf16.mxu1 %v9054_v2  ;;  %v9134_v39 = vld [vmem:[%s10782_s7 + $0xc0] ss:$8 sps:$4 sm:$0xff]   ;;  %v9146_v35 = vld [vmem:[%s10782_s7 + $0xd4] ss:$8 sps:$4 sm:$0xff]  }
 0x1e3   :  { %11057 = vst [vmem:[#allocation11_spill] sm:$0xff] %v9064_v13  ;;  %v1737_v41 = vadd.f32 %v1705_v59, %v8413_v62  ;;  %v1707_v17 = vmax.f32 %v1562_v24, %v1667_v27  ;;  %2183 = vmatprep.mubr.bf16.mxu0 %v9064_v13  ;;  %3117 = vmatprep.mubr.bf16.mxu1 %v9064_v13  ;;  %v9139_v15 = vld [vmem:[%s10782_s7 + $0x3c0] ss:$8 sps:$4 sm:$0xff]   ;;  %v9151_v8 = vld [vmem:[%s10782_s7 + $0x3d4] ss:$8 sps:$4 sm:$0xff]  }
 0x1e4   :  { %v1738_v4 = vadd.f32 %v1706_v38, %v8400_v10  ;;  %2184 = vmatmul.mubr.bf16.gmra.mrb[148].mxu0 %v9059_v30  ;;  %3118 = vmatmul.mubr.bf16.gmra.mrb[148].mxu1 %v9059_v30  ;;  %v1768_v10 = vmax.f32 %v1736_v40, 0.0  ;;  %v9162_v27 = vld [vmem:[%s10782_s7 + $0xd0] ss:$8 sps:$4 sm:$0xff]   ;;  %v9174_v46 = vld [vmem:[%s10782_s7 + $0xe4] ss:$8 sps:$4 sm:$0xff]   ;;  %v11061_v40 = vmov 0  }
 0x1e5   :  { %v1739_v18 = vadd.f32 %v1707_v17, %v8413_v62  ;;  %2391 = vmatpush1.bf16.msra.mxu0 %v9074_v48  ;;  %3325 = vmatpush1.bf16.msra.mxu1 %v9079_v37  ;;  %v9118_v62 = vld [vmem:[%s10782_s7 + $0xc4] ss:$8 sps:$4 sm:$0xff]   ;;  %v1769_v42 = vmax.f32 %v1737_v41, 0.0  ;;  %v9167_v59 = vld [vmem:[%s10782_s7 + $0x3d0] ss:$8 sps:$4 sm:$0xff]  }
 0x1e6   :  { %v1770_v60 = vmax.f32 %v1738_v4, 0.0  ;;  %2392 = vmatprep.subr.bf16.mxu0 %v9087_v33  ;;  %3326 = vmatprep.subr.bf16.mxu1 %v9092_v58  ;;  %v9179_v24 = vld [vmem:[%s10782_s7 + $0x3e4] ss:$8 sps:$4 sm:$0xff]   ;;  %v9188_v38 = vld [vmem:[%s10782_s7 + $0xe0] ss:$8 sps:$4 sm:$0xff]   ;;  %v11072_v13 = vld [vmem:[#allocation18_spill] sm:$0xff] }
 0x1e7   :  { %v1771_v36 = vmax.f32 %v1739_v18, 0.0  ;;  %v9193_v41 = vld [vmem:[%s10782_s7 + $0x3e0] ss:$8 sps:$4 sm:$0xff]   ;;  %v9200_v17 = vld [vmem:[%s10782_s7 + $0xf4] ss:$8 sps:$4 sm:$0xff]   ;;  %11073 = vst [vmem:[#allocation18_spill] sm:$0xff] %v9266_v45 }
 0x1e8   :  { %v9125_v31 = vpack.c.bf16 %v1770_v60, %v1768_v10  ;;  %11062 = vst [vmem:[#allocation14_spill] sm:$0xff] %v9200_v17  ;;  %v9205_v4 = vld [vmem:[%s10782_s7 + $0x3f4] ss:$8 sps:$4 sm:$0xff]   ;;  %v9214_v18 = vld [vmem:[%s10782_s7 + $0xf0] ss:$8 sps:$4 sm:$0xff]  }
 0x1e9   :  { %v9127_v12 = vpack.c.bf16 %v1771_v36, %v1769_v42  ;;  %2393 = vmatpush1.bf16.msra.mxu0 %v9106_v29  ;;  %3327 = vmatpush1.bf16.msra.mxu1 %v9111_v55  ;;  %11063 = vst [vmem:[#allocation15_spill] sm:$0xff] %v9205_v4  ;;  %11064 = vst [vmem:[#allocation26_spill] sm:$0xff] %v9214_v18  ;;  %v9219_v10 = vld [vmem:[%s10782_s7 + $0x3f0] ss:$8 sps:$4 sm:$0xff]   ;;  %v9226_v60 = vld [vmem:[%s10782_s7 + $0x204] ss:$8 sps:$4 sm:$0xff]  }
 0x1ea   :  { %11059 = vst [vmem:[#allocation12_spill] sm:$0xff] %v9125_v31  ;;  %2394 = vmatprep.subr.bf16.mxu0 %v9118_v62  ;;  %3328 = vmatprep.subr.bf16.mxu1 %v9123_v28  ;;  %11065 = vst [vmem:[#allocation27_spill] sm:$0xff] %v9219_v10  ;;  %v9231_v42 = vld [vmem:[%s10782_s7 + $0x504] ss:$8 sps:$4 sm:$0xff]   ;;  %v9240_v36 = vld [vmem:[%s10782_s7 + $0x200] ss:$8 sps:$4 sm:$0xff]  }
 0x1eb   :  { %11060 = vst [vmem:[#allocation13_spill] sm:$0xff] %v9127_v12  ;;  %2193 = vmatprep.mubr.bf16.mxu0 %v9127_v12  ;;  %3127 = vmatprep.mubr.bf16.mxu1 %v9127_v12  ;;  %11066 = vst [vmem:[#allocation28_spill] sm:$0xff] %v9226_v60  ;;  %v9252_v12 = vld [vmem:[%s10782_s7 + $0x214] ss:$8 sps:$4 sm:$0xff]  }
 0x1ec   :  { %2194 = vmatmul.mubr.bf16.gmra.mrb[152].mxu0 %v9125_v31  ;;  %3128 = vmatmul.mubr.bf16.gmra.mrb[152].mxu1 %v9125_v31  ;;  %11067 = vst [vmem:[#allocation37_spill] sm:$0xff] %v9231_v42  ;;  %11068 = vst [vmem:[#allocation38_spill] sm:$0xff] %v9240_v36  ;;  %v9246_v31 = vld [vmem:[%s10782_s7 + $0x500] ss:$8 sps:$4 sm:$0xff]   ;;  %v9257_v30 = vld [vmem:[%s10782_s7 + $0x514] ss:$8 sps:$4 sm:$0xff]  }
 0x1ed   :  { %2395 = vmatpush1.bf16.msra.mxu0 %v9134_v39  ;;  %3329 = vmatpush1.bf16.msra.mxu1 %v9139_v15  ;;  %11069 = vst [vmem:[#allocation39_spill] sm:$0xff] %v9246_v31  ;;  %11070 = vst [vmem:[#allocation40_spill] sm:$0xff] %v9252_v12 }
 0x1ee   :  { %2396 = vmatprep.subr.bf16.mxu0 %v9146_v35  ;;  %3330 = vmatprep.subr.bf16.mxu1 %v9151_v8  ;;  %11071 = vst [vmem:[#allocation41_spill] sm:$0xff] %v9257_v30 }
 0x1ef   :  { %2203 = vmatprep.mubr.bf16.mxu0 %v11061_v40  ;;  %3137 = vmatprep.mubr.bf16.mxu1 %v11061_v40 }
 0x1f1   :  { %2397 = vmatpush1.bf16.msra.mxu0 %v9162_v27  ;;  %3331 = vmatpush1.bf16.msra.mxu1 %v9167_v59 }
 0x1f2   :  { %2398 = vmatprep.subr.bf16.mxu0 %v9174_v46  ;;  %3332 = vmatprep.subr.bf16.mxu1 %v9179_v24 }
 0x1f4   :  { %2204 = vmatmul.mubr.bf16.gmra.mrb[156].mxu0 %v11061_v40  ;;  %3138 = vmatmul.mubr.bf16.gmra.mrb[156].mxu1 %v11061_v40 }
 0x1f5   :  { %2399 = vmatpush1.bf16.msra.mxu0 %v9188_v38  ;;  %3333 = vmatpush1.bf16.msra.mxu1 %v9193_v41 }
 0x1f6   :  { %2400 = vmatprep.subr.bf16.mxu0 %v9200_v17  ;;  %3334 = vmatprep.subr.bf16.mxu1 %v9205_v4  ;;  %v9585_v4 = vld [vmem:[%s10782_s7 + $0x5d0] ss:$8 sps:$4 sm:$0xff]   ;;  %v9590_v17 = vld [vmem:[%s10782_s7 + $0x2e4] ss:$8 sps:$4 sm:$0xff]  }
 0x1f7   :  { %2402 = vmatprep.mubr.bf16.mxu0 %v11061_v40  ;;  %3336 = vmatprep.mubr.bf16.mxu1 %v11061_v40  ;;  %11135 = vst [vmem:[#allocation79_spill] sm:$0xff] %v9590_v17 }
 0x1f9   :  { %2401 = vmatpush1.bf16.msra.mxu0 %v9214_v18  ;;  %3335 = vmatpush1.bf16.msra.mxu1 %v9219_v10  ;;  %v9533_v10 = vld [vmem:[%s10782_s7 + $0x5b0] ss:$8 sps:$4 sm:$0xff]   ;;  %v9538_v18 = vld [vmem:[%s10782_s7 + $0x2c4] ss:$8 sps:$4 sm:$0xff]  }
 0x1fa   :  { %2672 = vmatprep.subr.bf16.mxu0 %v9226_v60  ;;  %3606 = vmatprep.subr.bf16.mxu1 %v9231_v42  ;;  %v9486_v60 = vld [vmem:[%s10782_s7 + $0x2a4] ss:$8 sps:$4 sm:$0xff]   ;;  %11125 = vst [vmem:[#allocation73_spill] sm:$0xff] %v9538_v18 }
 0x1fb   :  { %11115 = vst [vmem:[#allocation67_spill] sm:$0xff] %v9486_v60 }
 0x1fc   :  { %2403 = vmatmul.mubr.bf16.vlgmr.msra.gmra.mrb[128].mxu0 %v11061_v40  ;;  %3337 = vmatmul.mubr.bf16.vlgmr.msra.gmra.mrb[128].mxu1 %v11061_v40 }
 0x1fd   :  { %2412 = vmatprep.mubr.bf16.mxu0 %v11072_v13  ;;  %2673 = vmatpush1.bf16.msra.mxu0 %v9240_v36 }
 0x1fe   :  { %3346 = vmatprep.mubr.bf16.mxu1 %v11072_v13  ;;  %3607 = vmatpush1.bf16.msra.mxu1 %v9246_v31  ;;  %v9325_v31 = vld [vmem:[%s10782_s7 + $0x530] ss:$8 sps:$4 sm:$0xff]  }
 0x1ff   :  { %2674 = vmatprep.subr.bf16.mxu0 %v9252_v12  ;;  %3608 = vmatprep.subr.bf16.mxu1 %v9257_v30  ;;  %v1526_v30 = vpop.f32.mrb[124].mxu0  ;;  %v1671_v12 = vpop.f32.mrb[124].mxu1 }
 0x200   :  { %v1528_v36 = vpop.f32.mrb[125].mxu0  ;;  %v1673_v43 = vpop.f32.mrb[125].mxu1  ;;  %v9337_v30 = vld [vmem:[%s10782_s7 + $0x544] ss:$8 sps:$4 sm:$0xff]  }
 0x201   :  { %2675 = vmatpush1.bf16.msra.mxu0 %v9266_v45  ;;  %v9309_v45 = vld [vmem:[%s10782_s7 + $0x534] ss:$8 sps:$4 sm:$0xff]   ;;  %11086 = vst [vmem:[#allocation50_spill] sm:$0xff] %v9337_v30  ;;  %v1530_v12 = vpop.f32.mrb[126].mxu0  ;;  %v9343_v36 = vld [vmem:[%s10782_s7 + $0x240] ss:$8 sps:$4 sm:$0xff]  }
 0x202   :  { %3609 = vmatpush1.bf16.msra.mxu1 %v9273_v49  ;;  %2676 = vmatprep.subr.bf16.mxu0 %v9278_v57  ;;  %11080 = vst [vmem:[#allocation48_spill] sm:$0xff] %v9309_v45  ;;  %v11081_v49 = vld [vmem:[#allocation17_spill] sm:$0xff]  ;;  %v11082_v57 = vld [vmem:[#allocation20_spill] sm:$0xff]  ;;  %v1532_v1 = vpop.f32.mrb[127].mxu0  ;;  %11087 = vst [vmem:[#allocation51_spill] sm:$0xff] %v9343_v36 }
 0x203   :  { %3610 = vmatprep.subr.bf16.mxu1 %v9285_v16  ;;  %v9318_v16 = vld [vmem:[%s10782_s7 + $0x230] ss:$8 sps:$4 sm:$0xff]   ;;  %11084 = vst [vmem:[#allocation20_spill] sm:$0xff] %v9325_v31  ;;  %v9350_v43 = vld [vmem:[%s10782_s7 + $0x540] ss:$8 sps:$4 sm:$0xff]  }
 0x204   :  { %2413 = vmatmul.mubr.bf16.gmra.mrb[132].mxu0 %v11081_v49  ;;  %3347 = vmatmul.mubr.bf16.gmra.mrb[132].mxu1 %v11081_v49  ;;  %11083 = vst [vmem:[#allocation17_spill] sm:$0xff] %v9318_v16  ;;  %11088 = vst [vmem:[#allocation52_spill] sm:$0xff] %v9350_v43  ;;  %v9356_v1 = vld [vmem:[%s10782_s7 + $0x254] ss:$8 sps:$4 sm:$0xff]  }
 0x205   :  { %2422 = vmatprep.mubr.bf16.mxu0 %v11082_v57  ;;  %2677 = vmatpush1.bf16.msra.mxu0 %v9291_v50  ;;  %v9330_v50 = vld [vmem:[%s10782_s7 + $0x244] ss:$8 sps:$4 sm:$0xff]   ;;  %11089 = vst [vmem:[#allocation53_spill] sm:$0xff] %v9356_v1  ;;  %v11092_v12 = vld [vmem:[#allocation22_spill] sm:$0xff] }
 0x206   :  { %3356 = vmatprep.mubr.bf16.mxu1 %v11082_v57  ;;  %3611 = vmatpush1.bf16.msra.mxu1 %v9298_v5  ;;  %11085 = vst [vmem:[#allocation49_spill] sm:$0xff] %v9330_v50  ;;  %v1675_v5 = vpop.f32.mrb[126].mxu1 }
 0x207   :  { %2678 = vmatprep.subr.bf16.mxu0 %v9304_v52  ;;  %3612 = vmatprep.subr.bf16.mxu1 %v9309_v45  ;;  %v1677_v42 = vpop.f32.mrb[127].mxu1  ;;  %v9361_v5 = vld [vmem:[%s10782_s7 + $0x554] ss:$8 sps:$4 sm:$0xff]   ;;  %v9434_v45 = vld [vmem:[%s10782_s7 + $0x284] ss:$8 sps:$4 sm:$0xff]  }
 0x208   :  { %11090 = vst [vmem:[#allocation54_spill] sm:$0xff] %v9361_v5  ;;  %v11091_v42 = vld [vmem:[#allocation19_spill] sm:$0xff]  ;;  %11105 = vst [vmem:[#allocation61_spill] sm:$0xff] %v9434_v45 }
 0x209   :  { %2679 = vmatpush1.bf16.msra.mxu0 %v9318_v16  ;;  %v9429_v16 = vld [vmem:[%s10782_s7 + $0x570] ss:$8 sps:$4 sm:$0xff]  }
 0x20a   :  { %3613 = vmatpush1.bf16.msra.mxu1 %v9325_v31  ;;  %2680 = vmatprep.subr.bf16.mxu0 %v9330_v50  ;;  %v9377_v50 = vld [vmem:[%s10782_s7 + $0x550] ss:$8 sps:$4 sm:$0xff]   ;;  %v9382_v31 = vld [vmem:[%s10782_s7 + $0x264] ss:$8 sps:$4 sm:$0xff]  }
 0x20b   :  { %3614 = vmatprep.subr.bf16.mxu1 %v9337_v30  ;;  %v9370_v30 = vld [vmem:[%s10782_s7 + $0x250] ss:$8 sps:$4 sm:$0xff]   ;;  %11094 = vst [vmem:[#allocation22_spill] sm:$0xff] %v9377_v50  ;;  %11095 = vst [vmem:[#allocation55_spill] sm:$0xff] %v9382_v31 }
 0x20c   :  { %2423 = vmatmul.mubr.bf16.gmra.mrb[136].mxu0 %v11091_v42  ;;  %3357 = vmatmul.mubr.bf16.gmra.mrb[136].mxu1 %v11091_v42  ;;  %11093 = vst [vmem:[#allocation19_spill] sm:$0xff] %v9370_v30  ;;  %v9481_v52 = vld [vmem:[%s10782_s7 + $0x590] ss:$8 sps:$4 sm:$0xff]  }
 0x20d   :  { %2432 = vmatprep.mubr.bf16.mxu0 %v11092_v12  ;;  %2681 = vmatpush1.bf16.msra.mxu0 %v9343_v36  ;;  %v9389_v36 = vld [vmem:[%s10782_s7 + $0x564] ss:$8 sps:$4 sm:$0xff]  }
 0x20e   :  { %3366 = vmatprep.mubr.bf16.mxu1 %v11092_v12  ;;  %3615 = vmatpush1.bf16.msra.mxu1 %v9350_v43  ;;  %11096 = vst [vmem:[#allocation56_spill] sm:$0xff] %v9389_v36  ;;  %v9395_v43 = vld [vmem:[%s10782_s7 + $0x260] ss:$8 sps:$4 sm:$0xff]  }
 0x20f   :  { %2682 = vmatprep.subr.bf16.mxu0 %v9356_v1  ;;  %3616 = vmatprep.subr.bf16.mxu1 %v9361_v5  ;;  %11097 = vst [vmem:[#allocation57_spill] sm:$0xff] %v9395_v43  ;;  %v9402_v5 = vld [vmem:[%s10782_s7 + $0x560] ss:$8 sps:$4 sm:$0xff]   ;;  %v9413_v1 = vld [vmem:[%s10782_s7 + $0x574] ss:$8 sps:$4 sm:$0xff]  }
 0x210   :  { %11098 = vst [vmem:[#allocation58_spill] sm:$0xff] %v9402_v5  ;;  %11100 = vst [vmem:[#allocation60_spill] sm:$0xff] %v9413_v1 }
 0x211   :  { %2683 = vmatpush1.bf16.msra.mxu0 %v9370_v30  ;;  %v9408_v30 = vld [vmem:[%s10782_s7 + $0x274] ss:$8 sps:$4 sm:$0xff]  }
 0x212   :  { %3617 = vmatpush1.bf16.msra.mxu1 %v9377_v50  ;;  %2684 = vmatprep.subr.bf16.mxu0 %v9382_v31  ;;  %11099 = vst [vmem:[#allocation59_spill] sm:$0xff] %v9408_v30  ;;  %v11101_v50 = vld [vmem:[#allocation21_spill] sm:$0xff]  ;;  %v11102_v31 = vld [vmem:[#allocation24_spill] sm:$0xff] }
 0x213   :  { %3618 = vmatprep.subr.bf16.mxu1 %v9389_v36  ;;  %v9422_v36 = vld [vmem:[%s10782_s7 + $0x270] ss:$8 sps:$4 sm:$0xff]   ;;  %11104 = vst [vmem:[#allocation24_spill] sm:$0xff] %v9429_v16 }
 0x214   :  { %2433 = vmatmul.mubr.bf16.gmra.mrb[140].mxu0 %v11101_v50  ;;  %3367 = vmatmul.mubr.bf16.gmra.mrb[140].mxu1 %v11101_v50  ;;  %11103 = vst [vmem:[#allocation21_spill] sm:$0xff] %v9422_v36 }
 0x215   :  { %2442 = vmatprep.mubr.bf16.mxu0 %v11102_v31  ;;  %2685 = vmatpush1.bf16.msra.mxu0 %v9395_v43  ;;  %v9441_v43 = vld [vmem:[%s10782_s7 + $0x584] ss:$8 sps:$4 sm:$0xff]  }
 0x216   :  { %3376 = vmatprep.mubr.bf16.mxu1 %v11102_v31  ;;  %3619 = vmatpush1.bf16.msra.mxu1 %v9402_v5  ;;  %11106 = vst [vmem:[#allocation62_spill] sm:$0xff] %v9441_v43  ;;  %v9447_v5 = vld [vmem:[%s10782_s7 + $0x280] ss:$8 sps:$4 sm:$0xff]  }
 0x217   :  { %2686 = vmatprep.subr.bf16.mxu0 %v9408_v30  ;;  %3620 = vmatprep.subr.bf16.mxu1 %v9413_v1  ;;  %11107 = vst [vmem:[#allocation63_spill] sm:$0xff] %v9447_v5  ;;  %v9454_v1 = vld [vmem:[%s10782_s7 + $0x580] ss:$8 sps:$4 sm:$0xff]   ;;  %v9465_v30 = vld [vmem:[%s10782_s7 + $0x594] ss:$8 sps:$4 sm:$0xff]  }
 0x218   :  { %11108 = vst [vmem:[#allocation64_spill] sm:$0xff] %v9454_v1  ;;  %11110 = vst [vmem:[#allocation66_spill] sm:$0xff] %v9465_v30 }
 0x219   :  { %2687 = vmatpush1.bf16.msra.mxu0 %v9422_v36  ;;  %v9460_v36 = vld [vmem:[%s10782_s7 + $0x294] ss:$8 sps:$4 sm:$0xff]  }
 0x21a   :  { %3621 = vmatpush1.bf16.msra.mxu1 %v9429_v16  ;;  %2688 = vmatprep.subr.bf16.mxu0 %v9434_v45  ;;  %11109 = vst [vmem:[#allocation65_spill] sm:$0xff] %v9460_v36  ;;  %v11111_v16 = vld [vmem:[#allocation23_spill] sm:$0xff]  ;;  %v11112_v45 = vld [vmem:[#allocation4_spill] sm:$0xff] }
 0x21b   :  { %3622 = vmatprep.subr.bf16.mxu1 %v9441_v43  ;;  %v9474_v43 = vld [vmem:[%s10782_s7 + $0x290] ss:$8 sps:$4 sm:$0xff]   ;;  %11114 = vst [vmem:[#allocation4_spill] sm:$0xff] %v9481_v52 }
 0x21c   :  { %2443 = vmatmul.mubr.bf16.gmra.mrb[144].mxu0 %v11111_v16  ;;  %3377 = vmatmul.mubr.bf16.gmra.mrb[144].mxu1 %v11111_v16  ;;  %11113 = vst [vmem:[#allocation23_spill] sm:$0xff] %v9474_v43 }
 0x21d   :  { %2452 = vmatprep.mubr.bf16.mxu0 %v11112_v45  ;;  %2689 = vmatpush1.bf16.msra.mxu0 %v9447_v5  ;;  %v9493_v5 = vld [vmem:[%s10782_s7 + $0x5a4] ss:$8 sps:$4 sm:$0xff]  }
 0x21e   :  { %3386 = vmatprep.mubr.bf16.mxu1 %v11112_v45  ;;  %3623 = vmatpush1.bf16.msra.mxu1 %v9454_v1  ;;  %11116 = vst [vmem:[#allocation68_spill] sm:$0xff] %v9493_v5  ;;  %v9499_v1 = vld [vmem:[%s10782_s7 + $0x2a0] ss:$8 sps:$4 sm:$0xff]  }
 0x21f   :  { %2690 = vmatprep.subr.bf16.mxu0 %v9460_v36  ;;  %3624 = vmatprep.subr.bf16.mxu1 %v9465_v30  ;;  %11117 = vst [vmem:[#allocation69_spill] sm:$0xff] %v9499_v1  ;;  %v9506_v30 = vld [vmem:[%s10782_s7 + $0x5a0] ss:$8 sps:$4 sm:$0xff]   ;;  %v9517_v36 = vld [vmem:[%s10782_s7 + $0x5b4] ss:$8 sps:$4 sm:$0xff]  }
 0x220   :  { %11118 = vst [vmem:[#allocation70_spill] sm:$0xff] %v9506_v30  ;;  %11120 = vst [vmem:[#allocation72_spill] sm:$0xff] %v9517_v36 }
 0x221   :  { %2691 = vmatpush1.bf16.msra.mxu0 %v9474_v43  ;;  %v9512_v43 = vld [vmem:[%s10782_s7 + $0x2b4] ss:$8 sps:$4 sm:$0xff]  }
 0x222   :  { %3625 = vmatpush1.bf16.msra.mxu1 %v9481_v52  ;;  %2692 = vmatprep.subr.bf16.mxu0 %v9486_v60  ;;  %11119 = vst [vmem:[#allocation71_spill] sm:$0xff] %v9512_v43  ;;  %v11121_v52 = vld [vmem:[#allocation25_spill] sm:$0xff]  ;;  %v11122_v60 = vld [vmem:[#allocation6_spill] sm:$0xff] }
 0x223   :  { %3626 = vmatprep.subr.bf16.mxu1 %v9493_v5  ;;  %v9526_v5 = vld [vmem:[%s10782_s7 + $0x2b0] ss:$8 sps:$4 sm:$0xff]   ;;  %11124 = vst [vmem:[#allocation6_spill] sm:$0xff] %v9533_v10 }
 0x224   :  { %2453 = vmatmul.mubr.bf16.gmra.mrb[148].mxu0 %v11121_v52  ;;  %3387 = vmatmul.mubr.bf16.gmra.mrb[148].mxu1 %v11121_v52  ;;  %11123 = vst [vmem:[#allocation25_spill] sm:$0xff] %v9526_v5 }
 0x225   :  { %2462 = vmatprep.mubr.bf16.mxu0 %v11122_v60  ;;  %2693 = vmatpush1.bf16.msra.mxu0 %v9499_v1  ;;  %v9545_v1 = vld [vmem:[%s10782_s7 + $0x5c4] ss:$8 sps:$4 sm:$0xff]  }
 0x226   :  { %3396 = vmatprep.mubr.bf16.mxu1 %v11122_v60  ;;  %3627 = vmatpush1.bf16.msra.mxu1 %v9506_v30  ;;  %11126 = vst [vmem:[#allocation74_spill] sm:$0xff] %v9545_v1  ;;  %v9551_v30 = vld [vmem:[%s10782_s7 + $0x2c0] ss:$8 sps:$4 sm:$0xff]  }
 0x227   :  { %2694 = vmatprep.subr.bf16.mxu0 %v9512_v43  ;;  %3628 = vmatprep.subr.bf16.mxu1 %v9517_v36  ;;  %11127 = vst [vmem:[#allocation75_spill] sm:$0xff] %v9551_v30  ;;  %v9558_v36 = vld [vmem:[%s10782_s7 + $0x5c0] ss:$8 sps:$4 sm:$0xff]   ;;  %v9569_v43 = vld [vmem:[%s10782_s7 + $0x5d4] ss:$8 sps:$4 sm:$0xff]  }
 0x228   :  { %11128 = vst [vmem:[#allocation76_spill] sm:$0xff] %v9558_v36  ;;  %11130 = vst [vmem:[#allocation78_spill] sm:$0xff] %v9569_v43 }
 0x229   :  { %2695 = vmatpush1.bf16.msra.mxu0 %v9526_v5  ;;  %v9564_v5 = vld [vmem:[%s10782_s7 + $0x2d4] ss:$8 sps:$4 sm:$0xff]  }
 0x22a   :  { %3629 = vmatpush1.bf16.msra.mxu1 %v9533_v10  ;;  %2696 = vmatprep.subr.bf16.mxu0 %v9538_v18  ;;  %11129 = vst [vmem:[#allocation77_spill] sm:$0xff] %v9564_v5  ;;  %v11131_v10 = vld [vmem:[#allocation5_spill] sm:$0xff]  ;;  %v11132_v18 = vld [vmem:[#allocation8_spill] sm:$0xff] }
 0x22b   :  { %3630 = vmatprep.subr.bf16.mxu1 %v9545_v1  ;;  %v9578_v1 = vld [vmem:[%s10782_s7 + $0x2d0] ss:$8 sps:$4 sm:$0xff]   ;;  %11134 = vst [vmem:[#allocation8_spill] sm:$0xff] %v9585_v4 }
 0x22c   :  { %2463 = vmatmul.mubr.bf16.gmra.mrb[152].mxu0 %v11131_v10  ;;  %3397 = vmatmul.mubr.bf16.gmra.mrb[152].mxu1 %v11131_v10  ;;  %11133 = vst [vmem:[#allocation5_spill] sm:$0xff] %v9578_v1 }
 0x22d   :  { %2472 = vmatprep.mubr.bf16.mxu0 %v11132_v18  ;;  %2697 = vmatpush1.bf16.msra.mxu0 %v9551_v30  ;;  %v9597_v30 = vld [vmem:[%s10782_s7 + $0x5e4] ss:$8 sps:$4 sm:$0xff]  }
 0x22e   :  { %3406 = vmatprep.mubr.bf16.mxu1 %v11132_v18  ;;  %3631 = vmatpush1.bf16.msra.mxu1 %v9558_v36  ;;  %11136 = vst [vmem:[#allocation80_spill] sm:$0xff] %v9597_v30  ;;  %v9603_v36 = vld [vmem:[%s10782_s7 + $0x2e0] ss:$8 sps:$4 sm:$0xff]  }
 0x22f   :  { %2698 = vmatprep.subr.bf16.mxu0 %v9564_v5  ;;  %3632 = vmatprep.subr.bf16.mxu1 %v9569_v43  ;;  %11137 = vst [vmem:[#allocation81_spill] sm:$0xff] %v9603_v36  ;;  %v9610_v43 = vld [vmem:[%s10782_s7 + $0x5e0] ss:$8 sps:$4 sm:$0xff]   ;;  %v9621_v5 = vld [vmem:[%s10782_s7 + $0x5f4] ss:$8 sps:$4 sm:$0xff]  }
 0x230   :  { %11138 = vst [vmem:[#allocation82_spill] sm:$0xff] %v9610_v43  ;;  %11139 = vst [vmem:[#allocation83_spill] sm:$0xff] %v9621_v5 }
 0x231   :  { %2699 = vmatpush1.bf16.msra.mxu0 %v9578_v1  ;;  %v9616_v1 = vld [vmem:[%s10782_s7 + $0x2f4] ss:$8 sps:$4 sm:$0xff]  }
 0x232   :  { %3633 = vmatpush1.bf16.msra.mxu1 %v9585_v4  ;;  %2700 = vmatprep.subr.bf16.mxu0 %v9590_v17  ;;  %v11140_v4 = vld [vmem:[#allocation7_spill] sm:$0xff] }
 0x233   :  { %3634 = vmatprep.subr.bf16.mxu1 %v9597_v30  ;;  %v9630_v30 = vld [vmem:[%s10782_s7 + $0x2f0] ss:$8 sps:$4 sm:$0xff]  }
 0x234   :  { %2473 = vmatmul.mubr.bf16.gmra.mrb[160].mxu0 %v11140_v4  ;;  %3407 = vmatmul.mubr.bf16.gmra.mrb[160].mxu1 %v11140_v4  ;;  %11141 = vst [vmem:[#allocation7_spill] sm:$0xff] %v9630_v30  ;;  %v9637_v17 = vld [vmem:[%s10782_s7 + $0x5f0] ss:$8 sps:$4 sm:$0xff]  }
 0x235   :  { %2701 = vmatpush1.bf16.msra.mxu0 %v9603_v36  ;;  %2704 = vmatprep.mubr.bf16.mxu0 %v11072_v13  ;;  %11142 = vst [vmem:[#allocation84_spill] sm:$0xff] %v9637_v17  ;;  %v7457_v36 = vld [vmem:[%s10782_s7 + $0x104] ss:$8 sps:$4 sm:$0xff]  }
 0x236   :  { %3635 = vmatpush1.bf16.msra.mxu1 %v9610_v43  ;;  %3638 = vmatprep.mubr.bf16.mxu1 %v11072_v13  ;;  %v7458_v43 = vld [vmem:[%s10782_s7 + $0x404] ss:$8 sps:$4 sm:$0xff]  }
 0x237   :  { %2702 = vmatprep.subr.bf16.mxu0 %v9616_v1  ;;  %3636 = vmatprep.subr.bf16.mxu1 %v9621_v5  ;;  %v7463_v5 = vld [vmem:[%s10782_s7 + $0x110] ss:$8 sps:$4 sm:$0xff]  }
 0x239   :  { %2703 = vmatpush1.bf16.msra.mxu0 %v9630_v30  ;;  %v7462_v30 = vld [vmem:[%s10782_s7 + $0x414] ss:$8 sps:$4 sm:$0xff]  }
 0x23a   :  { %3637 = vmatpush1.bf16.msra.mxu1 %v9637_v17  ;;  %3771 = vmatprep.subr.bf16.mxu0 %v7457_v36  ;;  %v7459_v17 = vld [vmem:[%s10782_s7 + $0x100] ss:$8 sps:$4 sm:$0xff]  }
 0x23b   :  { %4154 = vmatprep.subr.bf16.mxu1 %v7458_v43  ;;  %v7460_v36 = vld [vmem:[%s10782_s7 + $0x400] ss:$8 sps:$4 sm:$0xff]   ;;  %v7461_v43 = vld [vmem:[%s10782_s7 + $0x114] ss:$8 sps:$4 sm:$0xff]  }
 0x23c   :  { %2705 = vmatmul.mubr.bf16.vlgmr.msra.gmra.mrb[128].mxu0 %v11081_v49 }
 0x23d   :  { %3639 = vmatmul.mubr.bf16.vlgmr.msra.gmra.mrb[128].mxu1 %v11081_v49  ;;  %2714 = vmatprep.mubr.bf16.mxu0 %v11082_v57 }
 0x23e   :  { %3648 = vmatprep.mubr.bf16.mxu1 %v11082_v57  ;;  %3772 = vmatpush1.bf16.msra.mxu0 %v7459_v17  ;;  %v7464_v17 = vld [vmem:[%s10782_s7 + $0x410] ss:$8 sps:$4 sm:$0xff]  }
 0x23f   :  { %4155 = vmatpush1.bf16.msra.mxu1 %v7460_v36  ;;  %3773 = vmatprep.subr.bf16.mxu0 %v7461_v43  ;;  %v7465_v36 = vld [vmem:[%s10782_s7 + $0x124] ss:$8 sps:$4 sm:$0xff]   ;;  %v7468_v43 = vld [vmem:[%s10782_s7 + $0x420] ss:$8 sps:$4 sm:$0xff]  }
 0x240   :  { %4156 = vmatprep.subr.bf16.mxu1 %v7462_v30  ;;  %v7466_v30 = vld [vmem:[%s10782_s7 + $0x424] ss:$8 sps:$4 sm:$0xff]  }
 0x242   :  { %3774 = vmatpush1.bf16.msra.mxu0 %v7463_v5  ;;  %v7467_v5 = vld [vmem:[%s10782_s7 + $0x120] ss:$8 sps:$4 sm:$0xff]  }
 0x243   :  { %4157 = vmatpush1.bf16.msra.mxu1 %v7464_v17  ;;  %3775 = vmatprep.subr.bf16.mxu0 %v7465_v36  ;;  %v7469_v17 = vld [vmem:[%s10782_s7 + $0x134] ss:$8 sps:$4 sm:$0xff]  }
 0x244   :  { %2715 = vmatmul.mubr.bf16.gmra.mrb[132].mxu0 %v11091_v42  ;;  %4158 = vmatprep.subr.bf16.mxu1 %v7466_v30  ;;  %v7470_v36 = vld [vmem:[%s10782_s7 + $0x434] ss:$8 sps:$4 sm:$0xff]   ;;  %v7471_v30 = vld [vmem:[%s10782_s7 + $0x130] ss:$8 sps:$4 sm:$0xff]  }
 0x245   :  { %3649 = vmatmul.mubr.bf16.gmra.mrb[132].mxu1 %v11091_v42  ;;  %2724 = vmatprep.mubr.bf16.mxu0 %v11092_v12 }
 0x246   :  { %3658 = vmatprep.mubr.bf16.mxu1 %v11092_v12  ;;  %3776 = vmatpush1.bf16.msra.mxu0 %v7467_v5  ;;  %v7472_v5 = vld [vmem:[%s10782_s7 + $0x430] ss:$8 sps:$4 sm:$0xff]  }
 0x247   :  { %4159 = vmatpush1.bf16.msra.mxu1 %v7468_v43  ;;  %3777 = vmatprep.subr.bf16.mxu0 %v7469_v17  ;;  %v7473_v43 = vld [vmem:[%s10782_s7 + $0x144] ss:$8 sps:$4 sm:$0xff]  }
 0x248   :  { %4160 = vmatprep.subr.bf16.mxu1 %v7470_v36  ;;  %v7474_v17 = vld [vmem:[%s10782_s7 + $0x444] ss:$8 sps:$4 sm:$0xff]   ;;  %v7475_v36 = vld [vmem:[%s10782_s7 + $0x140] ss:$8 sps:$4 sm:$0xff]  }
 0x24a   :  { %3778 = vmatpush1.bf16.msra.mxu0 %v7471_v30  ;;  %v7476_v30 = vld [vmem:[%s10782_s7 + $0x440] ss:$8 sps:$4 sm:$0xff]  }
 0x24b   :  { %4161 = vmatpush1.bf16.msra.mxu1 %v7472_v5  ;;  %3779 = vmatprep.subr.bf16.mxu0 %v7473_v43  ;;  %v7477_v5 = vld [vmem:[%s10782_s7 + $0x154] ss:$8 sps:$4 sm:$0xff]  }
 0x24c   :  { %2725 = vmatmul.mubr.bf16.gmra.mrb[136].mxu0 %v11101_v50  ;;  %4162 = vmatprep.subr.bf16.mxu1 %v7474_v17  ;;  %v7478_v43 = vld [vmem:[%s10782_s7 + $0x454] ss:$8 sps:$4 sm:$0xff]   ;;  %v7479_v17 = vld [vmem:[%s10782_s7 + $0x150] ss:$8 sps:$4 sm:$0xff]  }
 0x24d   :  { %3659 = vmatmul.mubr.bf16.gmra.mrb[136].mxu1 %v11101_v50  ;;  %2734 = vmatprep.mubr.bf16.mxu0 %v11102_v31 }
 0x24e   :  { %3668 = vmatprep.mubr.bf16.mxu1 %v11102_v31  ;;  %3780 = vmatpush1.bf16.msra.mxu0 %v7475_v36  ;;  %v7480_v36 = vld [vmem:[%s10782_s7 + $0x450] ss:$8 sps:$4 sm:$0xff]  }
 0x24f   :  { %4163 = vmatpush1.bf16.msra.mxu1 %v7476_v30  ;;  %3781 = vmatprep.subr.bf16.mxu0 %v7477_v5  ;;  %v7481_v30 = vld [vmem:[%s10782_s7 + $0x164] ss:$8 sps:$4 sm:$0xff]  }
 0x250   :  { %4164 = vmatprep.subr.bf16.mxu1 %v7478_v43  ;;  %v7482_v5 = vld [vmem:[%s10782_s7 + $0x464] ss:$8 sps:$4 sm:$0xff]   ;;  %v7483_v43 = vld [vmem:[%s10782_s7 + $0x160] ss:$8 sps:$4 sm:$0xff]  }
 0x252   :  { %3782 = vmatpush1.bf16.msra.mxu0 %v7479_v17  ;;  %v7484_v17 = vld [vmem:[%s10782_s7 + $0x460] ss:$8 sps:$4 sm:$0xff]  }
 0x253   :  { %4165 = vmatpush1.bf16.msra.mxu1 %v7480_v36  ;;  %3783 = vmatprep.subr.bf16.mxu0 %v7481_v30  ;;  %v7485_v36 = vld [vmem:[%s10782_s7 + $0x174] ss:$8 sps:$4 sm:$0xff]  }
 0x254   :  { %2735 = vmatmul.mubr.bf16.gmra.mrb[140].mxu0 %v11111_v16  ;;  %4166 = vmatprep.subr.bf16.mxu1 %v7482_v5  ;;  %v7486_v30 = vld [vmem:[%s10782_s7 + $0x474] ss:$8 sps:$4 sm:$0xff]   ;;  %v7487_v5 = vld [vmem:[%s10782_s7 + $0x170] ss:$8 sps:$4 sm:$0xff]  }
 0x255   :  { %3669 = vmatmul.mubr.bf16.gmra.mrb[140].mxu1 %v11111_v16  ;;  %2744 = vmatprep.mubr.bf16.mxu0 %v11112_v45 }
 0x256   :  { %3678 = vmatprep.mubr.bf16.mxu1 %v11112_v45  ;;  %3784 = vmatpush1.bf16.msra.mxu0 %v7483_v43  ;;  %v7488_v43 = vld [vmem:[%s10782_s7 + $0x470] ss:$8 sps:$4 sm:$0xff]  }
 0x257   :  { %4167 = vmatpush1.bf16.msra.mxu1 %v7484_v17  ;;  %3785 = vmatprep.subr.bf16.mxu0 %v7485_v36  ;;  %v7489_v17 = vld [vmem:[%s10782_s7 + $0x184] ss:$8 sps:$4 sm:$0xff]  }
 0x258   :  { %4168 = vmatprep.subr.bf16.mxu1 %v7486_v30  ;;  %v7490_v36 = vld [vmem:[%s10782_s7 + $0x484] ss:$8 sps:$4 sm:$0xff]   ;;  %v7491_v30 = vld [vmem:[%s10782_s7 + $0x180] ss:$8 sps:$4 sm:$0xff]  }
 0x25a   :  { %3786 = vmatpush1.bf16.msra.mxu0 %v7487_v5  ;;  %v7492_v5 = vld [vmem:[%s10782_s7 + $0x480] ss:$8 sps:$4 sm:$0xff]  }
 0x25b   :  { %4169 = vmatpush1.bf16.msra.mxu1 %v7488_v43  ;;  %3787 = vmatprep.subr.bf16.mxu0 %v7489_v17  ;;  %v7493_v43 = vld [vmem:[%s10782_s7 + $0x194] ss:$8 sps:$4 sm:$0xff]  }
 0x25c   :  { %2745 = vmatmul.mubr.bf16.gmra.mrb[144].mxu0 %v11121_v52  ;;  %4170 = vmatprep.subr.bf16.mxu1 %v7490_v36  ;;  %v7494_v17 = vld [vmem:[%s10782_s7 + $0x494] ss:$8 sps:$4 sm:$0xff]   ;;  %v7495_v36 = vld [vmem:[%s10782_s7 + $0x190] ss:$8 sps:$4 sm:$0xff]  }
 0x25d   :  { %3679 = vmatmul.mubr.bf16.gmra.mrb[144].mxu1 %v11121_v52  ;;  %2754 = vmatprep.mubr.bf16.mxu0 %v11122_v60 }
 0x25e   :  { %3688 = vmatprep.mubr.bf16.mxu1 %v11122_v60  ;;  %3788 = vmatpush1.bf16.msra.mxu0 %v7491_v30  ;;  %v7496_v30 = vld [vmem:[%s10782_s7 + $0x490] ss:$8 sps:$4 sm:$0xff]  }
 0x25f   :  { %4171 = vmatpush1.bf16.msra.mxu1 %v7492_v5  ;;  %3789 = vmatprep.subr.bf16.mxu0 %v7493_v43  ;;  %v7497_v5 = vld [vmem:[%s10782_s7 + $0x1a4] ss:$8 sps:$4 sm:$0xff]  }
 0x260   :  { %4172 = vmatprep.subr.bf16.mxu1 %v7494_v17  ;;  %v7498_v43 = vld [vmem:[%s10782_s7 + $0x4a4] ss:$8 sps:$4 sm:$0xff]   ;;  %v7499_v17 = vld [vmem:[%s10782_s7 + $0x1a0] ss:$8 sps:$4 sm:$0xff]  }
 0x262   :  { %3790 = vmatpush1.bf16.msra.mxu0 %v7495_v36  ;;  %v7500_v36 = vld [vmem:[%s10782_s7 + $0x4a0] ss:$8 sps:$4 sm:$0xff]  }
 0x263   :  { %4173 = vmatpush1.bf16.msra.mxu1 %v7496_v30  ;;  %3791 = vmatprep.subr.bf16.mxu0 %v7497_v5  ;;  %v7501_v30 = vld [vmem:[%s10782_s7 + $0x1b4] ss:$8 sps:$4 sm:$0xff]  }
 0x264   :  { %2755 = vmatmul.mubr.bf16.gmra.mrb[148].mxu0 %v11131_v10  ;;  %4174 = vmatprep.subr.bf16.mxu1 %v7498_v43  ;;  %v7502_v5 = vld [vmem:[%s10782_s7 + $0x4b4] ss:$8 sps:$4 sm:$0xff]   ;;  %v7503_v43 = vld [vmem:[%s10782_s7 + $0x1b0] ss:$8 sps:$4 sm:$0xff]  }
 0x265   :  { %3689 = vmatmul.mubr.bf16.gmra.mrb[148].mxu1 %v11131_v10  ;;  %2764 = vmatprep.mubr.bf16.mxu0 %v11132_v18 }
 0x266   :  { %3698 = vmatprep.mubr.bf16.mxu1 %v11132_v18  ;;  %3792 = vmatpush1.bf16.msra.mxu0 %v7499_v17  ;;  %v7504_v17 = vld [vmem:[%s10782_s7 + $0x4b0] ss:$8 sps:$4 sm:$0xff]  }
 0x267   :  { %4175 = vmatpush1.bf16.msra.mxu1 %v7500_v36  ;;  %3793 = vmatprep.subr.bf16.mxu0 %v7501_v30  ;;  %v7505_v36 = vld [vmem:[%s10782_s7 + $0x1c4] ss:$8 sps:$4 sm:$0xff]  }
 0x268   :  { %4176 = vmatprep.subr.bf16.mxu1 %v7502_v5  ;;  %v7506_v30 = vld [vmem:[%s10782_s7 + $0x4c4] ss:$8 sps:$4 sm:$0xff]   ;;  %v7507_v5 = vld [vmem:[%s10782_s7 + $0x1c0] ss:$8 sps:$4 sm:$0xff]  }
 0x26a   :  { %3794 = vmatpush1.bf16.msra.mxu0 %v7503_v43  ;;  %v7508_v43 = vld [vmem:[%s10782_s7 + $0x4c0] ss:$8 sps:$4 sm:$0xff]  }
 0x26b   :  { %4177 = vmatpush1.bf16.msra.mxu1 %v7504_v17  ;;  %3795 = vmatprep.subr.bf16.mxu0 %v7505_v36  ;;  %v7509_v17 = vld [vmem:[%s10782_s7 + $0x1d4] ss:$8 sps:$4 sm:$0xff]  }
 0x26c   :  { %2765 = vmatmul.mubr.bf16.gmra.mrb[152].mxu0 %v11140_v4  ;;  %4178 = vmatprep.subr.bf16.mxu1 %v7506_v30  ;;  %v7510_v36 = vld [vmem:[%s10782_s7 + $0x4d4] ss:$8 sps:$4 sm:$0xff]   ;;  %v7511_v30 = vld [vmem:[%s10782_s7 + $0x1d0] ss:$8 sps:$4 sm:$0xff]  }
 0x26d   :  { %3699 = vmatmul.mubr.bf16.gmra.mrb[152].mxu1 %v11140_v4  ;;  %2774 = vmatprep.mubr.bf16.mxu0 %v11061_v40 }
 0x26e   :  { %3796 = vmatpush1.bf16.msra.mxu0 %v7507_v5  ;;  %3708 = vmatprep.mubr.bf16.mxu1 %v11061_v40  ;;  %v7512_v5 = vld [vmem:[%s10782_s7 + $0x4d0] ss:$8 sps:$4 sm:$0xff]  }
 0x26f   :  { %4179 = vmatpush1.bf16.msra.mxu1 %v7508_v43  ;;  %3797 = vmatprep.subr.bf16.mxu0 %v7509_v17  ;;  %v7513_v43 = vld [vmem:[%s10782_s7 + $0x1e4] ss:$8 sps:$4 sm:$0xff]  }
 0x270   :  { %4180 = vmatprep.subr.bf16.mxu1 %v7510_v36  ;;  %v7514_v17 = vld [vmem:[%s10782_s7 + $0x4e4] ss:$8 sps:$4 sm:$0xff]   ;;  %v7515_v36 = vld [vmem:[%s10782_s7 + $0x1e0] ss:$8 sps:$4 sm:$0xff]  }
 0x272   :  { %3798 = vmatpush1.bf16.msra.mxu0 %v7511_v30  ;;  %v7516_v30 = vld [vmem:[%s10782_s7 + $0x4e0] ss:$8 sps:$4 sm:$0xff]  }
 0x273   :  { %4181 = vmatpush1.bf16.msra.mxu1 %v7512_v5  ;;  %3799 = vmatprep.subr.bf16.mxu0 %v7513_v43  ;;  %v7517_v5 = vld [vmem:[%s10782_s7 + $0x1f4] ss:$8 sps:$4 sm:$0xff]  }
 0x274   :  { %2775 = vmatmul.mubr.bf16.gmra.mrb[164].mxu0 %v11061_v40  ;;  %4182 = vmatprep.subr.bf16.mxu1 %v7514_v17  ;;  %v7518_v43 = vld [vmem:[%s10782_s7 + $0x4f4] ss:$8 sps:$4 sm:$0xff]   ;;  %v7519_v17 = vld [vmem:[%s10782_s7 + $0x1f0] ss:$8 sps:$4 sm:$0xff]  }
 0x275   :  { %3709 = vmatmul.mubr.bf16.gmra.mrb[164].mxu1 %v11061_v40  ;;  %3803 = vmatprep.mubr.bf16.mxu0 %v11072_v13 }
 0x276   :  { %3800 = vmatpush1.bf16.msra.mxu0 %v7515_v36  ;;  %4186 = vmatprep.mubr.bf16.mxu1 %v11072_v13  ;;  %v7520_v13 = vld [vmem:[%s10782_s7 + $0x4f0] ss:$8 sps:$4 sm:$0xff]   ;;  %v7521_v36 = vld [vmem:[%s10782_s7 + $0x4] ss:$8 sps:$4 sm:$0xff]  }
 0x277   :  { %4183 = vmatpush1.bf16.msra.mxu1 %v7516_v30  ;;  %3801 = vmatprep.subr.bf16.mxu0 %v7517_v5  ;;  %v7522_v30 = vld [vmem:[%s10782_s7 + $0x304] ss:$8 sps:$4 sm:$0xff]   ;;  %v7523_v5 = vld [vmem:[%s10782_s7] ss:$8 sps:$4 sm:$0xff]  }
 0x278   :  { %4184 = vmatprep.subr.bf16.mxu1 %v7518_v43  ;;  %v7524_v43 = vld [vmem:[%s10782_s7 + $0x300] ss:$8 sps:$4 sm:$0xff]  }
 0x27a   :  { %3802 = vmatpush1.bf16.msra.mxu0 %v7519_v17  ;;  %v7525_v17 = vld [vmem:[%s10782_s7 + $0x14] ss:$8 sps:$4 sm:$0xff]  }
 0x27b   :  { %4185 = vmatpush1.bf16.msra.mxu1 %v7520_v13  ;;  %3880 = vmatprep.subr.bf16.mxu0 %v7521_v36  ;;  %v7527_v13 = vld [vmem:[%s10782_s7 + $0x10] ss:$8 sps:$4 sm:$0xff]   ;;  %v7529_v36 = vld [vmem:[%s10782_s7 + $0x24] ss:$8 sps:$4 sm:$0xff]  }
 0x27c   :  { %4263 = vmatprep.subr.bf16.mxu1 %v7522_v30  ;;  %v7530_v30 = vld [vmem:[%s10782_s7 + $0x324] ss:$8 sps:$4 sm:$0xff]  }
 0x27d   :  { %3804 = vmatmul.mubr.bf16.vlgmr.msra.gmra.mrb[168].mxu0 %v11081_v49 }
 0x27e   :  { %4187 = vmatmul.mubr.bf16.vlgmr.msra.gmra.mrb[168].mxu1 %v11081_v49  ;;  %3813 = vmatprep.mubr.bf16.mxu0 %v11082_v57  ;;  %v7526_v49 = vld [vmem:[%s10782_s7 + $0x314] ss:$8 sps:$4 sm:$0xff]  }
 0x27f   :  { %3881 = vmatpush1.bf16.msra.mxu0 %v7523_v5  ;;  %4196 = vmatprep.mubr.bf16.mxu1 %v11082_v57  ;;  %v7528_v57 = vld [vmem:[%s10782_s7 + $0x310] ss:$8 sps:$4 sm:$0xff]   ;;  %v7531_v5 = vld [vmem:[%s10782_s7 + $0x20] ss:$8 sps:$4 sm:$0xff]  }
 0x280   :  { %4264 = vmatpush1.bf16.msra.mxu1 %v7524_v43  ;;  %3882 = vmatprep.subr.bf16.mxu0 %v7525_v17  ;;  %v7532_v43 = vld [vmem:[%s10782_s7 + $0x320] ss:$8 sps:$4 sm:$0xff]   ;;  %v7533_v17 = vld [vmem:[%s10782_s7 + $0x34] ss:$8 sps:$4 sm:$0xff]  }
 0x281   :  { %4265 = vmatprep.subr.bf16.mxu1 %v7526_v49  ;;  %v7535_v49 = vld [vmem:[%s10782_s7 + $0x30] ss:$8 sps:$4 sm:$0xff]  }
 0x283   :  { %3883 = vmatpush1.bf16.msra.mxu0 %v7527_v13  ;;  %v7537_v13 = vld [vmem:[%s10782_s7 + $0x44] ss:$8 sps:$4 sm:$0xff]  }
 0x284   :  { %4266 = vmatpush1.bf16.msra.mxu1 %v7528_v57  ;;  %3884 = vmatprep.subr.bf16.mxu0 %v7529_v36  ;;  %v7538_v57 = vld [vmem:[%s10782_s7 + $0x344] ss:$8 sps:$4 sm:$0xff]  }
 0x285   :  { %3814 = vmatmul.mubr.bf16.gmra.mrb[172].mxu0 %v11091_v42  ;;  %4267 = vmatprep.subr.bf16.mxu1 %v7530_v30  ;;  %v11187_v36 = vld [vmem:[#allocation61_spill] sm:$0xff]  ;;  %v11188_v30 = vld [vmem:[#allocation36_spill] sm:$0xff] }
 0x286   :  { %4197 = vmatmul.mubr.bf16.gmra.mrb[172].mxu1 %v11091_v42  ;;  %3823 = vmatprep.mubr.bf16.mxu0 %v11092_v12  ;;  %v7534_v42 = vld [vmem:[%s10782_s7 + $0x334] ss:$8 sps:$4 sm:$0xff]  }
 0x287   :  { %3885 = vmatpush1.bf16.msra.mxu0 %v7531_v5  ;;  %4206 = vmatprep.mubr.bf16.mxu1 %v11092_v12  ;;  %v7536_v12 = vld [vmem:[%s10782_s7 + $0x330] ss:$8 sps:$4 sm:$0xff]  }
 0x288   :  { %4268 = vmatpush1.bf16.msra.mxu1 %v7532_v43  ;;  %3886 = vmatprep.subr.bf16.mxu0 %v7533_v17  ;;  %v11189_v5 = vld [vmem:[#allocation62_spill] sm:$0xff]  ;;  %v11190_v43 = vld [vmem:[#allocation11_spill] sm:$0xff] }
 0x289   :  { %4269 = vmatprep.subr.bf16.mxu1 %v7534_v42  ;;  %v11191_v17 = vld [vmem:[#allocation63_spill] sm:$0xff]  ;;  %v11192_v42 = vld [vmem:[#allocation64_spill] sm:$0xff] }
 0x28b   :  { %3887 = vmatpush1.bf16.msra.mxu0 %v7535_v49  ;;  %v11193_v49 = vld [vmem:[#allocation65_spill] sm:$0xff] }
 0x28c   :  { %4270 = vmatpush1.bf16.msra.mxu1 %v7536_v12  ;;  %3888 = vmatprep.subr.bf16.mxu0 %v7537_v13  ;;  %v11194_v12 = vld [vmem:[#allocation66_spill] sm:$0xff]  ;;  %v11195_v13 = vld [vmem:[#allocation23_spill] sm:$0xff] }
 0x28d   :  { %3824 = vmatmul.mubr.bf16.gmra.mrb[176].mxu0 %v11101_v50  ;;  %4271 = vmatprep.subr.bf16.mxu1 %v7538_v57  ;;  %v11196_v57 = vld [vmem:[#allocation4_spill] sm:$0xff] }
 0x28e   :  { %4207 = vmatmul.mubr.bf16.gmra.mrb[176].mxu1 %v11101_v50  ;;  %3833 = vmatprep.mubr.bf16.mxu0 %v11102_v31  ;;  %v11144_v50 = vld [vmem:[#allocation15_spill] sm:$0xff] }
 0x28f   :  { %3889 = vmatpush1.bf16.msra.mxu0 %v8860_v7  ;;  %4216 = vmatprep.mubr.bf16.mxu1 %v11102_v31  ;;  %v11145_v7 = vld [vmem:[#allocation26_spill] sm:$0xff]  ;;  %v11172_v31 = vld [vmem:[#allocation52_spill] sm:$0xff] }
 0x290   :  { %4272 = vmatpush1.bf16.msra.mxu1 %v8865_v56  ;;  %3890 = vmatprep.subr.bf16.mxu0 %v8871_v14  ;;  %v11146_v56 = vld [vmem:[#allocation27_spill] sm:$0xff]  ;;  %v11147_v14 = vld [vmem:[#allocation28_spill] sm:$0xff] }
 0x291   :  { %4273 = vmatprep.subr.bf16.mxu1 %v8876_v22  ;;  %v11148_v22 = vld [vmem:[#allocation37_spill] sm:$0xff] }
 0x293   :  { %3891 = vmatpush1.bf16.msra.mxu0 %v8887_v9  ;;  %v11149_v9 = vld [vmem:[#allocation29_spill] sm:$0xff] }
 0x294   :  { %4274 = vmatpush1.bf16.msra.mxu1 %v8895_v44  ;;  %3892 = vmatprep.subr.bf16.mxu0 %v8900_v0  ;;  %v11150_v44 = vld [vmem:[#allocation31_spill] sm:$0xff] }
 0x295   :  { %3834 = vmatmul.mubr.bf16.gmra.mrb[180].mxu0 %v11111_v16  ;;  %4275 = vmatprep.subr.bf16.mxu1 %v8910_v23  ;;  %v11152_v0 = vld [vmem:[#allocation39_spill] sm:$0xff]  ;;  %v11153_v23 = vld [vmem:[#allocation40_spill] sm:$0xff] }
 0x296   :  { %4217 = vmatmul.mubr.bf16.gmra.mrb[180].mxu1 %v11111_v16  ;;  %3843 = vmatprep.mubr.bf16.mxu0 %v11112_v45  ;;  %v11154_v16 = vld [vmem:[#allocation41_spill] sm:$0xff] }
 0x297   :  { %3893 = vmatpush1.bf16.msra.mxu0 %v8930_v25  ;;  %4226 = vmatprep.mubr.bf16.mxu1 %v11112_v45  ;;  %v11155_v25 = vld [vmem:[#allocation18_spill] sm:$0xff]  ;;  %v11161_v45 = vld [vmem:[#allocation45_spill] sm:$0xff] }
 0x298   :  { %4276 = vmatpush1.bf16.msra.mxu1 %v8935_v54  ;;  %3894 = vmatprep.subr.bf16.mxu0 %v8943_v19  ;;  %v11156_v54 = vld [vmem:[#allocation42_spill] sm:$0xff]  ;;  %v11157_v19 = vld [vmem:[#allocation43_spill] sm:$0xff] }
 0x299   :  { %4277 = vmatprep.subr.bf16.mxu1 %v8948_v6  ;;  %v11158_v6 = vld [vmem:[#allocation30_spill] sm:$0xff] }
 0x29b   :  { %3895 = vmatpush1.bf16.msra.mxu0 %v8959_v20  ;;  %v11159_v20 = vld [vmem:[#allocation44_spill] sm:$0xff] }
 0x29c   :  { %4278 = vmatpush1.bf16.msra.mxu1 %v8967_v26  ;;  %3896 = vmatprep.subr.bf16.mxu0 %v8972_v21  ;;  %v11160_v26 = vld [vmem:[#allocation33_spill] sm:$0xff] }
 0x29d   :  { %3844 = vmatmul.mubr.bf16.gmra.mrb[184].mxu0 %v11121_v52  ;;  %4279 = vmatprep.subr.bf16.mxu1 %v8982_v63 }
 0x29e   :  { %4227 = vmatmul.mubr.bf16.gmra.mrb[184].mxu1 %v11121_v52  ;;  %3853 = vmatprep.mubr.bf16.mxu0 %v11122_v60  ;;  %v11143_v52 = vld [vmem:[#allocation14_spill] sm:$0xff] }
 0x29f   :  { %3897 = vmatpush1.bf16.msra.mxu0 %v9002_v11  ;;  %4236 = vmatprep.mubr.bf16.mxu1 %v11122_v60  ;;  %v11186_v60 = vld [vmem:[#allocation24_spill] sm:$0xff] }
 0x2a0   :  { %4280 = vmatpush1.bf16.msra.mxu1 %v9007_v32  ;;  %3898 = vmatprep.subr.bf16.mxu0 %v9015_v51  ;;  %v11162_v51 = vld [vmem:[#allocation46_spill] sm:$0xff] }
 0x2a1   :  { %4281 = vmatprep.subr.bf16.mxu1 %v9020_v47  ;;  %v11163_v47 = vld [vmem:[#allocation47_spill] sm:$0xff] }
 0x2a3   :  { %3899 = vmatpush1.bf16.msra.mxu0 %v9031_v3 }
 0x2a4   :  { %4282 = vmatpush1.bf16.msra.mxu1 %v9039_v34  ;;  %3900 = vmatprep.subr.bf16.mxu0 %v9044_v53  ;;  %v11164_v53 = vld [vmem:[#allocation48_spill] sm:$0xff] }
 0x2a5   :  { %3854 = vmatmul.mubr.bf16.gmra.mrb[188].mxu0 %v11131_v10  ;;  %4283 = vmatprep.subr.bf16.mxu1 %v9054_v2 }
 0x2a6   :  { %4237 = vmatmul.mubr.bf16.gmra.mrb[188].mxu1 %v11131_v10  ;;  %3863 = vmatprep.mubr.bf16.mxu0 %v11132_v18  ;;  %v11185_v10 = vld [vmem:[#allocation21_spill] sm:$0xff] }
 0x2a7   :  { %3901 = vmatpush1.bf16.msra.mxu0 %v9074_v48  ;;  %4246 = vmatprep.mubr.bf16.mxu1 %v11132_v18  ;;  %v11184_v18 = vld [vmem:[#allocation60_spill] sm:$0xff] }
 0x2a8   :  { %4284 = vmatpush1.bf16.msra.mxu1 %v9079_v37  ;;  %3902 = vmatprep.subr.bf16.mxu0 %v9087_v33  ;;  %v11165_v37 = vld [vmem:[#allocation17_spill] sm:$0xff]  ;;  %v11166_v33 = vld [vmem:[#allocation20_spill] sm:$0xff] }
 0x2a9   :  { %4285 = vmatprep.subr.bf16.mxu1 %v9092_v58  ;;  %v11167_v58 = vld [vmem:[#allocation49_spill] sm:$0xff] }
 0x2ab   :  { %3903 = vmatpush1.bf16.msra.mxu0 %v9106_v29  ;;  %v11168_v29 = vld [vmem:[#allocation32_spill] sm:$0xff] }
 0x2ac   :  { %4286 = vmatpush1.bf16.msra.mxu1 %v9111_v55  ;;  %3904 = vmatprep.subr.bf16.mxu0 %v9118_v62  ;;  %v11169_v55 = vld [vmem:[#allocation50_spill] sm:$0xff]  ;;  %v11170_v62 = vld [vmem:[#allocation35_spill] sm:$0xff] }
 0x2ad   :  { %3864 = vmatmul.mubr.bf16.gmra.mrb[192].mxu0 %v11140_v4  ;;  %4287 = vmatprep.subr.bf16.mxu1 %v9123_v28  ;;  %v11171_v28 = vld [vmem:[#allocation51_spill] sm:$0xff] }
 0x2ae   :  { %4247 = vmatmul.mubr.bf16.gmra.mrb[192].mxu1 %v11140_v4  ;;  %3873 = vmatprep.mubr.bf16.mxu0 %v11061_v40  ;;  %v11183_v4 = vld [vmem:[#allocation59_spill] sm:$0xff] }
 0x2af   :  { %3905 = vmatpush1.bf16.msra.mxu0 %v9134_v39  ;;  %4256 = vmatprep.mubr.bf16.mxu1 %v11061_v40  ;;  %v11173_v39 = vld [vmem:[#allocation53_spill] sm:$0xff] }
 0x2b0   :  { %4288 = vmatpush1.bf16.msra.mxu1 %v9139_v15  ;;  %3906 = vmatprep.subr.bf16.mxu0 %v9146_v35  ;;  %v11174_v15 = vld [vmem:[#allocation54_spill] sm:$0xff]  ;;  %v11175_v35 = vld [vmem:[#allocation19_spill] sm:$0xff] }
 0x2b1   :  { %4289 = vmatprep.subr.bf16.mxu1 %v9151_v8  ;;  %v11176_v8 = vld [vmem:[#allocation22_spill] sm:$0xff] }
 0x2b3   :  { %3907 = vmatpush1.bf16.msra.mxu0 %v9162_v27  ;;  %v11177_v27 = vld [vmem:[#allocation55_spill] sm:$0xff] }
 0x2b4   :  { %4290 = vmatpush1.bf16.msra.mxu1 %v9167_v59  ;;  %3908 = vmatprep.subr.bf16.mxu0 %v9174_v46  ;;  %v11178_v59 = vld [vmem:[#allocation34_spill] sm:$0xff]  ;;  %v11179_v46 = vld [vmem:[#allocation56_spill] sm:$0xff] }
 0x2b5   :  { %3874 = vmatmul.mubr.bf16.gmra.mrb[196].mxu0 %v11061_v40  ;;  %4291 = vmatprep.subr.bf16.mxu1 %v9179_v24  ;;  %v11180_v24 = vld [vmem:[#allocation9_spill] sm:$0xff] }
 0x2b6   :  { %4257 = vmatmul.mubr.bf16.gmra.mrb[196].mxu1 %v11061_v40  ;;  %3912 = vmatprep.mubr.bf16.mxu0 %v8756_v61 }
 0x2b7   :  { %3909 = vmatpush1.bf16.msra.mxu0 %v9188_v38  ;;  %4295 = vmatprep.mubr.bf16.mxu1 %v8756_v61  ;;  %v11151_v61 = vld [vmem:[#allocation38_spill] sm:$0xff]  ;;  %v11181_v38 = vld [vmem:[#allocation57_spill] sm:$0xff] }
 0x2b8   :  { %4292 = vmatpush1.bf16.msra.mxu1 %v9193_v41  ;;  %3910 = vmatprep.subr.bf16.mxu0 %v11143_v52  ;;  %v11182_v41 = vld [vmem:[#allocation58_spill] sm:$0xff]  ;;  %v11197_v52 = vld [vmem:[#allocation67_spill] sm:$0xff] }
 0x2b9   :  { %4293 = vmatprep.subr.bf16.mxu1 %v11144_v50  ;;  %v11198_v50 = vld [vmem:[#allocation10_spill] sm:$0xff] }
 0x2bb   :  { %3911 = vmatpush1.bf16.msra.mxu0 %v11145_v7  ;;  %v11199_v7 = vld [vmem:[#allocation68_spill] sm:$0xff] }
 0x2bc   :  { %4294 = vmatpush1.bf16.msra.mxu1 %v11146_v56  ;;  %3989 = vmatprep.subr.bf16.mxu0 %v11147_v14  ;;  %v11200_v56 = vld [vmem:[#allocation13_spill] sm:$0xff] }
 0x2bd   :  { %4372 = vmatprep.subr.bf16.mxu1 %v11148_v22  ;;  %v11201_v14 = vld [vmem:[#allocation69_spill] sm:$0xff]  ;;  %v11202_v22 = vld [vmem:[#allocation70_spill] sm:$0xff] }
 0x2be   :  { %3913 = vmatmul.mubr.bf16.vlgmr.msra.gmra.mrb[168].mxu0 %v11149_v9 }
 0x2bf   :  { %4296 = vmatmul.mubr.bf16.vlgmr.msra.gmra.mrb[168].mxu1 %v11149_v9  ;;  %3922 = vmatprep.mubr.bf16.mxu0 %v11150_v44  ;;  %v11203_v9 = vld [vmem:[#allocation71_spill] sm:$0xff] }
 0x2c0   :  { %3990 = vmatpush1.bf16.msra.mxu0 %v11151_v61  ;;  %4305 = vmatprep.mubr.bf16.mxu1 %v11150_v44  ;;  %v11204_v61 = vld [vmem:[#allocation72_spill] sm:$0xff] }
 0x2c1   :  { %4373 = vmatpush1.bf16.msra.mxu1 %v11152_v0  ;;  %3991 = vmatprep.subr.bf16.mxu0 %v11153_v23  ;;  %v11205_v0 = vld [vmem:[#allocation25_spill] sm:$0xff]  ;;  %v11206_v23 = vld [vmem:[#allocation6_spill] sm:$0xff] }
 0x2c2   :  { %4374 = vmatprep.subr.bf16.mxu1 %v11154_v16  ;;  %v11207_v16 = vld [vmem:[#allocation73_spill] sm:$0xff] }
 0x2c4   :  { %3992 = vmatpush1.bf16.msra.mxu0 %v11155_v25  ;;  %v11208_v25 = vld [vmem:[#allocation12_spill] sm:$0xff] }
 0x2c5   :  { %4375 = vmatpush1.bf16.msra.mxu1 %v11156_v54  ;;  %3993 = vmatprep.subr.bf16.mxu0 %v11157_v19  ;;  %v11209_v54 = vld [vmem:[#allocation74_spill] sm:$0xff]  ;;  %v11210_v19 = vld [vmem:[#allocation75_spill] sm:$0xff] }
 0x2c6   :  { %3923 = vmatmul.mubr.bf16.gmra.mrb[172].mxu0 %v11158_v6  ;;  %4376 = vmatprep.subr.bf16.mxu1 %v11159_v20  ;;  %v11211_v20 = vld [vmem:[#allocation76_spill] sm:$0xff] }
 0x2c7   :  { %4306 = vmatmul.mubr.bf16.gmra.mrb[172].mxu1 %v11158_v6  ;;  %3932 = vmatprep.mubr.bf16.mxu0 %v11160_v26  ;;  %v2205_v21 = vpop.f32.mrb[156].mxu0  ;;  %v3139_v63 = vpop.f32.mrb[156].mxu1 }
 0x2c8   :  { %3994 = vmatpush1.bf16.msra.mxu0 %v11161_v45  ;;  %4315 = vmatprep.mubr.bf16.mxu1 %v11160_v26  ;;  %v2206_v11 = vpop.f32.mrb[157].mxu0  ;;  %v3140_v32 = vpop.f32.mrb[157].mxu1  ;;  %v11212_v21 = vld [vmem:[#allocation77_spill] sm:$0xff]  ;;  %v11213_v63 = vld [vmem:[#allocation78_spill] sm:$0xff] }
 0x2c9   :  { %4377 = vmatpush1.bf16.msra.mxu1 %v11162_v51  ;;  %3995 = vmatprep.subr.bf16.mxu0 %v11163_v47  ;;  %v2207_v3 = vpop.f32.mrb[158].mxu0  ;;  %v3141_v34 = vpop.f32.mrb[158].mxu1  ;;  %v11214_v45 = vld [vmem:[#allocation5_spill] sm:$0xff]  ;;  %v11215_v11 = vld [vmem:[#allocation8_spill] sm:$0xff]  ;;  %v11216_v32 = vld [vmem:[#allocation79_spill] sm:$0xff] }
 0x2ca   :  { %4378 = vmatprep.subr.bf16.mxu1 %v11164_v53  ;;  %v2208_v2 = vpop.f32.mrb[159].mxu0  ;;  %v3142_v48 = vpop.f32.mrb[159].mxu1  ;;  %v11217_v51 = vld [vmem:[#allocation80_spill] sm:$0xff]  ;;  %v11218_v47 = vld [vmem:[#allocation81_spill] sm:$0xff]  ;;  %v11219_v3 = vld [vmem:[#allocation82_spill] sm:$0xff] }
 0x2cb   :  { %v11220_v34 = vld [vmem:[#allocation83_spill] sm:$0xff]  ;;  %v11222_v2 = vld [vmem:[#allocation84_spill] sm:$0xff] }
 0x2cc   :  { %3996 = vmatpush1.bf16.msra.mxu0 %v11165_v37  ;;  %v11221_v53 = vld [vmem:[#allocation7_spill] sm:$0xff] }
 0x2cd   :  { %4379 = vmatpush1.bf16.msra.mxu1 %v11166_v33  ;;  %3997 = vmatprep.subr.bf16.mxu0 %v11167_v58 }
 0x2ce   :  { %3933 = vmatmul.mubr.bf16.gmra.mrb[176].mxu0 %v11168_v29  ;;  %4380 = vmatprep.subr.bf16.mxu1 %v11169_v55 }
 0x2cf   :  { %4316 = vmatmul.mubr.bf16.gmra.mrb[176].mxu1 %v11168_v29  ;;  %3942 = vmatprep.mubr.bf16.mxu0 %v11170_v62 }
 0x2d0   :  { %3998 = vmatpush1.bf16.msra.mxu0 %v11171_v28  ;;  %4325 = vmatprep.mubr.bf16.mxu1 %v11170_v62  ;;  %v7346_v28 = vld [vmem:[%s10784_s9 + $0x80] sm:$0xff]  }
 0x2d1   :  { %4381 = vmatpush1.bf16.msra.mxu1 %v11172_v31  ;;  %3999 = vmatprep.subr.bf16.mxu0 %v11173_v39 }
 0x2d2   :  { %4382 = vmatprep.subr.bf16.mxu1 %v11174_v15 }
 0x2d4   :  { %4000 = vmatpush1.bf16.msra.mxu0 %v11175_v35 }
 0x2d5   :  { %4383 = vmatpush1.bf16.msra.mxu1 %v11176_v8  ;;  %4001 = vmatprep.subr.bf16.mxu0 %v11177_v27  ;;  %v7348_v27 = vld [vmem:[%s10784_s9 + $0x88] sm:$0xff]  }
 0x2d6   :  { %3943 = vmatmul.mubr.bf16.gmra.mrb[180].mxu0 %v11178_v59  ;;  %4384 = vmatprep.subr.bf16.mxu1 %v11179_v46 }
 0x2d7   :  { %4326 = vmatmul.mubr.bf16.gmra.mrb[180].mxu1 %v11178_v59  ;;  %3952 = vmatprep.mubr.bf16.mxu0 %v11180_v24 }
 0x2d8   :  { %4002 = vmatpush1.bf16.msra.mxu0 %v11181_v38  ;;  %4335 = vmatprep.mubr.bf16.mxu1 %v11180_v24 }
 0x2d9   :  { %4385 = vmatpush1.bf16.msra.mxu1 %v11182_v41  ;;  %4003 = vmatprep.subr.bf16.mxu0 %v11183_v4 }
 0x2da   :  { %4386 = vmatprep.subr.bf16.mxu1 %v11184_v18  ;;  %v7350_v18 = vld [vmem:[%s10784_s9 + $0x90] sm:$0xff]  }
 0x2dc   :  { %4004 = vmatpush1.bf16.msra.mxu0 %v11185_v10 }
 0x2dd   :  { %4387 = vmatpush1.bf16.msra.mxu1 %v11186_v60  ;;  %4005 = vmatprep.subr.bf16.mxu0 %v11187_v36  ;;  %v7351_v60 = vld [vmem:[%s10784_s9 + $0x40] sm:$0xff]   ;;  %v7352_v36 = vld [vmem:[%s10784_s9 + $0xd8] sm:$0xff]  }
 0x2de   :  { %3953 = vmatmul.mubr.bf16.gmra.mrb[184].mxu0 %v11188_v30  ;;  %4388 = vmatprep.subr.bf16.mxu1 %v11189_v5  ;;  %v7353_v5 = vld [vmem:[%s10784_s9] sm:$0xff]  }
 0x2df   :  { %4336 = vmatmul.mubr.bf16.gmra.mrb[184].mxu1 %v11188_v30  ;;  %3962 = vmatprep.mubr.bf16.mxu0 %v11190_v43 }
 0x2e0   :  { %4006 = vmatpush1.bf16.msra.mxu0 %v11191_v17  ;;  %4345 = vmatprep.mubr.bf16.mxu1 %v11190_v43 }
 0x2e1   :  { %4389 = vmatpush1.bf16.msra.mxu1 %v11192_v42  ;;  %4007 = vmatprep.subr.bf16.mxu0 %v11193_v49  ;;  %v7354_v42 = vld [vmem:[%s10784_s9 + $0x98] sm:$0xff]  }
 0x2e2   :  { %4390 = vmatprep.subr.bf16.mxu1 %v11194_v12 }
 0x2e4   :  { %4008 = vmatpush1.bf16.msra.mxu0 %v11195_v13  ;;  %v7355_v13 = vld [vmem:[%s10784_s9 + $0x48] sm:$0xff]  }
 0x2e5   :  { %4391 = vmatpush1.bf16.msra.mxu1 %v11196_v57  ;;  %4009 = vmatprep.subr.bf16.mxu0 %v11197_v52  ;;  %v7356_v57 = vld [vmem:[%s10784_s9 + $0x8] sm:$0xff]  }
 0x2e6   :  { %3963 = vmatmul.mubr.bf16.gmra.mrb[188].mxu0 %v11198_v50  ;;  %4392 = vmatprep.subr.bf16.mxu1 %v11199_v7 }
 0x2e7   :  { %4346 = vmatmul.mubr.bf16.gmra.mrb[188].mxu1 %v11198_v50  ;;  %3972 = vmatprep.mubr.bf16.mxu0 %v11200_v56 }
 0x2e8   :  { %4010 = vmatpush1.bf16.msra.mxu0 %v11201_v14  ;;  %4355 = vmatprep.mubr.bf16.mxu1 %v11200_v56 }
 0x2e9   :  { %4393 = vmatpush1.bf16.msra.mxu1 %v11202_v22  ;;  %4011 = vmatprep.subr.bf16.mxu0 %v11203_v9 }
 0x2ea   :  { %4394 = vmatprep.subr.bf16.mxu1 %v11204_v61 }
 0x2ec   :  { %4012 = vmatpush1.bf16.msra.mxu0 %v11205_v0  ;;  %v7357_v0 = vld [vmem:[%s10784_s9 + $0x50] sm:$0xff]  }
 0x2ed   :  { %4395 = vmatpush1.bf16.msra.mxu1 %v11206_v23  ;;  %4013 = vmatprep.subr.bf16.mxu0 %v11207_v16  ;;  %v7358_v16 = vld [vmem:[%s10784_s9 + $0xe0] sm:$0xff]  }
 0x2ee   :  { %3973 = vmatmul.mubr.bf16.gmra.mrb[192].mxu0 %v11208_v25  ;;  %4396 = vmatprep.subr.bf16.mxu1 %v11209_v54  ;;  %v7359_v54 = vld [vmem:[%s10784_s9 + $0x10] sm:$0xff]  }
 0x2ef   :  { %4356 = vmatmul.mubr.bf16.gmra.mrb[192].mxu1 %v11208_v25  ;;  %3982 = vmatprep.mubr.bf16.mxu0 %v11061_v40 }
 0x2f0   :  { %4014 = vmatpush1.bf16.msra.mxu0 %v11210_v19  ;;  %4365 = vmatprep.mubr.bf16.mxu1 %v11061_v40 }
 0x2f1   :  { %4397 = vmatpush1.bf16.msra.mxu1 %v11211_v20  ;;  %4015 = vmatprep.subr.bf16.mxu0 %v11212_v21 }
 0x2f2   :  { %4398 = vmatprep.subr.bf16.mxu1 %v11213_v63 }
 0x2f4   :  { %4016 = vmatpush1.bf16.msra.mxu0 %v11214_v45 }
 0x2f5   :  { %4399 = vmatpush1.bf16.msra.mxu1 %v11215_v11  ;;  %4017 = vmatprep.subr.bf16.mxu0 %v11216_v32 }
 0x2f6   :  { %3983 = vmatmul.mubr.bf16.gmra.mrb[200].mxu0 %v11061_v40  ;;  %4400 = vmatprep.subr.bf16.mxu1 %v11217_v51 }
 0x2f7   :  { %4366 = vmatmul.mubr.bf16.gmra.mrb[200].mxu1 %v11061_v40  ;;  %4021 = vmatprep.mubr.bf16.mxu0 %v11150_v44 }
 0x2f8   :  { %4018 = vmatpush1.bf16.msra.mxu0 %v11218_v47  ;;  %4404 = vmatprep.mubr.bf16.mxu1 %v11150_v44 }
 0x2f9   :  { %4401 = vmatpush1.bf16.msra.mxu1 %v11219_v3  ;;  %4019 = vmatprep.subr.bf16.mxu0 %v9616_v1 }
 0x2fa   :  { %4402 = vmatprep.subr.bf16.mxu1 %v11220_v34 }
 0x2fc   :  { %4020 = vmatpush1.bf16.msra.mxu0 %v11221_v53 }
 0x2fd   :  { %4403 = vmatpush1.bf16.msra.mxu1 %v11222_v2 }
 0x2fe   :  { %6632 = vmatprep.subr.bf16.mxu1 %v7351_v60 }
 0x2ff   :  { %4022 = vmatmul.mubr.bf16.vlgmr.msra.gmra.mrb[168].mxu0 %v11158_v6 }
 0x300   :  { %4405 = vmatmul.mubr.bf16.vlgmr.msra.gmra.mrb[168].mxu1 %v11158_v6  ;;  %4031 = vmatprep.mubr.bf16.mxu0 %v11160_v26 }
 0x301   :  { %4414 = vmatprep.mubr.bf16.mxu1 %v11160_v26  ;;  %v7345_v26 = vld [vmem:[%s10784_s9 + $0xc0] sm:$0xff]   ;;  %6633 = vmatpush3.bf16.msra.mxu1 %v7353_v5 }
 0x302   :  { %6610 = vmatprep.subr.bf16.mxu0 %v7345_v26  ;;  %6634 = vmatprep.subr.bf16.mxu1 %v7355_v13 }
 0x303   :  { %6611 = vmatpush3.bf16.msra.mxu0 %v7346_v28 }
 0x305   :  { %6635 = vmatpush3.bf16.msra.mxu1 %v7356_v57 }
 0x306   :  { %6636 = vmatprep.subr.bf16.mxu1 %v7357_v0 }
 0x307   :  { %4032 = vmatmul.mubr.bf16.gmra.mrb[172].mxu0 %v11168_v29  ;;  %v2474_v44 = vpop.f32.mrb[160].mxu0  ;;  %v3408_v48 = vpop.f32.mrb[160].mxu1 }
 0x308   :  { %4415 = vmatmul.mubr.bf16.gmra.mrb[172].mxu1 %v11168_v29  ;;  %4041 = vmatprep.mubr.bf16.mxu0 %v11170_v62  ;;  %v2475_v1 = vpop.f32.mrb[161].mxu0  ;;  %v3409_v37 = vpop.f32.mrb[161].mxu1 }
 0x309   :  { %4424 = vmatprep.mubr.bf16.mxu1 %v11170_v62  ;;  %v2476_v33 = vpop.f32.mrb[162].mxu0  ;;  %v3410_v58 = vpop.f32.mrb[162].mxu1  ;;  %v7347_v62 = vld [vmem:[%s10784_s9 + $0xc8] sm:$0xff]   ;;  %6637 = vmatpush3.bf16.msra.mxu1 %v7359_v54  ;;  %v7360_v37 = vld [vmem:[%s10784_s9 + $0xa0] sm:$0xff]  }
 0x30a   :  { %v2477_v55 = vpop.f32.mrb[163].mxu0  ;;  %v3411_v6 = vpop.f32.mrb[163].mxu1  ;;  %6612 = vmatprep.subr.bf16.mxu0 %v7347_v62 }
 0x30b   :  { %6613 = vmatpush3.bf16.msra.mxu0 %v7348_v27 }
 0x30f   :  { %4042 = vmatmul.mubr.bf16.gmra.mrb[176].mxu0 %v11178_v59  ;;  %v10110_v29 = vpop.f32.mrb[128].mxu0 }
 0x310   :  { %4425 = vmatmul.mubr.bf16.gmra.mrb[176].mxu1 %v11178_v59  ;;  %4051 = vmatprep.mubr.bf16.mxu0 %v11180_v24  ;;  %v10117_v31 = vpop.f32.mrb[128].mxu1  ;;  %v10119_v39 = vpop.f32.mrb[129].mxu0  ;;  %v7349_v59 = vld [vmem:[%s10784_s9 + $0xd0] sm:$0xff]  }
 0x311   :  { %4434 = vmatprep.mubr.bf16.mxu1 %v11180_v24  ;;  %v10124_v35 = vpop.f32.mrb[129].mxu1  ;;  %v10126_v8 = vpop.f32.mrb[130].mxu0  ;;  %6614 = vmatprep.subr.bf16.mxu0 %v7349_v59 }
 0x312   :  { %v10136_v24 = vpop.f32.mrb[130].mxu1  ;;  %v10138_v38 = vpop.f32.mrb[131].mxu0  ;;  %6615 = vmatpush3.bf16.msra.mxu0 %v7350_v18 }
 0x313   :  { %v10142_v4 = vpop.f32.mrb[131].mxu1  ;;  %6616 = vmatprep.subr.bf16.mxu0 %v7352_v36 }
 0x316   :  { %6617 = vmatpush3.bf16.msra.mxu0 %v7354_v42 }
 0x317   :  { %4052 = vmatmul.mubr.bf16.gmra.mrb[180].mxu0 %v11188_v30  ;;  %v10159_v17 = vpop.f32.mrb[132].mxu0  ;;  %6618 = vmatprep.subr.bf16.mxu0 %v7358_v16 }
 0x318   :  { %4435 = vmatmul.mubr.bf16.gmra.mrb[180].mxu1 %v11188_v30  ;;  %4061 = vmatprep.mubr.bf16.mxu0 %v11190_v43  ;;  %v10166_v49 = vpop.f32.mrb[132].mxu1  ;;  %v10168_v12 = vpop.f32.mrb[133].mxu0 }
 0x319   :  { %4444 = vmatprep.mubr.bf16.mxu1 %v11190_v43  ;;  %v10179_v30 = vpop.f32.mrb[133].mxu1  ;;  %v10181_v7 = vpop.f32.mrb[134].mxu0 }
 0x31a   :  { %v10185_v22 = vpop.f32.mrb[134].mxu1  ;;  %v10187_v9 = vpop.f32.mrb[135].mxu0  ;;  %6619 = vmatpush3.bf16.msra.mxu0 %v7360_v37  ;;  %v7371_v37 = vld [vmem:[%s10784_s9 + $0x30] sm:$0xff]  }
 0x31b   :  { %v10191_v61 = vpop.f32.mrb[135].mxu1 }
 0x31f   :  { %4062 = vmatmul.mubr.bf16.gmra.mrb[184].mxu0 %v11198_v50  ;;  %v10205_v19 = vpop.f32.mrb[136].mxu0 }
 0x320   :  { %4445 = vmatmul.mubr.bf16.gmra.mrb[184].mxu1 %v11198_v50  ;;  %4071 = vmatprep.mubr.bf16.mxu0 %v11200_v56  ;;  %v10209_v20 = vpop.f32.mrb[136].mxu1  ;;  %v10211_v21 = vpop.f32.mrb[137].mxu0 }
 0x321   :  { %4454 = vmatprep.mubr.bf16.mxu1 %v11200_v56  ;;  %v10216_v45 = vpop.f32.mrb[137].mxu1  ;;  %v10218_v11 = vpop.f32.mrb[138].mxu0 }
 0x322   :  { %v10222_v51 = vpop.f32.mrb[138].mxu1  ;;  %v10224_v50 = vpop.f32.mrb[139].mxu0 }
 0x323   :  { %v10228_v3 = vpop.f32.mrb[139].mxu1 }
 0x327   :  { %4072 = vmatmul.mubr.bf16.gmra.mrb[188].mxu0 %v11208_v25  ;;  %v10233_v34 = vpop.f32.mrb[140].mxu0 }
 0x328   :  { %4455 = vmatmul.mubr.bf16.gmra.mrb[188].mxu1 %v11208_v25  ;;  %v10236_v53 = vpop.f32.mrb[140].mxu1  ;;  %v10238_v2 = vpop.f32.mrb[141].mxu0  ;;  %4081 = vmatprep.mubr.bf16.mxu0 %v11061_v40 }
 0x329   :  { %v10243_v48 = vpop.f32.mrb[141].mxu1  ;;  %v10245_v1 = vpop.f32.mrb[142].mxu0  ;;  %4464 = vmatprep.mubr.bf16.mxu1 %v11061_v40 }
 0x32a   :  { %v10250_v33 = vpop.f32.mrb[142].mxu1  ;;  %v10252_v25 = vpop.f32.mrb[143].mxu0 }
 0x32b   :  { %v10256_v55 = vpop.f32.mrb[143].mxu1 }
 0x32f   :  { %4082 = vmatmul.mubr.bf16.gmra.mrb[192].mxu0 %v11061_v40  ;;  %v10261_v26 = vpop.f32.mrb[144].mxu0 }
 0x330   :  { %4465 = vmatmul.mubr.bf16.gmra.mrb[192].mxu1 %v11061_v40  ;;  %v10264_v28 = vpop.f32.mrb[144].mxu1  ;;  %v10266_v62 = vpop.f32.mrb[145].mxu0  ;;  %4091 = vmatprep.mubr.bf16.mxu0 %v11061_v40 }
 0x331   :  { %v10271_v59 = vpop.f32.mrb[145].mxu1  ;;  %v10273_v18 = vpop.f32.mrb[146].mxu0  ;;  %4474 = vmatprep.mubr.bf16.mxu1 %v11061_v40 }
 0x332   :  { %v10278_v36 = vpop.f32.mrb[146].mxu1  ;;  %v10280_v5 = vpop.f32.mrb[147].mxu0 }
 0x333   :  { %v10284_v13 = vpop.f32.mrb[147].mxu1 }
 0x337   :  { %v10288_v0 = vpop.f32.mrb[148].mxu0  ;;  %4092 = vmatmul.mubr.bf16.gmra.mrb[204].mxu0 %v11061_v40 }
 0x338   :  { %v10291_v16 = vpop.f32.mrb[148].mxu1  ;;  %v10293_v54 = vpop.f32.mrb[149].mxu0  ;;  %4475 = vmatmul.mubr.bf16.gmra.mrb[204].mxu1 %v11061_v40  ;;  %v7361_v40 = vld [vmem:[%s10784_s9 + $0x58] sm:$0xff]  }
 0x339   :  { %v10298_v27 = vpop.f32.mrb[149].mxu1  ;;  %v10300_v42 = vpop.f32.mrb[150].mxu0  ;;  %6638 = vmatprep.subr.bf16.mxu1 %v7361_v40  ;;  %v7373_v40 = vld [vmem:[%s10784_s9 + $0x78] sm:$0xff]  }
 0x33a   :  { %v10304_v6 = vpop.f32.mrb[150].mxu1  ;;  %v10306_v58 = vpop.f32.mrb[151].mxu0 }
 0x33b   :  { %11223 = vst [vmem:[#allocation14_spill] sm:$0xff] %v10306_v58  ;;  %v10310_v44 = vpop.f32.mrb[151].mxu1 }
 0x33c   :  { %11224 = vst [vmem:[#allocation15_spill] sm:$0xff] %v10310_v44 }
 0x33f   :  { %v10314_v60 = vpop.f32.mrb[152].mxu0 }
 0x340   :  { %11225 = vst [vmem:[#allocation26_spill] sm:$0xff] %v10314_v60  ;;  %v10316_v56 = vpop.f32.mrb[152].mxu1  ;;  %v10318_v47 = vpop.f32.mrb[153].mxu0 }
 0x341   :  { %11226 = vst [vmem:[#allocation27_spill] sm:$0xff] %v10316_v56  ;;  %11227 = vst [vmem:[#allocation28_spill] sm:$0xff] %v10318_v47  ;;  %v10322_v32 = vpop.f32.mrb[153].mxu1  ;;  %v10324_v63 = vpop.f32.mrb[154].mxu0 }
 0x342   :  { %11228 = vst [vmem:[#allocation37_spill] sm:$0xff] %v10322_v32  ;;  %11229 = vst [vmem:[#allocation29_spill] sm:$0xff] %v10324_v63  ;;  %v10328_v23 = vpop.f32.mrb[154].mxu1  ;;  %v10330_v43 = vpop.f32.mrb[155].mxu0 }
 0x343   :  { %11230 = vst [vmem:[#allocation31_spill] sm:$0xff] %v10328_v23  ;;  %11231 = vst [vmem:[#allocation38_spill] sm:$0xff] %v10330_v43  ;;  %v10334_v14 = vpop.f32.mrb[155].mxu1 }
 0x344   :  { %11232 = vst [vmem:[#allocation39_spill] sm:$0xff] %v10334_v14 }
 0x347   :  { %v2776_v57 = vpop.f32.mrb[164].mxu0 }
 0x348   :  { %v3710_v10 = vpop.f32.mrb[164].mxu1  ;;  %v2777_v41 = vpop.f32.mrb[165].mxu0  ;;  %v7362_v57 = vld [vmem:[%s10784_s9 + $0x18] sm:$0xff]  }
 0x349   :  { %v3711_v46 = vpop.f32.mrb[165].mxu1  ;;  %v2778_v15 = vpop.f32.mrb[166].mxu0  ;;  %v7365_v41 = vld [vmem:[%s10784_s9 + $0x20] sm:$0xff]   ;;  %6639 = vmatpush3.bf16.msra.mxu1 %v7362_v57  ;;  %v7367_v10 = vld [vmem:[%s10784_s9 + $0x68] sm:$0xff]   ;;  %v7374_v57 = vld [vmem:[%s10784_s9 + $0x38] sm:$0xff]  }
 0x34a   :  { %v3712_v56 = vpop.f32.mrb[166].mxu1  ;;  %v2779_v60 = vpop.f32.mrb[167].mxu0  ;;  %v7363_v15 = vld [vmem:[%s10784_s9 + $0x60] sm:$0xff]   ;;  %v7364_v46 = vld [vmem:[%s10784_s9 + $0xe8] sm:$0xff]  }
 0x34b   :  { %v3713_v32 = vpop.f32.mrb[167].mxu1  ;;  %6640 = vmatprep.subr.bf16.mxu1 %v7363_v15  ;;  %6620 = vmatprep.subr.bf16.mxu0 %v7364_v46  ;;  %v7369_v56 = vld [vmem:[%s10784_s9 + $0x70] sm:$0xff]   ;;  %v7366_v60 = vld [vmem:[%s10784_s9 + $0xa8] sm:$0xff]   ;;  %v7375_v46 = vld [vmem:[%s10784_s9 + $0x1c0] sm:$0xff]  }
 0x34c   :  { %v7368_v32 = vld [vmem:[%s10784_s9 + $0x28] sm:$0xff]   ;;  %6621 = vmatpush3.bf16.msra.mxu0 %v7366_v60  ;;  %v7370_v15 = vld [vmem:[%s10784_s9 + $0xf0] sm:$0xff]  }
 0x34d   :  { %6641 = vmatpush3.bf16.msra.mxu1 %v7365_v41  ;;  %6622 = vmatprep.subr.bf16.mxu0 %v7370_v15  ;;  %v7372_v41 = vld [vmem:[%s10784_s9 + $0xb0] sm:$0xff]  }
 0x34e   :  { %6642 = vmatprep.subr.bf16.mxu1 %v7367_v10  ;;  %v7376_v10 = vld [vmem:[%s10784_s9 + $0xf8] sm:$0xff]  }
 0x350   :  { %6623 = vmatpush3.bf16.msra.mxu0 %v7372_v41 }
 0x351   :  { %6643 = vmatpush3.bf16.msra.mxu1 %v7368_v32  ;;  %v7378_v32 = vld [vmem:[%s10784_s9 + $0xb8] sm:$0xff]   ;;  %6624 = vmatprep.subr.bf16.mxu0 %v7376_v10 }
 0x352   :  { %6644 = vmatprep.subr.bf16.mxu1 %v7369_v56  ;;  %v7381_v56 = vld [vmem:[%s10784_s9 + $0x140] sm:$0xff]  }
 0x354   :  { %6625 = vmatpush3.bf16.msra.mxu0 %v7378_v32 }
 0x355   :  { %6645 = vmatpush3.bf16.msra.mxu1 %v7371_v37  ;;  %6654 = vmatprep.subr.bf16.mxu0 %v7381_v56  ;;  %v4537_v56 = vld [vmem:[%s10785_s8] sm:$0x3] }
 0x356   :  { %6646 = vmatprep.subr.bf16.mxu1 %v7373_v40 }
 0x359   :  { %6647 = vmatpush3.bf16.msra.mxu1 %v7374_v57 }
 0x35a   :  { %6676 = vmatprep.subr.bf16.mxu1 %v7375_v46 }
 0x388   :  { %v3875_v37 = vpop.f32.mrb[196].mxu0 }
 0x389   :  { %v4258_v60 = vpop.f32.mrb[196].mxu1  ;;  %v3876_v40 = vpop.f32.mrb[197].mxu0 }
 0x38a   :  { %v4259_v57 = vpop.f32.mrb[197].mxu1  ;;  %v3877_v15 = vpop.f32.mrb[198].mxu0  ;;  %v11233_v60 = vmax.f32 %v10110_v29, %v10117_v31  ;;  %v11238_v29 = vmax.f32 %v10126_v8, %v10136_v24 }
 0x38b   :  { %v4260_v46 = vpop.f32.mrb[198].mxu1  ;;  %v3878_v41 = vpop.f32.mrb[199].mxu0  ;;  %v11234_v15 = vld [vmem:[#allocation16_spill] sm:$0xff] }
 0x38c   :  { %v4261_v52 = vpop.f32.mrb[199].mxu1 }
 0x38d   :  { %v11235_v52 = vsub.s32 0, %v11234_v15 }
 0x3c9   :  { %v3984_v14 = vpop.f32.mrb[200].mxu0 }
 0x3ca   :  { %v4367_v43 = vpop.f32.mrb[200].mxu1  ;;  %v3985_v23 = vpop.f32.mrb[201].mxu0  ;;  %v10403_v14 = vrot.slane %v4537_v56, %v11235_v52  ;;  %v11239_v52 = vmax.f32 %v10138_v38, %v10142_v4 }
 0x3cb   :  { %v4368_v63 = vpop.f32.mrb[201].mxu1  ;;  %v3986_v47 = vpop.f32.mrb[202].mxu0  ;;  %v11236_v23 = vmax.f32 %v10119_v39, %v10124_v35 }
 0x3cc   :  { %v4369_v10 = vpop.f32.mrb[202].mxu1  ;;  %v3987_v32 = vpop.f32.mrb[203].mxu0 }
 0x3cd   :  { %v4370_v44 = vpop.f32.mrb[203].mxu1 }
 0x3ce   :  { %v11237_v44 = vsub.s32 1, %v11234_v15 }
 0x3d0   :  { %v10410_v46 = vrot.slane %v4537_v56, %v11237_v44 }
 0x3d2   :  { %v4023_v37 = vpop.f32.mrb[168].mxu0 }
 0x3d3   :  { %v4126_v40 = vmax.f32 %v11233_v60, %v4023_v37  ;;  %v4406_v57 = vpop.f32.mrb[168].mxu1  ;;  %v4025_v43 = vpop.f32.mrb[169].mxu0 }
 0x3d4   :  { %v4127_v63 = vmax.f32 %v11236_v23, %v4025_v43  ;;  %v4408_v47 = vpop.f32.mrb[169].mxu1  ;;  %v4027_v41 = vpop.f32.mrb[170].mxu0 }
 0x3d5   :  { %v4509_v10 = vmax.f32 %v4126_v40, %v4406_v57  ;;  %v4128_v31 = vmax.f32 %v11238_v29, %v4027_v41  ;;  %v4410_v32 = vpop.f32.mrb[170].mxu1  ;;  %v4029_v37 = vpop.f32.mrb[171].mxu0 }
 0x3d6   :  { %v4510_v60 = vmax.f32 %v4127_v63, %v4408_v47  ;;  %v4129_v58 = vmax.f32 %v11239_v52, %v4029_v37  ;;  %v4412_v39 = vpop.f32.mrb[171].mxu1  ;;  %v11240_v63 = vmax.f32 %v10159_v17, %v10166_v49  ;;  %v11243_v49 = vmax.f32 %v10187_v9, %v10191_v61 }
 0x3d7   :  { %v4549_v35 = vadd.f32 %v10403_v14, %v4509_v10  ;;  %v4511_v43 = vmax.f32 %v4128_v31, %v4410_v32  ;;  %v11241_v10 = vmax.f32 %v10168_v12, %v10179_v30  ;;  %v7377_v12 = vld [vmem:[%s10784_s9 + $0x180] sm:$0xff]  }
 0x3d8   :  { %v4550_v56 = vadd.f32 %v10410_v46, %v4510_v60  ;;  %v4512_v15 = vmax.f32 %v4129_v58, %v4412_v39  ;;  %v11242_v60 = vmax.f32 %v10181_v7, %v10185_v22  ;;  %v7379_v7 = vld [vmem:[%s10784_s9 + $0x1c8] sm:$0xff]  }
 0x3d9   :  { %v4551_v40 = vadd.f32 %v10403_v14, %v4511_v43  ;;  %v4577_v24 = vmax.f32 %v4549_v35, 0.0 }
 0x3da   :  { %v4552_v57 = vadd.f32 %v10410_v46, %v4512_v15  ;;  %v4033_v8 = vpop.f32.mrb[172].mxu0  ;;  %v4578_v44 = vmax.f32 %v4550_v56, 0.0 }
 0x3db   :  { %v4579_v23 = vmax.f32 %v4551_v40, 0.0  ;;  %v4130_v47 = vmax.f32 %v11240_v63, %v4033_v8  ;;  %v4416_v38 = vpop.f32.mrb[172].mxu1  ;;  %v4035_v4 = vpop.f32.mrb[173].mxu0 }
 0x3dc   :  { %v4580_v41 = vmax.f32 %v4552_v57, 0.0  ;;  %v4131_v29 = vmax.f32 %v11241_v10, %v4035_v4  ;;  %v4418_v58 = vpop.f32.mrb[173].mxu1  ;;  %v4037_v31 = vpop.f32.mrb[174].mxu0 }
 0x3dd   :  { %v4605_v32 = vpack.c.bf16 %v4579_v23, %v4577_v24  ;;  %v4513_v37 = vmax.f32 %v4130_v47, %v4416_v38  ;;  %v4132_v52 = vmax.f32 %v11242_v60, %v4037_v31  ;;  %v4420_v39 = vpop.f32.mrb[174].mxu1  ;;  %v4039_v35 = vpop.f32.mrb[175].mxu0  ;;  %v7380_v24 = vld [vmem:[%s10784_s9 + $0x188] sm:$0xff]   ;;  %v11244_v47 = vmax.f32 %v10205_v19, %v10209_v20 }
 0x3de   :  { %v4514_v17 = vmax.f32 %v4131_v29, %v4418_v58  ;;  %v4133_v43 = vmax.f32 %v11243_v49, %v4039_v35  ;;  %v4422_v56 = vpop.f32.mrb[175].mxu1  ;;  %v4606_v15 = vpack.c.bf16 %v4580_v41, %v4578_v44  ;;  %v7382_v41 = vld [vmem:[%s10784_s9 + $0x1d0] sm:$0xff]   ;;  %v11245_v58 = vmax.f32 %v10211_v21, %v10216_v45  ;;  %v7383_v21 = vld [vmem:[%s10784_s9 + $0x100] sm:$0xff]  }
 0x3df   :  { %v4553_v30 = vadd.f32 %v10403_v14, %v4513_v37  ;;  %v4515_v40 = vmax.f32 %v4132_v52, %v4420_v39  ;;  %v11246_v19 = vmax.f32 %v10218_v11, %v10222_v51  ;;  %v11247_v49 = vmax.f32 %v10224_v50, %v10228_v3  ;;  %v7384_v45 = vld [vmem:[%s10784_s9 + $0x190] sm:$0xff]   ;;  %v7385_v50 = vld [vmem:[%s10784_s9 + $0x148] sm:$0xff]   ;;  %v7386_v3 = vld [vmem:[%s10784_s9 + $0x1d8] sm:$0xff]  }
 0x3e0   :  { %v4554_v22 = vadd.f32 %v10410_v46, %v4514_v17  ;;  %v4516_v57 = vmax.f32 %v4133_v43, %v4422_v56  ;;  %4949 = vmatprep.mubr.bf16.mxu1 %v4606_v15 }
 0x3e1   :  { %v4555_v9 = vadd.f32 %v10403_v14, %v4515_v40  ;;  %4950 = vmatmul.mubr.bf16.vlgmr.msra.gmra.mrb[208].mxu1 %v4605_v32  ;;  %v4581_v23 = vmax.f32 %v4553_v30, 0.0 }
 0x3e2   :  { %v4556_v61 = vadd.f32 %v10410_v46, %v4516_v57  ;;  %6677 = vmatpush3.bf16.msra.mxu1 %v7377_v12  ;;  %v4043_v8 = vpop.f32.mrb[176].mxu0  ;;  %v4582_v10 = vmax.f32 %v4554_v22, 0.0  ;;  %v7387_v57 = vld [vmem:[%s10784_s9 + $0x108] sm:$0xff]  }
 0x3e3   :  { %v4583_v63 = vmax.f32 %v4555_v9, 0.0  ;;  %v4134_v38 = vmax.f32 %v11244_v47, %v4043_v8  ;;  %v4426_v4 = vpop.f32.mrb[176].mxu1  ;;  %v4045_v44 = vpop.f32.mrb[177].mxu0  ;;  %6678 = vmatprep.subr.bf16.mxu1 %v7379_v7  ;;  %v7388_v9 = vld [vmem:[%s10784_s9 + $0x198] sm:$0xff]  }
 0x3e4   :  { %v4584_v29 = vmax.f32 %v4556_v61, 0.0  ;;  %v4135_v31 = vmax.f32 %v11245_v58, %v4045_v44  ;;  %v4428_v32 = vpop.f32.mrb[177].mxu1  ;;  %v4047_v37 = vpop.f32.mrb[178].mxu0 }
 0x3e5   :  { %v4607_v60 = vpack.c.bf16 %v4583_v63, %v4581_v23  ;;  %v4517_v52 = vmax.f32 %v4134_v38, %v4426_v4  ;;  %v4136_v20 = vmax.f32 %v11246_v19, %v4047_v37  ;;  %v4430_v39 = vpop.f32.mrb[178].mxu1  ;;  %v4049_v35 = vpop.f32.mrb[179].mxu0  ;;  %v7389_v38 = vld [vmem:[%s10784_s9 + $0x150] sm:$0xff]   ;;  %v7390_v4 = vld [vmem:[%s10784_s9 + $0x1e0] sm:$0xff]  }
 0x3e6   :  { %v4518_v17 = vmax.f32 %v4135_v31, %v4428_v32  ;;  %v4137_v43 = vmax.f32 %v11247_v49, %v4049_v35  ;;  %v4432_v56 = vpop.f32.mrb[179].mxu1  ;;  %6679 = vmatpush3.bf16.msra.mxu1 %v7380_v24  ;;  %v4608_v15 = vpack.c.bf16 %v4584_v29, %v4582_v10  ;;  %v11248_v24 = vmax.f32 %v10233_v34, %v10236_v53 }
 0x3e7   :  { %v4557_v11 = vadd.f32 %v10403_v14, %v4517_v52  ;;  %v4519_v51 = vmax.f32 %v4136_v20, %v4430_v39  ;;  %6680 = vmatprep.subr.bf16.mxu1 %v7382_v41  ;;  %v11249_v10 = vmax.f32 %v10238_v2, %v10243_v48  ;;  %v11250_v32 = vmax.f32 %v10245_v1, %v10250_v33  ;;  %v7391_v48 = vld [vmem:[%s10784_s9 + $0x110] sm:$0xff]   ;;  %v7392_v1 = vld [vmem:[%s10784_s9 + $0x1a0] sm:$0xff]  }
 0x3e8   :  { %v4558_v12 = vadd.f32 %v10410_v46, %v4518_v17  ;;  %v4520_v30 = vmax.f32 %v4137_v43, %v4432_v56  ;;  %4812 = vmatprep.mubr.bf16.mxu0 %v4608_v15  ;;  %v11251_v20 = vmax.f32 %v10252_v25, %v10256_v55  ;;  %v7393_v25 = vld [vmem:[%s10784_s9 + $0x158] sm:$0xff]   ;;  %v7394_v55 = vld [vmem:[%s10784_s9 + $0x1e8] sm:$0xff]  }
 0x3e9   :  { %v4559_v40 = vadd.f32 %v10403_v14, %v4519_v51  ;;  %4813 = vmatmul.mubr.bf16.vlgmr.msra.gmra.mrb[208].mxu0 %v4607_v60  ;;  %v4585_v61 = vmax.f32 %v4557_v11, 0.0  ;;  %v7396_v11 = vld [vmem:[%s10784_s9 + $0x1a8] sm:$0xff]  }
 0x3ea   :  { %v4560_v7 = vadd.f32 %v10410_v46, %v4520_v30  ;;  %6655 = vmatpush3.bf16.msra.mxu0 %v7383_v21  ;;  %6681 = vmatpush3.bf16.msra.mxu1 %v7384_v45  ;;  %v4053_v22 = vpop.f32.mrb[180].mxu0  ;;  %v4586_v44 = vmax.f32 %v4558_v12, 0.0  ;;  %v7395_v45 = vld [vmem:[%s10784_s9 + $0x118] sm:$0xff]  }
 0x3eb   :  { %v4587_v8 = vmax.f32 %v4559_v40, 0.0  ;;  %v4138_v23 = vmax.f32 %v11248_v24, %v4053_v22  ;;  %v4436_v63 = vpop.f32.mrb[180].mxu1  ;;  %v4055_v47 = vpop.f32.mrb[181].mxu0  ;;  %6656 = vmatprep.subr.bf16.mxu0 %v7385_v50  ;;  %6682 = vmatprep.subr.bf16.mxu1 %v7386_v3  ;;  %v11252_v3 = vmax.f32 %v10261_v26, %v10264_v28  ;;  %v7398_v22 = vld [vmem:[%s10784_s9 + $0x1f0] sm:$0xff]  }
 0x3ec   :  { %v4588_v41 = vmax.f32 %v4560_v7, 0.0  ;;  %v4139_v29 = vmax.f32 %v11249_v10, %v4055_v47  ;;  %v4438_v34 = vpop.f32.mrb[181].mxu1  ;;  %v4057_v53 = vpop.f32.mrb[182].mxu0  ;;  %v7397_v7 = vld [vmem:[%s10784_s9 + $0x160] sm:$0xff]  }
 0x3ed   :  { %v10496_v58 = vpack.c.bf16 %v4587_v8, %v4585_v61  ;;  %v4521_v31 = vmax.f32 %v4138_v23, %v4436_v63  ;;  %v4140_v37 = vmax.f32 %v11250_v32, %v4057_v53  ;;  %v4440_v60 = vpop.f32.mrb[182].mxu1  ;;  %v4059_v52 = vpop.f32.mrb[183].mxu0  ;;  %v11253_v61 = vmax.f32 %v10266_v62, %v10271_v59  ;;  %v7399_v59 = vld [vmem:[%s10784_s9 + $0x120] sm:$0xff]  }
 0x3ee   :  { %v4522_v19 = vmax.f32 %v4139_v29, %v4438_v34  ;;  %v4141_v39 = vmax.f32 %v11251_v20, %v4059_v52  ;;  %v4442_v35 = vpop.f32.mrb[183].mxu1  ;;  %6657 = vmatpush3.bf16.msra.mxu0 %v7387_v57  ;;  %6683 = vmatpush3.bf16.msra.mxu1 %v7388_v9  ;;  %v4610_v2 = vpack.c.bf16 %v4588_v41, %v4586_v44  ;;  %v7403_v52 = vld [vmem:[%s10784_s9 + $0x128] sm:$0xff]  }
 0x3ef   :  { %v4561_v33 = vadd.f32 %v10403_v14, %v4521_v31  ;;  %v4523_v17 = vmax.f32 %v4140_v37, %v4440_v60  ;;  %6658 = vmatprep.subr.bf16.mxu0 %v7389_v38  ;;  %6684 = vmatprep.subr.bf16.mxu1 %v7390_v4  ;;  %v11254_v63 = vmax.f32 %v10273_v18, %v10278_v36  ;;  %v7400_v18 = vld [vmem:[%s10784_s9 + $0x1b0] sm:$0xff]  }
 0x3f0   :  { %v4562_v49 = vadd.f32 %v10410_v46, %v4522_v19  ;;  %v4524_v43 = vmax.f32 %v4141_v39, %v4442_v35  ;;  %5119 = vmatprep.mubr.bf16.mxu0 %v4610_v2  ;;  %v11255_v41 = vmax.f32 %v10280_v5, %v10284_v13  ;;  %v7401_v5 = vld [vmem:[%s10784_s9 + $0x168] sm:$0xff]   ;;  %v7402_v13 = vld [vmem:[%s10784_s9 + $0x1f8] sm:$0xff]   ;;  %v11256_v35 = vmax.f32 %v10288_v0, %v10291_v16 }
 0x3f1   :  { %v4563_v56 = vadd.f32 %v10403_v14, %v4523_v17  ;;  %v4589_v51 = vmax.f32 %v4561_v33, 0.0  ;;  %v7404_v19 = vld [vmem:[%s10784_s9 + $0x1b8] sm:$0xff]   ;;  %v7405_v33 = vld [vmem:[%s10784_s9 + $0x170] sm:$0xff]   ;;  %v7406_v17 = vld [vmem:[%s10784_s9 + $0x2c0] sm:$0xff]  }
 0x3f2   :  { %v4564_v15 = vadd.f32 %v10410_v46, %v4524_v43  ;;  %6659 = vmatpush3.bf16.msra.mxu0 %v7391_v48  ;;  %6685 = vmatpush3.bf16.msra.mxu1 %v7392_v1  ;;  %v4063_v21 = vpop.f32.mrb[184].mxu0  ;;  %v4590_v57 = vmax.f32 %v4562_v49, 0.0  ;;  %v11257_v49 = vmax.f32 %v10293_v54, %v10298_v27  ;;  %v7407_v27 = vld [vmem:[%s10784_s9 + $0x130] sm:$0xff]   ;;  %v7408_v54 = vld [vmem:[%s10784_s9 + $0x280] sm:$0xff]  }
 0x3f3   :  { %v4591_v50 = vmax.f32 %v4563_v56, 0.0  ;;  %v4142_v12 = vmax.f32 %v11252_v3, %v4063_v21  ;;  %v4446_v30 = vpop.f32.mrb[184].mxu1  ;;  %v4065_v40 = vpop.f32.mrb[185].mxu0  ;;  %6660 = vmatprep.subr.bf16.mxu0 %v7393_v25  ;;  %6686 = vmatprep.subr.bf16.mxu1 %v7394_v55  ;;  %v11258_v21 = vmax.f32 %v10300_v42, %v10304_v6  ;;  %v11259_v3 = vld [vmem:[#allocation14_spill] sm:$0xff] }
 0x3f4   :  { %v4592_v9 = vmax.f32 %v4564_v15, 0.0  ;;  %v4143_v8 = vmax.f32 %v11253_v61, %v4065_v40  ;;  %v4448_v26 = vpop.f32.mrb[185].mxu1  ;;  %v4067_v28 = vpop.f32.mrb[186].mxu0 }
 0x3f5   :  { %v10538_v24 = vpack.c.bf16 %v4591_v50, %v4589_v51  ;;  %v4525_v23 = vmax.f32 %v4142_v12, %v4446_v30  ;;  %v4144_v47 = vmax.f32 %v11254_v63, %v4067_v28  ;;  %v4450_v38 = vpop.f32.mrb[186].mxu1  ;;  %v4069_v4 = vpop.f32.mrb[187].mxu0  ;;  %v11260_v12 = vld [vmem:[#allocation15_spill] sm:$0xff] }
 0x3f6   :  { %v4526_v44 = vmax.f32 %v4143_v8, %v4448_v26  ;;  %v4145_v10 = vmax.f32 %v11255_v41, %v4069_v4  ;;  %v4452_v29 = vpop.f32.mrb[187].mxu1  ;;  %6661 = vmatpush3.bf16.msra.mxu0 %v7395_v45  ;;  %6687 = vmatpush3.bf16.msra.mxu1 %v7396_v11  ;;  %v4612_v62 = vpack.c.bf16 %v4592_v9, %v4590_v57  ;;  %v7409_v57 = vld [vmem:[%s10784_s9 + $0x178] sm:$0xff]   ;;  %v7410_v9 = vld [vmem:[%s10784_s9 + $0x2c8] sm:$0xff]  }
 0x3f7   :  { %v4565_v36 = vadd.f32 %v10403_v14, %v4525_v23  ;;  %v4527_v34 = vmax.f32 %v4144_v47, %v4450_v38  ;;  %6662 = vmatprep.subr.bf16.mxu0 %v7397_v7  ;;  %6688 = vmatprep.subr.bf16.mxu1 %v7398_v22  ;;  %v11261_v30 = vmax.f32 %v11259_v3, %v11260_v12  ;;  %v7411_v63 = vld [vmem:[%s10784_s9 + $0x138] sm:$0xff]   ;;  %v7412_v47 = vld [vmem:[%s10784_s9 + $0x288] sm:$0xff]  }
 0x3f8   :  { %v4566_v53 = vadd.f32 %v10410_v46, %v4526_v44  ;;  %v4528_v31 = vmax.f32 %v4145_v10, %v4452_v29  ;;  %5291 = vmatprep.mubr.bf16.mxu1 %v4612_v62  ;;  %v11262_v44 = vld [vmem:[#allocation26_spill] sm:$0xff]  ;;  %v11263_v41 = vld [vmem:[#allocation27_spill] sm:$0xff] }
 0x3f9   :  { %v4567_v32 = vadd.f32 %v10403_v14, %v4527_v34  ;;  %v4593_v20 = vmax.f32 %v4565_v36, 0.0  ;;  %v11264_v10 = vmax.f32 %v11262_v44, %v11263_v41  ;;  %v7427_v44 = vld [vmem:[%s10784_s9 + $0x218] sm:$0xff]   ;;  %v7428_v41 = vld [vmem:[%s10784_s9 + $0x2a8] sm:$0xff]  }
 0x3fa   :  { %v4568_v37 = vadd.f32 %v10410_v46, %v4528_v31  ;;  %6663 = vmatpush3.bf16.msra.mxu0 %v7399_v59  ;;  %6689 = vmatpush3.bf16.msra.mxu1 %v7400_v18  ;;  %v4073_v60 = vpop.f32.mrb[188].mxu0  ;;  %v4594_v25 = vmax.f32 %v4566_v53, 0.0  ;;  %v7413_v59 = vld [vmem:[%s10784_s9 + $0x240] sm:$0xff]   ;;  %v7414_v18 = vld [vmem:[%s10784_s9 + $0x2d0] sm:$0xff]  }
 0x3fb   :  { %v4595_v39 = vmax.f32 %v4567_v32, 0.0  ;;  %v4146_v2 = vmax.f32 %v11256_v35, %v4073_v60  ;;  %v4456_v48 = vpop.f32.mrb[188].mxu1  ;;  %v4075_v1 = vpop.f32.mrb[189].mxu0  ;;  %6664 = vmatprep.subr.bf16.mxu0 %v7401_v5  ;;  %6690 = vmatprep.subr.bf16.mxu1 %v7402_v13  ;;  %v11265_v5 = vld [vmem:[#allocation28_spill] sm:$0xff]  ;;  %v11266_v13 = vld [vmem:[#allocation37_spill] sm:$0xff] }
 0x3fc   :  { %v4596_v55 = vmax.f32 %v4568_v37, 0.0  ;;  %v4147_v43 = vmax.f32 %v11257_v49, %v4075_v1  ;;  %v4458_v0 = vpop.f32.mrb[189].mxu1  ;;  %v4077_v16 = vpop.f32.mrb[190].mxu0  ;;  %v11267_v53 = vmax.f32 %v11265_v5, %v11266_v13  ;;  %v7437_v5 = vld [vmem:[%s10784_s9 + $0x270] sm:$0xff]  }
 0x3fd   :  { %v10580_v56 = vpack.c.bf16 %v4595_v39, %v4593_v20  ;;  %v4529_v15 = vmax.f32 %v4146_v2, %v4456_v48  ;;  %v4148_v45 = vmax.f32 %v11258_v21, %v4077_v16  ;;  %v4460_v11 = vpop.f32.mrb[190].mxu1  ;;  %v4079_v51 = vpop.f32.mrb[191].mxu0  ;;  %v11269_v20 = vld [vmem:[#allocation31_spill] sm:$0xff]  ;;  %v7416_v21 = vld [vmem:[%s10784_s9 + $0x290] sm:$0xff]  }
 0x3fe   :  { %v4530_v50 = vmax.f32 %v4147_v43, %v4458_v0  ;;  %v4149_v40 = vmax.f32 %v11261_v30, %v4079_v51  ;;  %v4462_v7 = vpop.f32.mrb[191].mxu1  ;;  %6665 = vmatpush3.bf16.msra.mxu0 %v7403_v52  ;;  %6691 = vmatpush3.bf16.msra.mxu1 %v7404_v19  ;;  %v4614_v6 = vpack.c.bf16 %v4596_v55, %v4594_v25  ;;  %v11268_v19 = vld [vmem:[#allocation29_spill] sm:$0xff]  ;;  %v7415_v0 = vld [vmem:[%s10784_s9 + $0x200] sm:$0xff]   ;;  %v7438_v13 = vld [vmem:[%s10784_s9 + $0x230] sm:$0xff]  }
 0x3ff   :  { %v4569_v42 = vadd.f32 %v10403_v14, %v4529_v15  ;;  %v4531_v22 = vmax.f32 %v4148_v45, %v4460_v11  ;;  %6666 = vmatprep.subr.bf16.mxu0 %v7405_v33  ;;  %6720 = vmatprep.subr.bf16.mxu1 %v7406_v17  ;;  %v11270_v39 = vmax.f32 %v11268_v19, %v11269_v20  ;;  %v11271_v33 = vld [vmem:[#allocation38_spill] sm:$0xff]  ;;  %v11272_v17 = vld [vmem:[#allocation39_spill] sm:$0xff]  ;;  %v7417_v45 = vld [vmem:[%s10784_s9 + $0x248] sm:$0xff]  }
 0x400   :  { %v4570_v61 = vadd.f32 %v10410_v46, %v4530_v50  ;;  %v4532_v8 = vmax.f32 %v4149_v40, %v4462_v7  ;;  %v11273_v25 = vmax.f32 %v11271_v33, %v11272_v17  ;;  %v7418_v50 = vld [vmem:[%s10784_s9 + $0x2d8] sm:$0xff]   ;;  %v7419_v30 = vld [vmem:[%s10784_s9 + $0x208] sm:$0xff]   ;;  %v7445_v19 = vld [vmem:[%s10784_s9 + $0x350] sm:$0xff]  }
 0x401   :  { %v4571_v26 = vadd.f32 %v10403_v14, %v4531_v22  ;;  %5292 = vmatmul.mubr.bf16.vlgmr.msra.gmra.mrb[212].mxu1 %v10538_v24  ;;  %v4597_v38 = vmax.f32 %v4569_v42, 0.0  ;;  %v7422_v22 = vld [vmem:[%s10784_s9 + $0x2e0] sm:$0xff]   ;;  %v7446_v20 = vld [vmem:[%s10784_s9 + $0x310] sm:$0xff]  }
 0x402   :  { %v4572_v28 = vadd.f32 %v10410_v46, %v4532_v8  ;;  %6667 = vmatpush3.bf16.msra.mxu0 %v7407_v27  ;;  %6721 = vmatpush3.bf16.msra.mxu1 %v7408_v54  ;;  %v4083_v23 = vpop.f32.mrb[192].mxu0  ;;  %v4598_v36 = vmax.f32 %v4570_v61, 0.0  ;;  %v7420_v54 = vld [vmem:[%s10784_s9 + $0x298] sm:$0xff]   ;;  %v7453_v33 = vld [vmem:[%s10784_s9 + $0x370] sm:$0xff]  }
 0x403   :  { %v4599_v4 = vmax.f32 %v4571_v26, 0.0  ;;  %v4150_v29 = vmax.f32 %v11264_v10, %v4083_v23  ;;  %v4466_v24 = vpop.f32.mrb[192].mxu1  ;;  %v4085_v62 = vpop.f32.mrb[193].mxu0  ;;  %6668 = vmatprep.subr.bf16.mxu0 %v7409_v57  ;;  %6722 = vmatprep.subr.bf16.mxu1 %v7410_v9  ;;  %v7429_v10 = vld [vmem:[%s10784_s9 + $0x260] sm:$0xff]   ;;  %v7454_v17 = vld [vmem:[%s10784_s9 + $0x330] sm:$0xff]  }
 0x404   :  { %v4600_v34 = vmax.f32 %v4572_v28, 0.0  ;;  %v4151_v31 = vmax.f32 %v11267_v53, %v4085_v62  ;;  %v4468_v32 = vpop.f32.mrb[193].mxu1  ;;  %v4087_v37 = vpop.f32.mrb[194].mxu0  ;;  %v7423_v28 = vld [vmem:[%s10784_s9 + $0x210] sm:$0xff]   ;;  %v7439_v53 = vld [vmem:[%s10784_s9 + $0x278] sm:$0xff]  }
 0x405   :  { %v10623_v60 = vpack.c.bf16 %v4599_v4, %v4597_v38  ;;  %v4533_v52 = vmax.f32 %v4150_v29, %v4466_v24  ;;  %v4152_v35 = vmax.f32 %v11270_v39, %v4087_v37  ;;  %v4470_v2 = vpop.f32.mrb[194].mxu1  ;;  %v4089_v48 = vpop.f32.mrb[195].mxu0  ;;  %v7425_v38 = vld [vmem:[%s10784_s9 + $0x258] sm:$0xff]   ;;  %v7426_v4 = vld [vmem:[%s10784_s9 + $0x2e8] sm:$0xff]   ;;  %v7430_v29 = vld [vmem:[%s10784_s9 + $0x2f0] sm:$0xff]  }
 0x406   :  { %v4534_v1 = vmax.f32 %v4151_v31, %v4468_v32  ;;  %v4153_v55 = vmax.f32 %v11273_v25, %v4089_v48  ;;  %v4472_v49 = vpop.f32.mrb[195].mxu1  ;;  %6669 = vmatpush3.bf16.msra.mxu0 %v7411_v63  ;;  %6723 = vmatpush3.bf16.msra.mxu1 %v7412_v47  ;;  %v4616_v43 = vpack.c.bf16 %v4600_v34, %v4598_v36  ;;  %v7424_v47 = vld [vmem:[%s10784_s9 + $0x2a0] sm:$0xff]   ;;  %v7432_v62 = vld [vmem:[%s10784_s9 + $0x2b0] sm:$0xff]   ;;  %v7435_v36 = vld [vmem:[%s10784_s9 + $0x228] sm:$0xff]  }
 0x407   :  { %v4573_v16 = vadd.f32 %v10403_v14, %v4533_v52  ;;  %v4535_v15 = vmax.f32 %v4152_v35, %v4470_v2  ;;  %6698 = vmatprep.subr.bf16.mxu0 %v7413_v59  ;;  %6724 = vmatprep.subr.bf16.mxu1 %v7414_v18  ;;  %v7431_v24 = vld [vmem:[%s10784_s9 + $0x220] sm:$0xff]   ;;  %v7433_v59 = vld [vmem:[%s10784_s9 + $0x268] sm:$0xff]   ;;  %v7434_v18 = vld [vmem:[%s10784_s9 + $0x2f8] sm:$0xff]  }
 0x408   :  { %v4574_v11 = vadd.f32 %v10410_v46, %v4534_v1  ;;  %v4536_v51 = vmax.f32 %v4153_v55, %v4472_v49  ;;  %5635 = vmatprep.mubr.bf16.mxu1 %v4616_v43  ;;  %v7436_v34 = vld [vmem:[%s10784_s9 + $0x2b8] sm:$0xff]   ;;  %v7441_v32 = vld [vmem:[%s10784_s9 + $0x340] sm:$0xff]   ;;  %v7444_v52 = vld [vmem:[%s10784_s9 + $0x308] sm:$0xff]  }
 0x409   :  { %v4575_v3 = vadd.f32 %v10403_v14, %v4535_v15  ;;  %5120 = vmatmul.mubr.bf16.vlgmr.msra.gmra.mrb[212].mxu0 %v10496_v58  ;;  %v4601_v7 = vmax.f32 %v4573_v16, 0.0  ;;  %v7421_v14 = vld [vmem:[%s10784_s9 + $0x250] sm:$0xff]   ;;  %v7440_v31 = vld [vmem:[%s10784_s9 + $0x238] sm:$0xff]   ;;  %v7442_v37 = vld [vmem:[%s10784_s9 + $0x300] sm:$0xff]  }
 0x40a   :  { %v4576_v12 = vadd.f32 %v10410_v46, %v4536_v51  ;;  %6699 = vmatpush3.bf16.msra.mxu0 %v7415_v0  ;;  %5463 = vmatprep.mubr.bf16.mxu0 %v4614_v6  ;;  %v4093_v40 = vpop.f32.mrb[204].mxu0  ;;  %v4602_v6 = vmax.f32 %v4574_v11, 0.0  ;;  %v7448_v39 = vld [vmem:[%s10784_s9 + $0x318] sm:$0xff]   ;;  %v7449_v35 = vld [vmem:[%s10784_s9 + $0x360] sm:$0xff]   ;;  %v7451_v48 = vld [vmem:[%s10784_s9 + $0x368] sm:$0xff]  }
 0x40b   :  { %v4603_v27 = vmax.f32 %v4575_v3, 0.0  ;;  %6725 = vmatpush3.bf16.msra.mxu1 %v7416_v21  ;;  %6700 = vmatprep.subr.bf16.mxu0 %v7417_v45  ;;  %v4476_v46 = vpop.f32.mrb[204].mxu1  ;;  %v4094_v58 = vpop.f32.mrb[205].mxu0  ;;  %v7450_v2 = vld [vmem:[%s10784_s9 + $0x320] sm:$0xff]   ;;  %v7452_v1 = vld [vmem:[%s10784_s9 + $0x328] sm:$0xff]   ;;  %v7455_v25 = vld [vmem:[%s10784_s9 + $0x378] sm:$0xff]  }
 0x40c   :  { %v4604_v42 = vmax.f32 %v4576_v12, 0.0  ;;  %6726 = vmatprep.subr.bf16.mxu1 %v7418_v50  ;;  %v4477_v57 = vpop.f32.mrb[205].mxu1  ;;  %v4095_v9 = vpop.f32.mrb[206].mxu0  ;;  %v7456_v55 = vld [vmem:[%s10784_s9 + $0x338] sm:$0xff]  }
 0x40d   :  { %v10660_v61 = vpack.c.bf16 %v4603_v27, %v4601_v7  ;;  %v4478_v8 = vpop.f32.mrb[206].mxu1  ;;  %v4096_v26 = vpop.f32.mrb[207].mxu0 }
 0x40e   :  { %6701 = vmatpush3.bf16.msra.mxu0 %v7419_v30  ;;  %v4618_v23 = vpack.c.bf16 %v4604_v42, %v4602_v6  ;;  %v4479_v63 = vpop.f32.mrb[207].mxu1 }
 0x40f   :  { %6727 = vmatpush3.bf16.msra.mxu1 %v7420_v54  ;;  %6702 = vmatprep.subr.bf16.mxu0 %v7421_v14 }
 0x410   :  { %6728 = vmatprep.subr.bf16.mxu1 %v7422_v22 }
 0x412   :  { %6703 = vmatpush3.bf16.msra.mxu0 %v7423_v28 }
 0x413   :  { %6729 = vmatpush3.bf16.msra.mxu1 %v7424_v47  ;;  %6704 = vmatprep.subr.bf16.mxu0 %v7425_v38 }
 0x414   :  { %6730 = vmatprep.subr.bf16.mxu1 %v7426_v4 }
 0x416   :  { %6705 = vmatpush3.bf16.msra.mxu0 %v7427_v44 }
 0x417   :  { %6731 = vmatpush3.bf16.msra.mxu1 %v7428_v41  ;;  %6706 = vmatprep.subr.bf16.mxu0 %v7429_v10 }
 0x418   :  { %6732 = vmatprep.subr.bf16.mxu1 %v7430_v29 }
 0x41a   :  { %6707 = vmatpush3.bf16.msra.mxu0 %v7431_v24 }
 0x41b   :  { %6733 = vmatpush3.bf16.msra.mxu1 %v7432_v62  ;;  %6708 = vmatprep.subr.bf16.mxu0 %v7433_v59 }
 0x41c   :  { %6734 = vmatprep.subr.bf16.mxu1 %v7434_v18 }
 0x41e   :  { %6709 = vmatpush3.bf16.msra.mxu0 %v7435_v36 }
 0x41f   :  { %6735 = vmatpush3.bf16.msra.mxu1 %v7436_v34  ;;  %6710 = vmatprep.subr.bf16.mxu0 %v7437_v5 }
 0x422   :  { %5636 = vmatmul.mubr.bf16.vlgmr.msra.gmra.mrb[216].mxu1 %v10623_v60  ;;  %6711 = vmatpush3.bf16.msra.mxu0 %v7438_v13  ;;  %v7443_v60 = vld [vmem:[%s10784_s9 + $0x348] sm:$0xff]  }
 0x423   :  { %6712 = vmatprep.subr.bf16.mxu0 %v7439_v53 }
 0x426   :  { %6713 = vmatpush3.bf16.msra.mxu0 %v7440_v31 }
 0x427   :  { %6742 = vmatprep.subr.bf16.mxu0 %v7441_v32 }
 0x429   :  { %5464 = vmatmul.mubr.bf16.vlgmr.msra.gmra.mrb[216].mxu0 %v10580_v56  ;;  %v7447_v56 = vld [vmem:[%s10784_s9 + $0x358] sm:$0xff]  }
 0x42a   :  { %6743 = vmatpush3.bf16.msra.mxu0 %v7442_v37  ;;  %5807 = vmatprep.mubr.bf16.mxu0 %v4618_v23 }
 0x42b   :  { %6744 = vmatprep.subr.bf16.mxu0 %v7443_v60  ;;  %v6609_v60 = vld [vmem:[%s10786_s10] ss:$0 sm:$0xff] }
 0x42e   :  { %6745 = vmatpush3.bf16.msra.mxu0 %v7444_v52 }
 0x42f   :  { %6746 = vmatprep.subr.bf16.mxu0 %v7445_v19 }
 0x432   :  { %6747 = vmatpush3.bf16.msra.mxu0 %v7446_v20 }
 0x433   :  { %6748 = vmatprep.subr.bf16.mxu0 %v7447_v56 }
 0x436   :  { %6749 = vmatpush3.bf16.msra.mxu0 %v7448_v39 }
 0x437   :  { %6750 = vmatprep.subr.bf16.mxu0 %v7449_v35 }
 0x43a   :  { %6751 = vmatpush3.bf16.msra.mxu0 %v7450_v2 }
 0x43b   :  { %6752 = vmatprep.subr.bf16.mxu0 %v7451_v48 }
 0x43e   :  { %6753 = vmatpush3.bf16.msra.mxu0 %v7452_v1 }
 0x43f   :  { %6754 = vmatprep.subr.bf16.mxu0 %v7453_v33 }
 0x442   :  { %6755 = vmatpush3.bf16.msra.mxu0 %v7454_v17 }
 0x443   :  { %6756 = vmatprep.subr.bf16.mxu0 %v7455_v25 }
 0x446   :  { %6757 = vmatpush3.bf16.msra.mxu0 %v7456_v55 }
 0x449   :  { %5808 = vmatmul.mubr.bf16.vlgmr.msra.gmra.mrb[220].mxu0 %v10660_v61 }
 0x4b4   :  { %v6648_v49 = vpop.f32.mrb[208].mxu1 }
 0x4b5   :  { %v6649_v43 = vpop.f32.mrb[209].mxu1 }
 0x4b6   :  { %v6650_v0 = vadd.f32 %v6649_v43, %v6648_v49  ;;  %v6651_v16 = vpop.f32.mrb[210].mxu1 }
 0x4b7   :  { %v6652_v15 = vpop.f32.mrb[211].mxu1 }
 0x4b8   :  { %v6653_v21 = vadd.f32 %v6652_v15, %v6651_v16 }
 0x4bc   :  { %v6626_v45 = vpop.f32.mrb[208].mxu0 }
 0x4bd   :  { %v6627_v11 = vpop.f32.mrb[209].mxu0 }
 0x4be   :  { %v6628_v51 = vadd.f32 %v6627_v11, %v6626_v45  ;;  %v6629_v50 = vpop.f32.mrb[210].mxu0 }
 0x4bf   :  { %v6630_v3 = vpop.f32.mrb[211].mxu0 }
 0x4c0   :  { %v4952_v12 = vadd.f32 %v6650_v0, %v6628_v51  ;;  %v6631_v30 = vadd.f32 %v6630_v3, %v6629_v50 }
 0x4c2   :  { %v4955_v40 = vadd.f32 %v6653_v21, %v6631_v30 }
 0x4d4   :  { %v6692_v7 = vpop.f32.mrb[212].mxu1 }
 0x4d5   :  { %v6693_v27 = vpop.f32.mrb[213].mxu1 }
 0x4d6   :  { %v6694_v54 = vadd.f32 %v6693_v27, %v6692_v7  ;;  %v6695_v14 = vpop.f32.mrb[214].mxu1 }
 0x4d7   :  { %v6696_v46 = vpop.f32.mrb[215].mxu1 }
 0x4d8   :  { %v6697_v58 = vadd.f32 %v6696_v46, %v6695_v14 }
 0x4dc   :  { %v6670_v6 = vpop.f32.mrb[212].mxu0 }
 0x4dd   :  { %v6671_v42 = vpop.f32.mrb[213].mxu0 }
 0x4de   :  { %v6672_v22 = vadd.f32 %v6671_v42, %v6670_v6  ;;  %v6673_v57 = vpop.f32.mrb[214].mxu0 }
 0x4df   :  { %v6674_v9 = vpop.f32.mrb[215].mxu0 }
 0x4e0   :  { %v5128_v61 = vadd.f32 %v6672_v22, %v4952_v12  ;;  %v6675_v8 = vadd.f32 %v6674_v9, %v6673_v57 }
 0x4e2   :  { %v5129_v26 = vadd.f32 %v6675_v8, %v4955_v40  ;;  %v5300_v28 = vadd.f32 %v6694_v54, %v5128_v61 }
 0x4e4   :  { %v5301_v23 = vadd.f32 %v6697_v58, %v5129_v26 }
 0x4f5   :  { %v6736_v63 = vpop.f32.mrb[216].mxu1 }
 0x4f6   :  { %v6737_v47 = vpop.f32.mrb[217].mxu1 }
 0x4f7   :  { %v6738_v38 = vadd.f32 %v6737_v47, %v6736_v63  ;;  %v6739_v4 = vpop.f32.mrb[218].mxu1 }
 0x4f8   :  { %v6740_v44 = vpop.f32.mrb[219].mxu1 }
 0x4f9   :  { %v6741_v41 = vadd.f32 %v6740_v44, %v6739_v4 }
 0x4fc   :  { %v6714_v10 = vpop.f32.mrb[216].mxu0 }
 0x4fd   :  { %v6715_v29 = vpop.f32.mrb[217].mxu0 }
 0x4fe   :  { %v6716_v24 = vadd.f32 %v6715_v29, %v6714_v10  ;;  %v6717_v62 = vpop.f32.mrb[218].mxu0 }
 0x4ff   :  { %v6718_v59 = vpop.f32.mrb[219].mxu0 }
 0x500   :  { %v5472_v18 = vadd.f32 %v6716_v24, %v5300_v28  ;;  %v6719_v36 = vadd.f32 %v6718_v59, %v6717_v62 }
 0x502   :  { %v5473_v34 = vadd.f32 %v6719_v36, %v5301_v23  ;;  %v5644_v5 = vadd.f32 %v6738_v38, %v5472_v18 }
 0x504   :  { %v5645_v13 = vadd.f32 %v6741_v41, %v5473_v34 }
 0x51c   :  { %v6758_v53 = vpop.f32.mrb[220].mxu0 }
 0x51d   :  { %v6759_v31 = vpop.f32.mrb[221].mxu0 }
 0x51e   :  { %v6760_v32 = vadd.f32 %v6759_v31, %v6758_v53  ;;  %v6761_v37 = vpop.f32.mrb[222].mxu0 }
 0x51f   :  { %v6762_v52 = vpop.f32.mrb[223].mxu0 }
 0x520   :  { %v5816_v19 = vadd.f32 %v6760_v32, %v5644_v5  ;;  %v6763_v20 = vadd.f32 %v6762_v52, %v6761_v37 }
 0x522   :  { %v5825_v56 = vadd.f32 %v6609_v60, %v5816_v19  ;;  %v5817_v39 = vadd.f32 %v6763_v20, %v5645_v13 }
 0x524   :  { %5827 = vst [vmem:[%s10787_s11] sm:$0xff] %v5825_v56  ;;  %v5826_v35 = vadd.f32 %v6609_v60, %v5817_v39 }
 0x526   :  { %5828 = vst [vmem:[%s10787_s11 + $0x8] sm:$0xff] %v5826_v35 }

</bundles_post_ra>
